<compile_context>
chip_gen: v7x
topology: tpu7x:2x2x1
jax: 0.10.0
libtpu: 0.0.40
codegen_flags: <defaults>
</compile_context>

<pallas_src>
import functools

import jax
import jax.numpy as jnp
from jax.experimental import pallas as pl
from jax.experimental.pallas import tpu as pltpu

H1, H2, H3 = 500, 500, 2000  # hidden sizes fixed by the module definition
_LANE = 128                  # TPU lane width
_SUBLANE = 8                 # f32 sublane count


def _round_up(n, m):
    return (n + m - 1) // m * m


def _pad2(a, rows, cols):
    pr, pc = rows - a.shape[0], cols - a.shape[1]
    return jnp.pad(a, ((0, pr), (0, pc))) if (pr or pc) else a


def _mlp_kernel(x_ref,
                w1_ref, b1_ref,
                w2_ref, b2_ref,
                w3_ref, b3_ref,
                w4_ref, b4_ref,
                o_ref):
    """Whole 4-layer MLP forward for one batch tile, entirely in VMEM.

    Matmul operands use the weight dtype (bf16 default / f32 strict) so the
    MXU runs at native rate on every generation; accumulation is always f32.
    Bias-add and ReLU stay in f32 (cheap path on v5e, fine elsewhere).
    """
    cdt = w1_ref.dtype  # matmul operand dtype

    h = jnp.dot(x_ref[...].astype(cdt), w1_ref[...],
                preferred_element_type=jnp.float32)
    h = jnp.maximum(h + b1_ref[...], 0.0).astype(cdt)

    h = jnp.dot(h, w2_ref[...], preferred_element_type=jnp.float32)
    h = jnp.maximum(h + b2_ref[...], 0.0).astype(cdt)

    h = jnp.dot(h, w3_ref[...], preferred_element_type=jnp.float32)
    h = jnp.maximum(h + b3_ref[...], 0.0).astype(cdt)

    out = jnp.dot(h, w4_ref[...], preferred_element_type=jnp.float32) + b4_ref[...]
    o_ref[...] = out.astype(o_ref.dtype)


def prepare_encoder_params(params, *, weights_dtype=jnp.bfloat16):
    """One-time preparation (run OUTSIDE the per-call jitted path).

    Pads every feature dim (input, 500, 2000, feature_dim) up to a multiple of
    128 (lane-dense loads/stores, well-shaped MXU ops) and casts the weights to
    `weights_dtype`.  Zero padding is exact for this network: padded hidden
    columns get zero weight columns + zero bias -> ReLU(0)=0 -> they feed zero
    weight rows in the next layer; padding is sliced off in the wrapper.
    Biases stay f32 (epilogue runs in f32).
    """
    input_dim = params["w1"].shape[0]
    feature_dim = params["w4"].shape[1]
    in_p = _round_up(input_dim, _LANE)
    h1_p = _round_up(H1, _LANE)       # 500  -> 512
    h2_p = _round_up(H2, _LANE)       # 500  -> 512
    h3_p = _round_up(H3, _LANE)       # 2000 -> 2048
    fd_p = _round_up(feature_dim, _LANE)

    dims = [(in_p, h1_p), (h1_p, h2_p), (h2_p, h3_p), (h3_p, fd_p)]
    prepped = {}
    for idx, (r, c) in enumerate(dims, start=1):
        prepped[f"w{idx}"] = _pad2(params[f"w{idx}"], r, c).astype(weights_dtype)
        prepped[f"b{idx}"] = _pad2(params[f"b{idx}"], 1, c).astype(jnp.float32)
    return prepped


@functools.partial(jax.jit, static_argnames=("feature_dim", "block_b"))
def encoder_forward(x, prepped, *, feature_dim, block_b=None):
    """x: (B, input_dim) f32. prepped: output of prepare_encoder_params.

    Only the activations are padded per call; the (already padded / cast)
    weights are fed straight to pallas_call.  Returns (B, feature_dim) f32.
    """
    B, input_dim = x.shape
    w1, b1 = prepped["w1"], prepped["b1"]
    w2, b2 = prepped["w2"], prepped["b2"]
    w3, b3 = prepped["w3"], prepped["b3"]
    w4, b4 = prepped["w4"], prepped["b4"]

    in_p, h1_p = w1.shape
    h2_p, h3_p, fd_p = w2.shape[1], w3.shape[1], w4.shape[1]
    assert input_dim <= in_p and feature_dim <= fd_p

    # Batch tile: one big step (up to 512 rows) on single-TC v5e/v6e; for
    # B > 512 the grid has >= 2 "parallel" steps so v7x's 2 TCs can share it.
    if block_b is None:
        bb = min(512, _round_up(B, _SUBLANE))
    else:
        bb = min(block_b, _round_up(B, _SUBLANE))
    bb = _round_up(bb, _SUBLANE)
    B_p = _round_up(B, bb)

    # Per-call padding of activations only.
    x_p = _pad2(x, B_p, in_p)

    consts = (w1, b1, w2, b2, w3, b3, w4, b4)
    const_bytes = sum(int(a.size) * a.dtype.itemsize for a in consts)
    flops = 2 * B_p * (in_p * h1_p + h1_p * h2_p + h2_p * h3_p + h3_p * fd_p)
    bytes_accessed = B_p * in_p * 4 + const_bytes + B_p * fd_p * 4

    # Computed VMEM budget: double-buffered constants + double-buffered x/out
    # tiles + generous room for the f32 intermediates and Mosaic scratch.
    vmem_limit = (2 * const_bytes
                  + 2 * bb * (in_p + fd_p) * 4
                  + 2 * bb * (h1_p + h2_p + h3_p) * 4
                  + (8 << 20))
    vmem_limit = int(min(max(vmem_limit, 16 << 20), 48 << 20))

    full = lambda a: pl.BlockSpec(a.shape, lambda i: (0, 0))

    out_p = pl.pallas_call(
        _mlp_kernel,
        out_shape=jax.ShapeDtypeStruct((B_p, fd_p), jnp.float32),
        grid_spec=pltpu.PrefetchScalarGridSpec(
            num_scalar_prefetch=0,
            grid=(B_p // bb,),
            in_specs=[
                pl.BlockSpec((bb, in_p), lambda i: (i, 0)),   # x tile
                full(w1), full(b1),
                full(w2), full(b2),
                full(w3), full(b3),
                full(w4), full(b4),
            ],
            out_specs=pl.BlockSpec((bb, fd_p), lambda i: (i, 0)),
        ),
        compiler_params=pltpu.CompilerParams(
            dimension_semantics=("parallel",),   # batch tiles -> megacore shardable
            vmem_limit_bytes=vmem_limit,
        ),
        cost_estimate=pl.CostEstimate(
            flops=int(flops), transcendentals=0,
            bytes_accessed=int(bytes_accessed)),
    )(x_p, *consts)

    return out_p[:B, :feature_dim]


def init_encoder_params(key, input_dim, feature_dim):
    """Deterministic init mimicking nn.Linear's default U(-1/sqrt(in), 1/sqrt(in))."""
    dims = [(input_dim, H1), (H1, H2), (H2, H3), (H3, feature_dim)]
    params = {}
    keys = jax.random.split(key, 2 * len(dims))
    for idx, (d_in, d_out) in enumerate(dims):
        bound = 1.0 / jnp.sqrt(jnp.float32(d_in))
        params[f"w{idx + 1}"] = jax.random.uniform(
            keys[2 * idx], (d_in, d_out), minval=-bound, maxval=bound,
            dtype=jnp.float32)
        params[f"b{idx + 1}"] = jax.random.uniform(
            keys[2 * idx + 1], (1, d_out), minval=-bound, maxval=bound,
            dtype=jnp.float32)
    return params


def encoder_reference(x, params, weights_dtype=jnp.float32):
    """Pure-JAX reference with the same operand-dtype handling as the kernel."""
    def layer(h, w, b):
        return jnp.dot(h.astype(weights_dtype), w.astype(weights_dtype),
                       preferred_element_type=jnp.float32) + b

    h = jnp.maximum(layer(x, params["w1"], params["b1"]), 0.0)
    h = jnp.maximum(layer(h, params["w2"], params["b2"]), 0.0)
    h = jnp.maximum(layer(h, params["w3"], params["b3"]), 0.0)
    return layer(h, params["w4"], params["b4"])


if __name__ == "__main__":
    key = jax.random.PRNGKey(0)
    k_x, k_p = jax.random.split(key)

    batch, input_dim, feature_dim = 64, 32, 16
    x = jax.random.normal(k_x, (batch, input_dim), dtype=jnp.float32)
    params = init_encoder_params(k_p, input_dim, feature_dim)

    # Default bf16-weight fast path (f32 accumulation); params padded/cast once.
    prepped_bf16 = prepare_encoder_params(params, weights_dtype=jnp.bfloat16)
    out_bf = jax.block_until_ready(
        encoder_forward(x, prepped_bf16, feature_dim=feature_dim))
    ref_bf = encoder_reference(x, params, weights_dtype=jnp.bfloat16)
    assert out_bf.shape == (batch, feature_dim)
    assert jnp.allclose(out_bf, ref_bf, atol=2e-2, rtol=2e-2)

    # Strict f32 path: same semantics as the PyTorch module (default precision).
    prepped_f32 = prepare_encoder_params(params, weights_dtype=jnp.float32)
    out_f32 = jax.block_until_ready(
        encoder_forward(x, prepped_f32, feature_dim=feature_dim))
    ref_f32 = encoder_reference(x, params, weights_dtype=jnp.float32)
    assert out_f32.shape == (batch, feature_dim)
    assert jnp.allclose(out_f32, ref_f32, atol=1e-4, rtol=1e-4)

    print("KERNEL_OK")
</pallas_src>

<mosaic_0001>
module attributes {stable_mosaic.version = 11 : i64} {
  func.func @_mlp_kernel(%arg0: i32, %arg1: memref<64x128xf32, #tpu.memory_space<vmem>>, %arg2: memref<128x512xbf16, #tpu.memory_space<vmem>>, %arg3: memref<1x512xf32, #tpu.memory_space<vmem>>, %arg4: memref<512x512xbf16, #tpu.memory_space<vmem>>, %arg5: memref<1x512xf32, #tpu.memory_space<vmem>>, %arg6: memref<512x2048xbf16, #tpu.memory_space<vmem>>, %arg7: memref<1x2048xf32, #tpu.memory_space<vmem>>, %arg8: memref<2048x128xbf16, #tpu.memory_space<vmem>>, %arg9: memref<1x128xf32, #tpu.memory_space<vmem>>, %arg10: memref<64x128xf32, #tpu.memory_space<vmem>>) attributes {dimension_semantics = [#tpu.dimension_semantics<parallel>], iteration_bounds = array<i64: 1>, scalar_prefetch = 0 : i64, scratch_operands = 0 : i64, tpu.core_type = #tpu.core_type<tc>, window_params = [{transform_indices = @transform_0, window_bounds = array<i64: 64, 128>}, {pipeline_mode = #tpu.pipeline_mode<synchronous>, transform_indices = @transform_1, window_bounds = array<i64: 128, 512>}, {pipeline_mode = #tpu.pipeline_mode<synchronous>, transform_indices = @transform_2, window_bounds = array<i64: 1, 512>}, {pipeline_mode = #tpu.pipeline_mode<synchronous>, transform_indices = @transform_3, window_bounds = array<i64: 512, 512>}, {pipeline_mode = #tpu.pipeline_mode<synchronous>, transform_indices = @transform_4, window_bounds = array<i64: 1, 512>}, {pipeline_mode = #tpu.pipeline_mode<synchronous>, transform_indices = @transform_5, window_bounds = array<i64: 512, 2048>}, {pipeline_mode = #tpu.pipeline_mode<synchronous>, transform_indices = @transform_6, window_bounds = array<i64: 1, 2048>}, {pipeline_mode = #tpu.pipeline_mode<synchronous>, transform_indices = @transform_7, window_bounds = array<i64: 2048, 128>}, {pipeline_mode = #tpu.pipeline_mode<synchronous>, transform_indices = @transform_8, window_bounds = array<i64: 1, 128>}, {transform_indices = @transform_9, window_bounds = array<i64: 64, 128>}]} {
    %c0 = arith.constant 0 : index
    %c0_0 = arith.constant 0 : index
    %0 = vector.load %arg1[%c0, %c0_0] : memref<64x128xf32, #tpu.memory_space<vmem>>, vector<64x128xf32>
    %1 = arith.truncf %0 : vector<64x128xf32> to vector<64x128xbf16>
    %c0_1 = arith.constant 0 : index
    %c0_2 = arith.constant 0 : index
    %2 = vector.load %arg2[%c0_1, %c0_2] : memref<128x512xbf16, #tpu.memory_space<vmem>>, vector<128x512xbf16>
    %cst = arith.constant dense<0.000000e+00> : vector<64x512xf32>
    %3 = tpu.matmul %1, %2, %cst {dimension_numbers = #tpu.dot_dimension_numbers<[1], [0], [0], [1], [0, 0, 1, 1], [], []>} : vector<64x128xbf16>, vector<128x512xbf16>, vector<64x512xf32> -> vector<64x512xf32>
    %c0_3 = arith.constant 0 : index
    %c0_4 = arith.constant 0 : index
    %4 = vector.load %arg3[%c0_3, %c0_4] : memref<1x512xf32, #tpu.memory_space<vmem>>, vector<1x512xf32>
    %5 = vector.broadcast %4 : vector<1x512xf32> to vector<64x512xf32>
    %6 = arith.addf %3, %5 : vector<64x512xf32>
    %cst_5 = arith.constant 0.000000e+00 : f32
    %7 = vector.broadcast %cst_5 : f32 to vector<64x512xf32>
    %8 = arith.maximumf %6, %7 : vector<64x512xf32>
    %9 = arith.truncf %8 : vector<64x512xf32> to vector<64x512xbf16>
    %c0_6 = arith.constant 0 : index
    %c0_7 = arith.constant 0 : index
    %10 = vector.load %arg4[%c0_6, %c0_7] : memref<512x512xbf16, #tpu.memory_space<vmem>>, vector<512x512xbf16>
    %cst_8 = arith.constant dense<0.000000e+00> : vector<64x512xf32>
    %11 = tpu.matmul %9, %10, %cst_8 {dimension_numbers = #tpu.dot_dimension_numbers<[1], [0], [0], [1], [0, 0, 1, 1], [], []>} : vector<64x512xbf16>, vector<512x512xbf16>, vector<64x512xf32> -> vector<64x512xf32>
    %c0_9 = arith.constant 0 : index
    %c0_10 = arith.constant 0 : index
    %12 = vector.load %arg5[%c0_9, %c0_10] : memref<1x512xf32, #tpu.memory_space<vmem>>, vector<1x512xf32>
    %13 = vector.broadcast %12 : vector<1x512xf32> to vector<64x512xf32>
    %14 = arith.addf %11, %13 : vector<64x512xf32>
    %cst_11 = arith.constant 0.000000e+00 : f32
    %15 = vector.broadcast %cst_11 : f32 to vector<64x512xf32>
    %16 = arith.maximumf %14, %15 : vector<64x512xf32>
    %17 = arith.truncf %16 : vector<64x512xf32> to vector<64x512xbf16>
    %c0_12 = arith.constant 0 : index
    %c0_13 = arith.constant 0 : index
    %18 = vector.load %arg6[%c0_12, %c0_13] : memref<512x2048xbf16, #tpu.memory_space<vmem>>, vector<512x2048xbf16>
    %cst_14 = arith.constant dense<0.000000e+00> : vector<64x2048xf32>
    %19 = tpu.matmul %17, %18, %cst_14 {dimension_numbers = #tpu.dot_dimension_numbers<[1], [0], [0], [1], [0, 0, 1, 1], [], []>} : vector<64x512xbf16>, vector<512x2048xbf16>, vector<64x2048xf32> -> vector<64x2048xf32>
    %c0_15 = arith.constant 0 : index
    %c0_16 = arith.constant 0 : index
    %20 = vector.load %arg7[%c0_15, %c0_16] : memref<1x2048xf32, #tpu.memory_space<vmem>>, vector<1x2048xf32>
    %21 = vector.broadcast %20 : vector<1x2048xf32> to vector<64x2048xf32>
    %22 = arith.addf %19, %21 : vector<64x2048xf32>
    %cst_17 = arith.constant 0.000000e+00 : f32
    %23 = vector.broadcast %cst_17 : f32 to vector<64x2048xf32>
    %24 = arith.maximumf %22, %23 : vector<64x2048xf32>
    %25 = arith.truncf %24 : vector<64x2048xf32> to vector<64x2048xbf16>
    %c0_18 = arith.constant 0 : index
    %c0_19 = arith.constant 0 : index
    %26 = vector.load %arg8[%c0_18, %c0_19] : memref<2048x128xbf16, #tpu.memory_space<vmem>>, vector<2048x128xbf16>
    %cst_20 = arith.constant dense<0.000000e+00> : vector<64x128xf32>
    %27 = tpu.matmul %25, %26, %cst_20 {dimension_numbers = #tpu.dot_dimension_numbers<[1], [0], [0], [1], [0, 0, 1, 1], [], []>} : vector<64x2048xbf16>, vector<2048x128xbf16>, vector<64x128xf32> -> vector<64x128xf32>
    %c0_21 = arith.constant 0 : index
    %c0_22 = arith.constant 0 : index
    %28 = vector.load %arg9[%c0_21, %c0_22] : memref<1x128xf32, #tpu.memory_space<vmem>>, vector<1x128xf32>
    %29 = vector.broadcast %28 : vector<1x128xf32> to vector<64x128xf32>
    %30 = arith.addf %27, %29 : vector<64x128xf32>
    %c0_23 = arith.constant 0 : index
    %c0_24 = arith.constant 0 : index
    %31 = vector.load %arg10[%c0_23, %c0_24] : memref<64x128xf32, #tpu.memory_space<vmem>>, vector<64x128xf32>
    tpu.vector_store %arg10[%c0_23, %c0_24], %30 {strides = array<i32>} : memref<64x128xf32, #tpu.memory_space<vmem>>, vector<64x128xf32>,
    return
  }
  func.func @transform_0(%arg0: i32) -> (i32, i32) {
    %c0_i32 = arith.constant 0 : i32
    %c0_i32_0 = arith.constant 0 : i32
    return %arg0, %c0_i32 : i32, i32
  }
  func.func @transform_1(%arg0: i32) -> (i32, i32) {
    %c0_i32 = arith.constant 0 : i32
    %c0_i32_0 = arith.constant 0 : i32
    %c0_i32_1 = arith.constant 0 : i32
    return %c0_i32, %c0_i32_0 : i32, i32
  }
  func.func @transform_2(%arg0: i32) -> (i32, i32) {
    %c0_i32 = arith.constant 0 : i32
    %c0_i32_0 = arith.constant 0 : i32
    %c0_i32_1 = arith.constant 0 : i32
    return %c0_i32, %c0_i32_0 : i32, i32
  }
  func.func @transform_3(%arg0: i32) -> (i32, i32) {
    %c0_i32 = arith.constant 0 : i32
    %c0_i32_0 = arith.constant 0 : i32
    %c0_i32_1 = arith.constant 0 : i32
    return %c0_i32, %c0_i32_0 : i32, i32
  }
  func.func @transform_4(%arg0: i32) -> (i32, i32) {
    %c0_i32 = arith.constant 0 : i32
    %c0_i32_0 = arith.constant 0 : i32
    %c0_i32_1 = arith.constant 0 : i32
    return %c0_i32, %c0_i32_0 : i32, i32
  }
  func.func @transform_5(%arg0: i32) -> (i32, i32) {
    %c0_i32 = arith.constant 0 : i32
    %c0_i32_0 = arith.constant 0 : i32
    %c0_i32_1 = arith.constant 0 : i32
    return %c0_i32, %c0_i32_0 : i32, i32
  }
  func.func @transform_6(%arg0: i32) -> (i32, i32) {
    %c0_i32 = arith.constant 0 : i32
    %c0_i32_0 = arith.constant 0 : i32
    %c0_i32_1 = arith.constant 0 : i32
    return %c0_i32, %c0_i32_0 : i32, i32
  }
  func.func @transform_7(%arg0: i32) -> (i32, i32) {
    %c0_i32 = arith.constant 0 : i32
    %c0_i32_0 = arith.constant 0 : i32
    %c0_i32_1 = arith.constant 0 : i32
    return %c0_i32, %c0_i32_0 : i32, i32
  }
  func.func @transform_8(%arg0: i32) -> (i32, i32) {
    %c0_i32 = arith.constant 0 : i32
    %c0_i32_0 = arith.constant 0 : i32
    %c0_i32_1 = arith.constant 0 : i32
    return %c0_i32, %c0_i32_0 : i32, i32
  }
  func.func @transform_9(%arg0: i32) -> (i32, i32) {
    %c0_i32 = arith.constant 0 : i32
    %c0_i32_0 = arith.constant 0 : i32
    return %arg0, %c0_i32 : i32, i32
  }
}

</mosaic_0001>

<bundles_post_ra>
// kernel: encoder_forward.1
= control target key start
LH: loop header
LB: loop body
LE: loop exit
PB: predicated region body
PF: predicated region fallthrough
CT: control target
= control target key end

     0   :  { %14 = vsyncpa [#allocation3], 0  ;;  %s10870_s0 = inlined_call_operand.vmem [shape: f32[64,128], index: 0, kind: input, shape index: {}]   ;;  %s10871_s1 = inlined_call_operand.hbm [shape: bf16[128,512], index: 1, kind: input, shape index: {}]   ;;  %s10872_s2 = inlined_call_operand.hbm [shape: f32[1,512], index: 2, kind: input, shape index: {}]   ;;  %s10873_s3 = inlined_call_operand.hbm [shape: bf16[512,512], index: 3, kind: input, shape index: {}]   ;;  %s10874_s4 = inlined_call_operand.hbm [shape: f32[1,512], index: 4, kind: input, shape index: {}]   ;;  %s10875_s5 = inlined_call_operand.hbm [shape: bf16[512,2048], index: 5, kind: input, shape index: {}]   ;;  %s10876_s6 = inlined_call_operand.hbm [shape: f32[1,2048], index: 6, kind: input, shape index: {}]   ;;  %s10877_s7 = inlined_call_operand.hbm [shape: bf16[2048,128], index: 7, kind: input, shape index: {}]   ;;  %s10878_s8 = inlined_call_operand.hbm [shape: f32[1,128], index: 8, kind: input, shape index: {}]   ;;  %s10879_s9 = inlined_call_operand.vmem [shape: f32[64,128], index: 9, kind: output, shape index: {}]  }
   0x1   :  { %15 = vsyncpa [#allocation5], 0 }
   0x2   :  { %16 = vsyncpa [#allocation8], 0 }
   0x3   :  { %17 = vsyncpa [#allocation11], 0 }
   0x4   :  { %18 = vsyncpa [#allocation14], 0  ;;  %s9778_s30 = smov [#allocation4]   ;;  %s9779_s11 = smov [#allocation7]  }
   0x5   :  { %s39_s10 = sshll.u32 %s9778_s30, 4  ;;  %s61_s12 = sshll.u32 %s9779_s11, 4  ;;  %s40_s10 = int_to_ptr.vmem [resolvable:$true] %s39_s10  ;;  %s62_s12 = int_to_ptr.vmem [resolvable:$true] %s61_s12 }
   0x6   :  { %s9592_s15 = scalar_lea.hbm %s10872_s2, 64 }
   0x7   :  { %p9593_p0 = scmp.ne.s32.totalorder %s10872_s2, %s9592_s15  ;;  %p9596_p1 = scmp.lt.u32.totalorder %s9592_s15, %s10872_s2 }
   0x9   :  { %p9598_p2 = pnand %p9596_p1, %p9593_p0 }
   0xb   :  { %9601 = shalt.err (!%p9598_p2)
}
   0xc   :  { %s9602_s20 = scalar_lea.vmem %s40_s10, 64  ;;  %p9607_p4 = scmp.lt.s32.totalorder %s40_s10, %s40_s10 }
   0xd   :  { %p9603_p3 = scmp.ne.s32.totalorder %s40_s10, %s9602_s20  ;;  %p9608_p5 = scmp.lt.s32.totalorder %s9602_s20, %s9602_s20 }
   0xf   :  { %p9609_p6 = por %p9608_p5, %p9607_p4 }
  0x11   :  { %p9610_p7 = pnand %p9609_p6, %p9603_p3 }
  0x13   :  { %9613 = shalt.err (!%p9610_p7)
}
  0x14   :  { %42 = dma.hbm_to_vmem [thread:$0]  %s10872_s2, 64, %s40_s10, [#allocation5]  }
  0x15   :  { %s9614_s25 = scalar_lea.hbm %s10874_s4, 64 }
  0x16   :  { %p9615_p8 = scmp.ne.s32.totalorder %s10874_s4, %s9614_s25  ;;  %p9618_p9 = scmp.lt.u32.totalorder %s9614_s25, %s10874_s4 }
  0x18   :  { %p9620_p10 = pnand %p9618_p9, %p9615_p8 }
  0x1a   :  { %9623 = shalt.err (!%p9620_p10)
}
  0x1b   :  { %s9624_s30 = scalar_lea.vmem %s62_s12, 64  ;;  %p9629_p12 = scmp.lt.s32.totalorder %s62_s12, %s62_s12 }
  0x1c   :  { %p9625_p11 = scmp.ne.s32.totalorder %s62_s12, %s9624_s30  ;;  %p9630_p13 = scmp.lt.s32.totalorder %s9624_s30, %s9624_s30 }
  0x1e   :  { %p9631_p0 = por %p9630_p13, %p9629_p12 }
  0x20   :  { %p9632_p1 = pnand %p9631_p0, %p9625_p11 }
  0x22   :  { %9635 = shalt.err (!%p9632_p1)
}
  0x23   :  { %64 = dma.hbm_to_vmem [thread:$0]  %s10874_s4, 64, %s62_s12, [#allocation8]  }
  0x24   :  { %s9780_s11 = smov [#allocation10]   ;;  %s9781_s14 = smov [#allocation2]  }
  0x25   :  { %s83_s13 = sshll.u32 %s9780_s11, 4  ;;  %s26_s15 = sshll.u32 %s9781_s14, 4  ;;  %s84_s13 = int_to_ptr.vmem [resolvable:$true] %s83_s13  ;;  %s9866_s15 = int_to_ptr.vmem [resolvable:$true] %s26_s15 }
  0x26   :  { %s9636_s18 = scalar_lea.hbm %s10876_s6, 256 }
  0x27   :  { %p9637_p2 = scmp.ne.s32.totalorder %s10876_s6, %s9636_s18  ;;  %p9640_p3 = scmp.lt.u32.totalorder %s9636_s18, %s10876_s6 }
  0x29   :  { %p9642_p4 = pnand %p9640_p3, %p9637_p2 }
  0x2b   :  { %9645 = shalt.err (!%p9642_p4)
}
  0x2c   :  { %s9646_s4 = scalar_lea.vmem %s84_s13, 256  ;;  %p9651_p6 = scmp.lt.s32.totalorder %s84_s13, %s84_s13 }
  0x2d   :  { %p9647_p5 = scmp.ne.s32.totalorder %s84_s13, %s9646_s4  ;;  %p9652_p7 = scmp.lt.s32.totalorder %s9646_s4, %s9646_s4 }
  0x2f   :  { %p9653_p8 = por %p9652_p7, %p9651_p6 }
  0x31   :  { %p9654_p9 = pnand %p9653_p8, %p9647_p5 }
  0x33   :  { %9657 = shalt.err (!%p9654_p9)
}
  0x34   :  { %86 = dma.hbm_to_vmem [thread:$0]  %s10876_s6, 256, %s84_s13, [#allocation11]  }
  0x35   :  { %s9658_s26 = scalar_lea.hbm %s10871_s1, 4096 }
  0x36   :  { %p9659_p10 = scmp.ne.s32.totalorder %s10871_s1, %s9658_s26  ;;  %p9662_p11 = scmp.lt.u32.totalorder %s9658_s26, %s10871_s1 }
  0x38   :  { %p9664_p12 = pnand %p9662_p11, %p9659_p10 }
  0x3a   :  { %9667 = shalt.err (!%p9664_p12)
}
  0x3b   :  { %s9668_s2 = scalar_lea.vmem %s9866_s15, 4096  ;;  %p9673_p0 = scmp.lt.s32.totalorder %s9866_s15, %s9866_s15 }
  0x3c   :  { %p9669_p13 = scmp.ne.s32.totalorder %s9866_s15, %s9668_s2  ;;  %p9674_p1 = scmp.lt.s32.totalorder %s9668_s2, %s9668_s2 }
  0x3e   :  { %p9675_p2 = por %p9674_p1, %p9673_p0 }
  0x40   :  { %p9676_p3 = pnand %p9675_p2, %p9669_p13 }
  0x42   :  { %9679 = shalt.err (!%p9676_p3)
}
  0x43   :  { %s9782_s6 = smov 256   ;;  %s9783_s10 = smov 16  }
  0x44   :  { %32 = dma.hbm_to_vmem [thread:$0]  %s10871_s1, 4096, %s9866_s15, [#allocation3], %s9782_s6, %s9782_s6, %s9783_s10  }
  0x45   :  { %s9784_s14 = smov [#allocation6]   ;;  %s9785_s17 = smov [#allocation9]  }
  0x46   :  { %s48_s16 = sshll.u32 %s9784_s14, 4  ;;  %s70_s18 = sshll.u32 %s9785_s17, 4  ;;  %s49_s16 = int_to_ptr.vmem [resolvable:$true] %s48_s16  ;;  %s9897_s18 = int_to_ptr.vmem [resolvable:$true] %s70_s18 }
  0x47   :  { %s9680_s21 = scalar_lea.hbm %s10873_s3, 16384 }
  0x48   :  { %p9681_p4 = scmp.ne.s32.totalorder %s10873_s3, %s9680_s21  ;;  %p9684_p5 = scmp.lt.u32.totalorder %s9680_s21, %s10873_s3 }
  0x4a   :  { %p9686_p6 = pnand %p9684_p5, %p9681_p4 }
  0x4c   :  { %9689 = shalt.err (!%p9686_p6)
}
  0x4d   :  { %s9690_s1 = scalar_lea.vmem %s49_s16, 16384  ;;  %p9695_p8 = scmp.lt.s32.totalorder %s49_s16, %s49_s16 }
  0x4e   :  { %p9691_p7 = scmp.ne.s32.totalorder %s49_s16, %s9690_s1  ;;  %p9696_p9 = scmp.lt.s32.totalorder %s9690_s1, %s9690_s1 }
  0x50   :  { %p9697_p10 = por %p9696_p9, %p9695_p8 }
  0x52   :  { %p9698_p11 = pnand %p9697_p10, %p9691_p7 }
  0x54   :  { %9701 = shalt.err (!%p9698_p11)
}
  0x55   :  { %54 = dma.hbm_to_vmem [thread:$0]  %s10873_s3, 16384, %s49_s16, [#allocation5], %s9782_s6, %s9782_s6, %s9783_s10  }
  0x56   :  { %s9702_s27 = scalar_lea.hbm %s10875_s5, 65536 }
  0x57   :  { %p9703_p12 = scmp.ne.s32.totalorder %s10875_s5, %s9702_s27  ;;  %p9706_p13 = scmp.lt.u32.totalorder %s9702_s27, %s10875_s5 }
  0x59   :  { %p9708_p0 = pnand %p9706_p13, %p9703_p12 }
  0x5b   :  { %9711 = shalt.err (!%p9708_p0)
}
  0x5c   :  { %s9712_s11 = scalar_lea.vmem %s9897_s18, 65536  ;;  %p9717_p2 = scmp.lt.s32.totalorder %s9897_s18, %s9897_s18 }
  0x5d   :  { %p9713_p1 = scmp.ne.s32.totalorder %s9897_s18, %s9712_s11  ;;  %p9718_p3 = scmp.lt.s32.totalorder %s9712_s11, %s9712_s11 }
  0x5f   :  { %p9719_p4 = por %p9718_p3, %p9717_p2 }
  0x61   :  { %p9720_p5 = pnand %p9719_p4, %p9713_p1 }
  0x63   :  { %9723 = shalt.err (!%p9720_p5)
}
  0x64   :  { %s9786_s3 = smov 1024   ;;  %s9787_s6 = smov 64  }
  0x65   :  { %76 = dma.hbm_to_vmem [thread:$0]  %s10875_s5, 65536, %s9897_s18, [#allocation8], %s9786_s3, %s9786_s3, %s9787_s6  }
  0x66   :  { %s9788_s14 = smov [#allocation12]   ;;  %s9789_s17 = smov [#allocation13]  }
  0x67   :  { %s92_s16 = sshll.u32 %s9788_s14, 4  ;;  %s105_s19 = sshll.u32 %s9789_s17, 4  ;;  %s93_s16 = int_to_ptr.vmem [resolvable:$true] %s92_s16  ;;  %s106_s19 = int_to_ptr.vmem [resolvable:$true] %s105_s19 }
  0x68   :  { %s9724_s22 = scalar_lea.hbm %s10877_s7, 16384 }
  0x69   :  { %p9725_p6 = scmp.ne.s32.totalorder %s10877_s7, %s9724_s22  ;;  %p9728_p7 = scmp.lt.u32.totalorder %s9724_s22, %s10877_s7 }
  0x6b   :  { %p9730_p8 = pnand %p9728_p7, %p9725_p6 }
  0x6d   :  { %9733 = shalt.err (!%p9730_p8)
}
  0x6e   :  { %s9734_s5 = scalar_lea.vmem %s93_s16, 16384  ;;  %p9739_p10 = scmp.lt.s32.totalorder %s93_s16, %s93_s16 }
  0x6f   :  { %p9735_p9 = scmp.ne.s32.totalorder %s93_s16, %s9734_s5  ;;  %p9740_p11 = scmp.lt.s32.totalorder %s9734_s5, %s9734_s5 }
  0x71   :  { %p9741_p12 = por %p9740_p11, %p9739_p10 }
  0x73   :  { %p9742_p13 = pnand %p9741_p12, %p9735_p9 }
  0x75   :  { %9745 = shalt.err (!%p9742_p13)
}
  0x76   :  { %s9790_s18 = smov 4   ;;  %s9746_s27 = scalar_lea.hbm %s10878_s8, 16 }
  0x77   :  { %98 = dma.hbm_to_vmem [thread:$0]  %s10877_s7, 16384, %s93_s16, [#allocation11], %s9787_s6, %s9787_s6, %s9790_s18  }
  0x78   :  { %p9747_p0 = scmp.ne.s32.totalorder %s10878_s8, %s9746_s27  ;;  %p9750_p1 = scmp.lt.u32.totalorder %s9746_s27, %s10878_s8 }
  0x7a   :  { %p9752_p2 = pnand %p9750_p1, %p9747_p0 }
  0x7c   :  { %9755 = shalt.err (!%p9752_p2)
}
  0x7d   :  { %s9756_s11 = scalar_lea.vmem %s106_s19, 16  ;;  %s9760_s3 = scalar_lea.vmem %s106_s19, 32 }
  0x7e   :  { %p9757_p3 = scmp.ne.s32.totalorder %s106_s19, %s9756_s11  ;;  %p9761_p4 = scmp.lt.s32.totalorder %s106_s19, %s106_s19 }
  0x7f   :  { %p9762_p5 = scmp.lt.s32.totalorder %s9760_s3, %s9756_s11 }
  0x81   :  { %p9763_p6 = por %p9762_p5, %p9761_p4 }
  0x83   :  { %p9764_p7 = pnand %p9763_p6, %p9757_p3 }
  0x85   :  { %9767 = shalt.err (!%p9764_p7)
}
  0x86   :  { %108 = dma.hbm_to_vmem [thread:$0]  %s10878_s8, 16, %s106_s19, [#allocation14]  }
  0x87   :  { %9768 = dma.done.wait [#allocation3], 4096  }
  0x88   :  { %9769 = vsyncadd [#allocation3], 4294963200 }
  0x89   :  { %9770 = dma.done.wait [#allocation5], 16448  }
  0x8a   :  { %9771 = vsyncadd [#allocation5], 4294950848 }
  0x8b   :  { %9772 = dma.done.wait [#allocation8], 65600  }
  0x8c   :  { %9773 = vsyncadd [#allocation8], 4294901696 }
  0x8d   :  { %9774 = dma.done.wait [#allocation11], 16640  }
  0x8e   :  { %9775 = vsyncadd [#allocation11], 4294950656 }
  0x8f   :  { %9776 = dma.done.wait [#allocation14], 16  }
  0x90   :  { %9777 = vsyncadd [#allocation14], 4294967280  ;;  %v9791_v0 = vmov 0   ;;  %v9223_v1 = vld [vmem:[#allocation2 + $0x4] ss:$16 sps:$4 sm:$0xff]   ;;  %v135_v27 = vld [vmem:[%s10870_s0 + $0x8] sm:$0xff] }
  0x91   :  { %392 = vmatprep.mubr.bf16.mxu0 %v9791_v0  ;;  %465 = vmatprep.mubr.bf16.mxu1 %v9791_v0  ;;  %v9225_v2 = vld [vmem:[#allocation2] ss:$16 sps:$4 sm:$0xff]   ;;  %v9226_v3 = vld [vmem:[#allocation2 + $0x24] ss:$16 sps:$4 sm:$0xff]   ;;  %v9247_v10 = vld [vmem:[#allocation2 + $0xc] ss:$16 sps:$4 sm:$0xff]  }
  0x92   :  { %360 = vmatprep.subr.bf16.mxu0 %v9223_v1  ;;  %v9228_v4 = vld [vmem:[#allocation2 + $0x20] ss:$16 sps:$4 sm:$0xff]   ;;  %v9229_v5 = vld [vmem:[#allocation2 + $0x44] ss:$16 sps:$4 sm:$0xff]   ;;  %v9249_v11 = vld [vmem:[#allocation2 + $0x8] ss:$16 sps:$4 sm:$0xff]   ;;  %433 = vmatprep.subr.bf16.mxu1 %v9247_v10 }
  0x93   :  { %361 = vmatpush1.bf16.msra.mxu0 %v9225_v2  ;;  %v9231_v6 = vld [vmem:[#allocation2 + $0x40] ss:$16 sps:$4 sm:$0xff]   ;;  %v9232_v7 = vld [vmem:[#allocation2 + $0x64] ss:$16 sps:$4 sm:$0xff]   ;;  %v9250_v12 = vld [vmem:[#allocation2 + $0x2c] ss:$16 sps:$4 sm:$0xff]   ;;  %434 = vmatpush1.bf16.msra.mxu1 %v9249_v11 }
  0x94   :  { %362 = vmatprep.subr.bf16.mxu0 %v9226_v3  ;;  %v9234_v8 = vld [vmem:[#allocation2 + $0x60] ss:$16 sps:$4 sm:$0xff]   ;;  %v9235_v9 = vld [vmem:[#allocation2 + $0x84] ss:$16 sps:$4 sm:$0xff]   ;;  %v9252_v15 = vld [vmem:[#allocation2 + $0x28] ss:$16 sps:$4 sm:$0xff]   ;;  %435 = vmatprep.subr.bf16.mxu1 %v9250_v12 }
  0x95   :  { %v9237_v13 = vld [vmem:[#allocation2 + $0x80] ss:$16 sps:$4 sm:$0xff]   ;;  %v9238_v14 = vld [vmem:[#allocation2 + $0xa4] ss:$16 sps:$4 sm:$0xff]   ;;  %v9253_v16 = vld [vmem:[#allocation2 + $0x4c] ss:$16 sps:$4 sm:$0xff]  }
  0x96   :  { %v9240_v17 = vld [vmem:[#allocation2 + $0xa0] ss:$16 sps:$4 sm:$0xff]   ;;  %v9255_v18 = vld [vmem:[#allocation2 + $0x48] ss:$16 sps:$4 sm:$0xff]   ;;  %v9241_v19 = vld [vmem:[#allocation2 + $0xc4] ss:$16 sps:$4 sm:$0xff]  }
  0x97   :  { %363 = vmatpush1.bf16.msra.mxu0 %v9228_v4  ;;  %436 = vmatpush1.bf16.msra.mxu1 %v9252_v15  ;;  %v9256_v20 = vld [vmem:[#allocation2 + $0x6c] ss:$16 sps:$4 sm:$0xff]   ;;  %v9243_v21 = vld [vmem:[#allocation2 + $0xc0] ss:$16 sps:$4 sm:$0xff]   ;;  %v9244_v22 = vld [vmem:[#allocation2 + $0xe4] ss:$16 sps:$4 sm:$0xff]  }
  0x98   :  { %364 = vmatprep.subr.bf16.mxu0 %v9229_v5  ;;  %437 = vmatprep.subr.bf16.mxu1 %v9253_v16  ;;  %v9258_v23 = vld [vmem:[#allocation2 + $0x68] ss:$16 sps:$4 sm:$0xff]   ;;  %v9259_v24 = vld [vmem:[#allocation2 + $0x8c] ss:$16 sps:$4 sm:$0xff]   ;;  %v9246_v25 = vld [vmem:[#allocation2 + $0xe0] ss:$16 sps:$4 sm:$0xff]  }
  0x99   :  { %v134_v26 = vld [vmem:[%s10870_s0] sm:$0xff]  ;;  %v9261_v28 = vld [vmem:[#allocation2 + $0x88] ss:$16 sps:$4 sm:$0xff]   ;;  %v9262_v29 = vld [vmem:[#allocation2 + $0xac] ss:$16 sps:$4 sm:$0xff]  }
  0x9a   :  { %v9273_v30 = vld [vmem:[#allocation6 + $0x4] ss:$16 sps:$4 sm:$0xff]   ;;  %v142_v31 = vpack.c.bf16 %v135_v27, %v134_v26  ;;  %v9265_v33 = vld [vmem:[#allocation2 + $0xcc] ss:$16 sps:$4 sm:$0xff]   ;;  %v9271_v34 = vld [vmem:[#allocation6] ss:$16 sps:$4 sm:$0xff]  }
  0x9b   :  { %365 = vmatpush1.bf16.msra.mxu0 %v9231_v6  ;;  %438 = vmatpush1.bf16.msra.mxu1 %v9255_v18  ;;  %v9264_v32 = vld [vmem:[#allocation2 + $0xa8] ss:$16 sps:$4 sm:$0xff]   ;;  %v136_v36 = vld [vmem:[%s10870_s0 + $0x10] sm:$0xff]  ;;  %v9268_v39 = vld [vmem:[#allocation2 + $0xec] ss:$16 sps:$4 sm:$0xff]  }
  0x9c   :  { %366 = vmatprep.subr.bf16.mxu0 %v9232_v7  ;;  %439 = vmatprep.subr.bf16.mxu1 %v9256_v20  ;;  %v9279_v35 = vld [vmem:[#allocation6 + $0x24] ss:$16 sps:$4 sm:$0xff]   ;;  %v9277_v40 = vld [vmem:[#allocation6 + $0x20] ss:$16 sps:$4 sm:$0xff]   ;;  %v9276_v44 = vld [vmem:[#allocation6 + $0xc] ss:$16 sps:$4 sm:$0xff]  }
  0x9d   :  { %v137_v37 = vld [vmem:[%s10870_s0 + $0x18] sm:$0xff]  ;;  %v9283_v45 = vld [vmem:[#allocation6 + $0x40] ss:$16 sps:$4 sm:$0xff]   ;;  %v139_v48 = vld [vmem:[%s10870_s0 + $0x28] sm:$0xff] }
  0x9e   :  { %v9267_v38 = vld [vmem:[#allocation2 + $0xc8] ss:$16 sps:$4 sm:$0xff]   ;;  %v143_v42 = vpack.c.bf16 %v137_v37, %v136_v36  ;;  %v138_v47 = vld [vmem:[%s10870_s0 + $0x20] sm:$0xff]  ;;  %v9274_v49 = vld [vmem:[#allocation6 + $0x8] ss:$16 sps:$4 sm:$0xff]  }
  0x9f   :  { %367 = vmatpush1.bf16.msra.mxu0 %v9234_v8  ;;  %440 = vmatpush1.bf16.msra.mxu1 %v9258_v23  ;;  %v9285_v41 = vld [vmem:[#allocation6 + $0x44] ss:$16 sps:$4 sm:$0xff]   ;;  %v9282_v50 = vld [vmem:[#allocation6 + $0x2c] ss:$16 sps:$4 sm:$0xff]   ;;  %v9289_v51 = vld [vmem:[#allocation6 + $0x60] ss:$16 sps:$4 sm:$0xff]   ;;  %v144_v53 = vpack.c.bf16 %v139_v48, %v138_v47  ;;  %v180_v47 = vlaneseq }
  0xa0   :  { %368 = vmatprep.subr.bf16.mxu0 %v9235_v9  ;;  %441 = vmatprep.subr.bf16.mxu1 %v9259_v24  ;;  %v9270_v43 = vld [vmem:[#allocation2 + $0xe8] ss:$16 sps:$4 sm:$0xff]   ;;  %v9280_v54 = vld [vmem:[#allocation6 + $0x28] ss:$16 sps:$4 sm:$0xff]   ;;  %v9288_v55 = vld [vmem:[#allocation6 + $0x4c] ss:$16 sps:$4 sm:$0xff]  }
  0xa1   :  { %v9291_v46 = vld [vmem:[#allocation6 + $0x64] ss:$16 sps:$4 sm:$0xff]   ;;  %v9295_v56 = vld [vmem:[#allocation6 + $0x80] ss:$16 sps:$4 sm:$0xff]   ;;  %v9286_v60 = vld [vmem:[#allocation6 + $0x48] ss:$16 sps:$4 sm:$0xff]  }
  0xa2   :  { %v9297_v52 = vld [vmem:[#allocation6 + $0x84] ss:$16 sps:$4 sm:$0xff]   ;;  %v140_v58 = vld [vmem:[%s10870_s0 + $0x30] sm:$0xff]  ;;  %v9292_v2 = vld [vmem:[#allocation6 + $0x68] ss:$16 sps:$4 sm:$0xff]   ;;  %v9984_v48 = vshrl.u32 %v180_v47, 7 }
  0xa3   :  { %369 = vmatpush1.bf16.msra.mxu0 %v9237_v13  ;;  %442 = vmatpush1.bf16.msra.mxu1 %v9261_v28  ;;  %v9303_v57 = vld [vmem:[#allocation6 + $0xa4] ss:$16 sps:$4 sm:$0xff]   ;;  %v9294_v61 = vld [vmem:[#allocation6 + $0x6c] ss:$16 sps:$4 sm:$0xff]   ;;  %v9301_v62 = vld [vmem:[#allocation6 + $0xa0] ss:$16 sps:$4 sm:$0xff]  }
  0xa4   :  { %370 = vmatprep.subr.bf16.mxu0 %v9238_v14  ;;  %443 = vmatprep.subr.bf16.mxu1 %v9262_v29  ;;  %v141_v59 = vld [vmem:[%s10870_s0 + $0x38] sm:$0xff]  ;;  %v9300_v3 = vld [vmem:[#allocation6 + $0x8c] ss:$16 sps:$4 sm:$0xff]   ;;  %v9307_v4 = vld [vmem:[#allocation6 + $0xc0] ss:$16 sps:$4 sm:$0xff]   ;;  %10890 = vst [vmem:[#allocation20_spill] sm:$0xff] %v9984_v48 }
  0xa5   :  { %v9309_v63 = vld [vmem:[#allocation6 + $0xc4] ss:$16 sps:$4 sm:$0xff]   ;;  %v145_v1 = vpack.c.bf16 %v141_v59, %v140_v58  ;;  %v9298_v6 = vld [vmem:[#allocation6 + $0x88] ss:$16 sps:$4 sm:$0xff]   ;;  %v9306_v7 = vld [vmem:[#allocation6 + $0xac] ss:$16 sps:$4 sm:$0xff]  }
  0xa6   :  { %v9315_v5 = vld [vmem:[#allocation6 + $0xe4] ss:$16 sps:$4 sm:$0xff]   ;;  %v9313_v8 = vld [vmem:[#allocation6 + $0xe0] ss:$16 sps:$4 sm:$0xff]   ;;  %v9304_v9 = vld [vmem:[#allocation6 + $0xa8] ss:$16 sps:$4 sm:$0xff]  }
  0xa7   :  { %371 = vmatpush1.bf16.msra.mxu0 %v9240_v17  ;;  %444 = vmatpush1.bf16.msra.mxu1 %v9264_v32  ;;  %v9321_v10 = vld [vmem:[#allocation6 + $0x104] ss:$16 sps:$4 sm:$0xff]   ;;  %v9312_v11 = vld [vmem:[#allocation6 + $0xcc] ss:$16 sps:$4 sm:$0xff]   ;;  %v9319_v12 = vld [vmem:[#allocation6 + $0x100] ss:$16 sps:$4 sm:$0xff]  }
  0xa8   :  { %372 = vmatprep.subr.bf16.mxu0 %v9241_v19  ;;  %445 = vmatprep.subr.bf16.mxu1 %v9265_v33  ;;  %v9327_v13 = vld [vmem:[#allocation6 + $0x124] ss:$16 sps:$4 sm:$0xff]   ;;  %v9310_v14 = vld [vmem:[#allocation6 + $0xc8] ss:$16 sps:$4 sm:$0xff]   ;;  %v9318_v15 = vld [vmem:[#allocation6 + $0xec] ss:$16 sps:$4 sm:$0xff]  }
  0xa9   :  { %v9325_v16 = vld [vmem:[#allocation6 + $0x120] ss:$16 sps:$4 sm:$0xff]   ;;  %v9333_v17 = vld [vmem:[#allocation6 + $0x144] ss:$16 sps:$4 sm:$0xff]   ;;  %v9316_v18 = vld [vmem:[#allocation6 + $0xe8] ss:$16 sps:$4 sm:$0xff]  }
  0xaa   :  { %v9324_v19 = vld [vmem:[#allocation6 + $0x10c] ss:$16 sps:$4 sm:$0xff]   ;;  %v9331_v20 = vld [vmem:[#allocation6 + $0x140] ss:$16 sps:$4 sm:$0xff]   ;;  %v9345_v24 = vld [vmem:[#allocation6 + $0x184] ss:$16 sps:$4 sm:$0xff]  }
  0xab   :  { %373 = vmatpush1.bf16.msra.mxu0 %v9243_v21  ;;  %446 = vmatpush1.bf16.msra.mxu1 %v9267_v38  ;;  %v9339_v21 = vld [vmem:[#allocation6 + $0x164] ss:$16 sps:$4 sm:$0xff]   ;;  %v9337_v23 = vld [vmem:[#allocation6 + $0x160] ss:$16 sps:$4 sm:$0xff]   ;;  %v9336_v26 = vld [vmem:[#allocation6 + $0x14c] ss:$16 sps:$4 sm:$0xff]  }
  0xac   :  { %374 = vmatprep.subr.bf16.mxu0 %v9244_v22  ;;  %447 = vmatprep.subr.bf16.mxu1 %v9268_v39  ;;  %v9330_v22 = vld [vmem:[#allocation6 + $0x12c] ss:$16 sps:$4 sm:$0xff]   ;;  %v9343_v27 = vld [vmem:[#allocation6 + $0x180] ss:$16 sps:$4 sm:$0xff]   ;;  %v9351_v28 = vld [vmem:[#allocation6 + $0x1a4] ss:$16 sps:$4 sm:$0xff]  }
  0xad   :  { %v9334_v29 = vld [vmem:[#allocation6 + $0x148] ss:$16 sps:$4 sm:$0xff]   ;;  %v9348_v33 = vld [vmem:[#allocation6 + $0x18c] ss:$16 sps:$4 sm:$0xff]   ;;  %v9357_v37 = vld [vmem:[#allocation6 + $0x1c4] ss:$16 sps:$4 sm:$0xff]  }
  0xae   :  { %v9340_v32 = vld [vmem:[#allocation6 + $0x168] ss:$16 sps:$4 sm:$0xff]   ;;  %v9360_v38 = vld [vmem:[#allocation6 + $0x1cc] ss:$16 sps:$4 sm:$0xff]   ;;  %v9355_v39 = vld [vmem:[#allocation6 + $0x1c0] ss:$16 sps:$4 sm:$0xff]  }
  0xaf   :  { %375 = vmatpush1.bf16.msra.mxu0 %v9246_v25  ;;  %448 = vmatpush1.bf16.msra.mxu1 %v9270_v43  ;;  %v9328_v25 = vld [vmem:[#allocation6 + $0x128] ss:$16 sps:$4 sm:$0xff]   ;;  %v9361_v43 = vld [vmem:[#allocation6 + $0x1e0] ss:$16 sps:$4 sm:$0xff]  }
  0xb0   :  { %1344 = vmatprep.subr.bf16.mxu0 %v9273_v30  ;;  %1490 = vmatprep.subr.bf16.mxu1 %v9276_v44  ;;  %v9342_v30 = vld [vmem:[#allocation6 + $0x16c] ss:$16 sps:$4 sm:$0xff]   ;;  %v9352_v36 = vld [vmem:[#allocation6 + $0x1a8] ss:$16 sps:$4 sm:$0xff]  }
  0xb1   :  { %v9364_v44 = vld [vmem:[#allocation6 + $0x1e8] ss:$16 sps:$4 sm:$0xff]  }
  0xb2   :  { %393 = vmatmul.mubr.bf16.vlgmr.msra.gmra.mrb[0].mxu0 %v142_v31  ;;  %466 = vmatmul.mubr.bf16.vlgmr.msra.gmra.mrb[0].mxu1 %v142_v31  ;;  %v9349_v31 = vld [vmem:[#allocation6 + $0x1a0] ss:$16 sps:$4 sm:$0xff]  }
  0xb3   :  { %402 = vmatprep.mubr.bf16.mxu0 %v9791_v0  ;;  %1345 = vmatpush1.bf16.msra.mxu0 %v9271_v34  ;;  %v9346_v34 = vld [vmem:[#allocation6 + $0x188] ss:$16 sps:$4 sm:$0xff]  }
  0xb4   :  { %1346 = vmatprep.subr.bf16.mxu0 %v9279_v35  ;;  %475 = vmatprep.mubr.bf16.mxu1 %v9791_v0  ;;  %v9354_v35 = vld [vmem:[#allocation6 + $0x1ac] ss:$16 sps:$4 sm:$0xff]  }
  0xb5   :  { %1491 = vmatpush1.bf16.msra.mxu1 %v9274_v49  ;;  %v9987_v49 = vsub.s32 0, %v9984_v48 }
  0xb6   :  { %1492 = vmatprep.subr.bf16.mxu1 %v9282_v50  ;;  %v178_v50 = vld [vmem:[#allocation4] sm:$0xf] }
  0xb7   :  { %1347 = vmatpush1.bf16.msra.mxu0 %v9277_v40  ;;  %v9358_v40 = vld [vmem:[#allocation6 + $0x1c8] ss:$16 sps:$4 sm:$0xff]   ;;  %10891 = vst [vmem:[#allocation21_spill] sm:$0xff] %v9987_v49 }
  0xb8   :  { %1348 = vmatprep.subr.bf16.mxu0 %v9285_v41  ;;  %v9363_v41 = vld [vmem:[#allocation6 + $0x1e4] ss:$16 sps:$4 sm:$0xff]  }
  0xb9   :  { %1493 = vmatpush1.bf16.msra.mxu1 %v9280_v54 }
  0xba   :  { %403 = vmatmul.mubr.bf16.gmra.mrb[4].mxu0 %v143_v42  ;;  %1494 = vmatprep.subr.bf16.mxu1 %v9288_v55 }
  0xbb   :  { %412 = vmatprep.mubr.bf16.mxu0 %v9791_v0  ;;  %1349 = vmatpush1.bf16.msra.mxu0 %v9283_v45  ;;  %v9369_v45 = vld [vmem:[#allocation6 + $0x204] ss:$16 sps:$4 sm:$0xff]  }
  0xbc   :  { %1350 = vmatprep.subr.bf16.mxu0 %v9291_v46  ;;  %476 = vmatmul.mubr.bf16.gmra.mrb[4].mxu1 %v143_v42  ;;  %v9366_v42 = vld [vmem:[#allocation6 + $0x1ec] ss:$16 sps:$4 sm:$0xff]  }
  0xbd   :  { %485 = vmatprep.mubr.bf16.mxu1 %v9791_v0  ;;  %1495 = vmatpush1.bf16.msra.mxu1 %v9286_v60  ;;  %v9372_v46 = vld [vmem:[#allocation6 + $0x20c] ss:$16 sps:$4 sm:$0xff]  }
  0xbe   :  { %1496 = vmatprep.subr.bf16.mxu1 %v9294_v61 }
  0xbf   :  { %1351 = vmatpush1.bf16.msra.mxu0 %v9289_v51  ;;  %v9990_v51 = vsub.s32 1, %v9984_v48 }
  0xc0   :  { %1352 = vmatprep.subr.bf16.mxu0 %v9297_v52  ;;  %v9993_v52 = vrot.slane %v178_v50, %v9987_v49 }
  0xc1   :  { %1497 = vmatpush1.bf16.msra.mxu1 %v9292_v2  ;;  %10892 = vst [vmem:[#allocation22_spill] sm:$0xff] %v9990_v51 }
  0xc2   :  { %413 = vmatmul.mubr.bf16.gmra.mrb[8].mxu0 %v144_v53  ;;  %1498 = vmatprep.subr.bf16.mxu1 %v9300_v3 }
  0xc3   :  { %422 = vmatprep.mubr.bf16.mxu0 %v9791_v0  ;;  %1353 = vmatpush1.bf16.msra.mxu0 %v9295_v56 }
  0xc4   :  { %1354 = vmatprep.subr.bf16.mxu0 %v9303_v57  ;;  %486 = vmatmul.mubr.bf16.gmra.mrb[8].mxu1 %v144_v53  ;;  %v9996_v53 = vrot.slane %v178_v50, %v9990_v51 }
  0xc5   :  { %495 = vmatprep.mubr.bf16.mxu1 %v9791_v0  ;;  %1499 = vmatpush1.bf16.msra.mxu1 %v9298_v6  ;;  %v9322_v0 = vld [vmem:[#allocation6 + $0x108] ss:$16 sps:$4 sm:$0xff]  }
  0xc6   :  { %1500 = vmatprep.subr.bf16.mxu1 %v9306_v7  ;;  %v9367_v7 = vld [vmem:[#allocation6 + $0x200] ss:$16 sps:$4 sm:$0xff]  }
  0xc7   :  { %1355 = vmatpush1.bf16.msra.mxu0 %v9301_v62 }
  0xc8   :  { %1356 = vmatprep.subr.bf16.mxu0 %v9309_v63 }
  0xc9   :  { %1501 = vmatpush1.bf16.msra.mxu1 %v9304_v9 }
  0xca   :  { %423 = vmatmul.mubr.bf16.gmra.mrb[12].mxu0 %v145_v1  ;;  %1502 = vmatprep.subr.bf16.mxu1 %v9312_v11  ;;  %v9378_v11 = vld [vmem:[#allocation6 + $0x22c] ss:$16 sps:$4 sm:$0xff]  }
  0xcb   :  { %1357 = vmatpush1.bf16.msra.mxu0 %v9307_v4  ;;  %v10006_v4 = vsub.s32 3, %v9984_v48 }
  0xcc   :  { %1358 = vmatprep.subr.bf16.mxu0 %v9315_v5  ;;  %496 = vmatmul.mubr.bf16.gmra.mrb[12].mxu1 %v145_v1  ;;  %v10003_v1 = vsub.s32 2, %v9984_v48 }
  0xcd   :  { %1503 = vmatpush1.bf16.msra.mxu1 %v9310_v14  ;;  %10894 = vst [vmem:[#allocation24_spill] sm:$0xff] %v10006_v4 }
  0xce   :  { %1504 = vmatprep.subr.bf16.mxu1 %v9318_v15  ;;  %10893 = vst [vmem:[#allocation23_spill] sm:$0xff] %v10003_v1  ;;  %v10010_v14 = vrot.slane %v178_v50, %v10003_v1 }
  0xcf   :  { %1359 = vmatpush1.bf16.msra.mxu0 %v9313_v8  ;;  %v9370_v8 = vld [vmem:[#allocation6 + $0x208] ss:$16 sps:$4 sm:$0xff]  }
  0xd0   :  { %1360 = vmatprep.subr.bf16.mxu0 %v9321_v10  ;;  %v9375_v10 = vld [vmem:[#allocation6 + $0x224] ss:$16 sps:$4 sm:$0xff]  }
  0xd1   :  { %1505 = vmatpush1.bf16.msra.mxu1 %v9316_v18 }
  0xd2   :  { %1506 = vmatprep.subr.bf16.mxu1 %v9324_v19 }
  0xd3   :  { %1361 = vmatpush1.bf16.msra.mxu0 %v9319_v12 }
  0xd4   :  { %1362 = vmatprep.subr.bf16.mxu0 %v9327_v13 }
  0xd5   :  { %1507 = vmatpush1.bf16.msra.mxu1 %v9322_v0  ;;  %v9376_v0 = vld [vmem:[#allocation6 + $0x228] ss:$16 sps:$4 sm:$0xff]  }
  0xd6   :  { %1508 = vmatprep.subr.bf16.mxu1 %v9330_v22 }
  0xd7   :  { %1363 = vmatpush1.bf16.msra.mxu0 %v9325_v16 }
  0xd8   :  { %1364 = vmatprep.subr.bf16.mxu0 %v9333_v17  ;;  %v10014_v17 = vrot.slane %v178_v50, %v10006_v4 }
  0xd9   :  { %1509 = vmatpush1.bf16.msra.mxu1 %v9328_v25  ;;  %v9381_v25 = vld [vmem:[#allocation6 + $0x244] ss:$16 sps:$4 sm:$0xff]  }
  0xda   :  { %1510 = vmatprep.subr.bf16.mxu1 %v9336_v26  ;;  %v9384_v26 = vld [vmem:[#allocation6 + $0x24c] ss:$16 sps:$4 sm:$0xff]  }
  0xdb   :  { %1365 = vmatpush1.bf16.msra.mxu0 %v9331_v20 }
  0xdc   :  { %1366 = vmatprep.subr.bf16.mxu0 %v9339_v21  ;;  %v9373_v21 = vld [vmem:[#allocation6 + $0x220] ss:$16 sps:$4 sm:$0xff]  }
  0xdd   :  { %1511 = vmatpush1.bf16.msra.mxu1 %v9334_v29 }
  0xde   :  { %1512 = vmatprep.subr.bf16.mxu1 %v9342_v30 }
  0xdf   :  { %1367 = vmatpush1.bf16.msra.mxu0 %v9337_v23 }
  0xe0   :  { %1368 = vmatprep.subr.bf16.mxu0 %v9345_v24 }
  0xe1   :  { %1513 = vmatpush1.bf16.msra.mxu1 %v9340_v32 }
  0xe2   :  { %1514 = vmatprep.subr.bf16.mxu1 %v9348_v33 }
  0xe3   :  { %1369 = vmatpush1.bf16.msra.mxu0 %v9343_v27 }
  0xe4   :  { %1370 = vmatprep.subr.bf16.mxu0 %v9351_v28 }
  0xe5   :  { %1515 = vmatpush1.bf16.msra.mxu1 %v9346_v34 }
  0xe6   :  { %1516 = vmatprep.subr.bf16.mxu1 %v9354_v35 }
  0xe7   :  { %1371 = vmatpush1.bf16.msra.mxu0 %v9349_v31 }
  0xe8   :  { %1372 = vmatprep.subr.bf16.mxu0 %v9357_v37  ;;  %v9379_v37 = vld [vmem:[#allocation6 + $0x240] ss:$16 sps:$4 sm:$0xff]  }
  0xe9   :  { %1517 = vmatpush1.bf16.msra.mxu1 %v9352_v36 }
  0xea   :  { %1518 = vmatprep.subr.bf16.mxu1 %v9360_v38  ;;  %v9382_v38 = vld [vmem:[#allocation6 + $0x248] ss:$16 sps:$4 sm:$0xff]  }
  0xeb   :  { %1373 = vmatpush1.bf16.msra.mxu0 %v9355_v39 }
  0xec   :  { %1374 = vmatprep.subr.bf16.mxu0 %v9363_v41 }
  0xed   :  { %1519 = vmatpush1.bf16.msra.mxu1 %v9358_v40 }
  0xee   :  { %1520 = vmatprep.subr.bf16.mxu1 %v9366_v42 }
  0xef   :  { %1375 = vmatpush1.bf16.msra.mxu0 %v9361_v43  ;;  %v9387_v43 = vld [vmem:[#allocation6 + $0x264] ss:$16 sps:$4 sm:$0xff]  }
  0xf0   :  { %1417 = vmatprep.subr.bf16.mxu0 %v9369_v45 }
  0xf1   :  { %1521 = vmatpush1.bf16.msra.mxu1 %v9364_v44  ;;  %v9390_v44 = vld [vmem:[#allocation6 + $0x26c] ss:$16 sps:$4 sm:$0xff]  }
  0xf2   :  { %1563 = vmatprep.subr.bf16.mxu1 %v9372_v46 }
 0x185   :  { %v394_v54 = vpop.f32.mrb[0].mxu0  ;;  %v467_v24 = vpop.f32.mrb[0].mxu1 }
 0x186   :  { %v395_v55 = vadd.f32 %v394_v54, %v9993_v52  ;;  %v396_v56 = vpop.f32.mrb[1].mxu0  ;;  %v468_v28 = vadd.f32 %v467_v24, %v10010_v14  ;;  %v469_v29 = vpop.f32.mrb[1].mxu1  ;;  %v9399_v24 = vld [vmem:[#allocation6 + $0x2a4] ss:$16 sps:$4 sm:$0xff]  }
 0x187   :  { %v397_v57 = vadd.f32 %v396_v56, %v9996_v53  ;;  %v398_v58 = vpop.f32.mrb[2].mxu0  ;;  %v470_v31 = vadd.f32 %v469_v29, %v10014_v17  ;;  %v471_v32 = vpop.f32.mrb[2].mxu1 }
 0x188   :  { %v399_v59 = vadd.f32 %v398_v58, %v9993_v52  ;;  %v400_v60 = vpop.f32.mrb[3].mxu0  ;;  %v506_v62 = vmax.f32 %v395_v55, 0.0  ;;  %v508_v34 = vmax.f32 %v468_v28, 0.0  ;;  %v472_v35 = vadd.f32 %v471_v32, %v10010_v14  ;;  %v473_v36 = vpop.f32.mrb[3].mxu1 }
 0x189   :  { %v401_v61 = vadd.f32 %v400_v60, %v9996_v53  ;;  %v507_v2 = vmax.f32 %v397_v57, 0.0  ;;  %v509_v41 = vmax.f32 %v470_v31, 0.0  ;;  %v474_v42 = vadd.f32 %v473_v36, %v10014_v17  ;;  %v9385_v60 = vld [vmem:[#allocation6 + $0x260] ss:$16 sps:$4 sm:$0xff]  }
 0x18a   :  { %v510_v63 = vmax.f32 %v399_v59, 0.0  ;;  %v512_v47 = vmax.f32 %v472_v35, 0.0  ;;  %v9397_v36 = vld [vmem:[#allocation6 + $0x2a0] ss:$16 sps:$4 sm:$0xff]  }
 0x18b   :  { %v511_v3 = vmax.f32 %v401_v61, 0.0  ;;  %v513_v55 = vmax.f32 %v474_v42, 0.0  ;;  %v9388_v61 = vld [vmem:[#allocation6 + $0x268] ss:$16 sps:$4 sm:$0xff]   ;;  %v9405_v42 = vld [vmem:[#allocation6 + $0x2c4] ss:$16 sps:$4 sm:$0xff]  }
 0x18c   :  { %v538_v5 = vpack.c.bf16 %v510_v63, %v506_v62  ;;  %v10025_v59 = vpack.c.bf16 %v512_v47, %v508_v34 }
 0x18d   :  { %v539_v6 = vpack.c.bf16 %v511_v3, %v507_v2  ;;  %v404_v9 = vpop.f32.mrb[4].mxu0  ;;  %v10028_v2 = vpack.c.bf16 %v513_v55, %v509_v41 }
 0x18e   :  { %v405_v12 = vadd.f32 %v404_v9, %v9993_v52  ;;  %v406_v13 = vpop.f32.mrb[5].mxu0 }
 0x18f   :  { %1376 = vmatprep.mubr.bf16.mxu0 %v539_v6  ;;  %1522 = vmatprep.mubr.bf16.mxu1 %v539_v6  ;;  %v407_v15 = vadd.f32 %v406_v13, %v9996_v53  ;;  %v408_v16 = vpop.f32.mrb[6].mxu0  ;;  %v477_v3 = vpop.f32.mrb[4].mxu1  ;;  %v9396_v6 = vld [vmem:[#allocation6 + $0x28c] ss:$16 sps:$4 sm:$0xff]  }
 0x190   :  { %1377 = vmatmul.mubr.bf16.vlgmr.msra.gmra.mrb[16].mxu0 %v538_v5  ;;  %1523 = vmatmul.mubr.bf16.vlgmr.msra.gmra.mrb[16].mxu1 %v538_v5  ;;  %v514_v18 = vmax.f32 %v405_v12, 0.0  ;;  %v409_v19 = vadd.f32 %v408_v16, %v9993_v52  ;;  %v410_v20 = vpop.f32.mrb[7].mxu0  ;;  %v9393_v5 = vld [vmem:[#allocation6 + $0x284] ss:$16 sps:$4 sm:$0xff]   ;;  %v479_v9 = vpop.f32.mrb[5].mxu1 }
 0x191   :  { %1418 = vmatpush1.bf16.msra.mxu0 %v9367_v7  ;;  %1564 = vmatpush1.bf16.msra.mxu1 %v9370_v8  ;;  %v515_v22 = vmax.f32 %v407_v15, 0.0  ;;  %v411_v23 = vadd.f32 %v410_v20, %v9996_v53  ;;  %v478_v8 = vadd.f32 %v477_v3, %v10010_v14  ;;  %v481_v12 = vpop.f32.mrb[6].mxu1  ;;  %v9394_v20 = vld [vmem:[#allocation6 + $0x288] ss:$16 sps:$4 sm:$0xff]   ;;  %v9414_v3 = vld [vmem:[#allocation6 + $0x2ec] ss:$16 sps:$4 sm:$0xff]  }
 0x192   :  { %1419 = vmatprep.subr.bf16.mxu0 %v9375_v10  ;;  %1565 = vmatprep.subr.bf16.mxu1 %v9378_v11  ;;  %v518_v27 = vmax.f32 %v409_v19, 0.0  ;;  %v480_v11 = vadd.f32 %v479_v9, %v10014_v17  ;;  %v482_v16 = vadd.f32 %v481_v12, %v10010_v14  ;;  %v9391_v19 = vld [vmem:[#allocation6 + $0x280] ss:$16 sps:$4 sm:$0xff]   ;;  %v9412_v9 = vld [vmem:[#allocation6 + $0x2e8] ss:$16 sps:$4 sm:$0xff]  }
 0x193   :  { %v519_v30 = vmax.f32 %v411_v23, 0.0  ;;  %v516_v15 = vmax.f32 %v478_v8, 0.0  ;;  %v9409_v8 = vld [vmem:[#allocation6 + $0x2e0] ss:$16 sps:$4 sm:$0xff]   ;;  %v9417_v12 = vld [vmem:[#allocation6 + $0x304] ss:$16 sps:$4 sm:$0xff]  }
 0x194   :  { %v542_v33 = vpack.c.bf16 %v518_v27, %v514_v18  ;;  %v483_v18 = vpop.f32.mrb[7].mxu1  ;;  %v520_v28 = vmax.f32 %v482_v16, 0.0 }
 0x195   :  { %1420 = vmatpush1.bf16.msra.mxu0 %v9373_v21  ;;  %1566 = vmatpush1.bf16.msra.mxu1 %v9376_v0  ;;  %v543_v39 = vpack.c.bf16 %v519_v30, %v515_v22  ;;  %v414_v40 = vpop.f32.mrb[8].mxu0  ;;  %v517_v22 = vmax.f32 %v480_v11, 0.0  ;;  %v484_v23 = vadd.f32 %v483_v18, %v10014_v17 }
 0x196   :  { %1421 = vmatprep.subr.bf16.mxu0 %v9381_v25  ;;  %1567 = vmatprep.subr.bf16.mxu1 %v9384_v26  ;;  %v415_v45 = vadd.f32 %v414_v40, %v9993_v52  ;;  %v416_v46 = vpop.f32.mrb[9].mxu0  ;;  %v9402_v25 = vld [vmem:[#allocation6 + $0x2ac] ss:$16 sps:$4 sm:$0xff]   ;;  %v10037_v35 = vpack.c.bf16 %v520_v28, %v516_v15 }
 0x197   :  { %v417_v50 = vadd.f32 %v416_v46, %v9996_v53  ;;  %v418_v54 = vpop.f32.mrb[10].mxu0  ;;  %1386 = vmatprep.mubr.bf16.mxu0 %v543_v39  ;;  %1532 = vmatprep.mubr.bf16.mxu1 %v543_v39  ;;  %v521_v31 = vmax.f32 %v484_v23, 0.0  ;;  %v487_v41 = vpop.f32.mrb[8].mxu1  ;;  %v9418_v23 = vld [vmem:[#allocation6 + $0x308] ss:$16 sps:$4 sm:$0xff]  }
 0x198   :  { %v522_v56 = vmax.f32 %v415_v45, 0.0  ;;  %v419_v57 = vadd.f32 %v418_v54, %v9993_v52  ;;  %v420_v58 = vpop.f32.mrb[11].mxu0  ;;  %1387 = vmatmul.mubr.bf16.gmra.mrb[20].mxu0 %v542_v33  ;;  %1533 = vmatmul.mubr.bf16.gmra.mrb[20].mxu1 %v542_v33  ;;  %v489_v45 = vpop.f32.mrb[9].mxu1 }
 0x199   :  { %1422 = vmatpush1.bf16.msra.mxu0 %v9379_v37  ;;  %1568 = vmatpush1.bf16.msra.mxu1 %v9382_v38  ;;  %v523_v62 = vmax.f32 %v417_v50, 0.0  ;;  %v421_v63 = vadd.f32 %v420_v58, %v9996_v53  ;;  %v9400_v37 = vld [vmem:[#allocation6 + $0x2a8] ss:$16 sps:$4 sm:$0xff]   ;;  %v10040_v40 = vpack.c.bf16 %v521_v31, %v517_v22  ;;  %v490_v47 = vadd.f32 %v489_v45, %v10014_v17  ;;  %v491_v50 = vpop.f32.mrb[10].mxu1  ;;  %v9415_v22 = vld [vmem:[#allocation6 + $0x300] ss:$16 sps:$4 sm:$0xff]  }
 0x19a   :  { %1423 = vmatprep.subr.bf16.mxu0 %v9387_v43  ;;  %1569 = vmatprep.subr.bf16.mxu1 %v9390_v44  ;;  %v526_v7 = vmax.f32 %v419_v57, 0.0  ;;  %v9408_v43 = vld [vmem:[#allocation6 + $0x2cc] ss:$16 sps:$4 sm:$0xff]   ;;  %v488_v44 = vadd.f32 %v487_v41, %v10010_v14  ;;  %v9403_v57 = vld [vmem:[#allocation6 + $0x2c0] ss:$16 sps:$4 sm:$0xff]  }
 0x19b   :  { %v527_v10 = vmax.f32 %v421_v63, 0.0  ;;  %v9406_v58 = vld [vmem:[#allocation6 + $0x2c8] ss:$16 sps:$4 sm:$0xff]   ;;  %v9411_v63 = vld [vmem:[#allocation6 + $0x2e4] ss:$16 sps:$4 sm:$0xff]  }
 0x19c   :  { %v546_v13 = vpack.c.bf16 %v526_v7, %v522_v56  ;;  %v524_v55 = vmax.f32 %v488_v44, 0.0  ;;  %v492_v56 = vadd.f32 %v491_v50, %v10010_v14  ;;  %v9441_v41 = vld [vmem:[#allocation6 + $0x384] ss:$16 sps:$4 sm:$0xff]   ;;  %v9450_v45 = vld [vmem:[#allocation6 + $0x3ac] ss:$16 sps:$4 sm:$0xff]  }
 0x19d   :  { %1424 = vmatpush1.bf16.msra.mxu0 %v9385_v60  ;;  %1570 = vmatpush1.bf16.msra.mxu1 %v9388_v61  ;;  %v547_v21 = vpack.c.bf16 %v527_v10, %v523_v62  ;;  %v424_v0 = vpop.f32.mrb[12].mxu0  ;;  %v525_v61 = vmax.f32 %v490_v47, 0.0  ;;  %v9447_v44 = vld [vmem:[#allocation6 + $0x3a4] ss:$16 sps:$4 sm:$0xff]   ;;  %v9448_v47 = vld [vmem:[#allocation6 + $0x3a8] ss:$16 sps:$4 sm:$0xff]  }
 0x19e   :  { %1425 = vmatprep.subr.bf16.mxu0 %v9393_v5  ;;  %1571 = vmatprep.subr.bf16.mxu1 %v9396_v6  ;;  %v425_v26 = vadd.f32 %v424_v0, %v9993_v52  ;;  %v426_v27 = vpop.f32.mrb[13].mxu0  ;;  %v528_v5 = vmax.f32 %v492_v56, 0.0  ;;  %v9453_v50 = vld [vmem:[#allocation6 + $0x3c4] ss:$16 sps:$4 sm:$0xff]   ;;  %v9454_v56 = vld [vmem:[#allocation6 + $0x3c8] ss:$16 sps:$4 sm:$0xff]  }
 0x19f   :  { %v427_v29 = vadd.f32 %v426_v27, %v9996_v53  ;;  %v428_v30 = vpop.f32.mrb[14].mxu0  ;;  %1396 = vmatprep.mubr.bf16.mxu0 %v547_v21  ;;  %1542 = vmatprep.mubr.bf16.mxu1 %v547_v21  ;;  %v9426_v27 = vld [vmem:[#allocation6 + $0x32c] ss:$16 sps:$4 sm:$0xff]  }
 0x1a0   :  { %v530_v32 = vmax.f32 %v425_v26, 0.0  ;;  %v429_v33 = vadd.f32 %v428_v30, %v9993_v52  ;;  %v430_v34 = vpop.f32.mrb[15].mxu0  ;;  %1397 = vmatmul.mubr.bf16.gmra.mrb[24].mxu0 %v546_v13  ;;  %1543 = vmatmul.mubr.bf16.gmra.mrb[24].mxu1 %v546_v13  ;;  %v10046_v7 = vpack.c.bf16 %v528_v5, %v524_v55  ;;  %v9420_v13 = vld [vmem:[#allocation6 + $0x30c] ss:$16 sps:$4 sm:$0xff]   ;;  %v9423_v26 = vld [vmem:[#allocation6 + $0x324] ss:$16 sps:$4 sm:$0xff]  }
 0x1a1   :  { %1426 = vmatpush1.bf16.msra.mxu0 %v9391_v19  ;;  %1572 = vmatpush1.bf16.msra.mxu1 %v9394_v20  ;;  %v531_v38 = vmax.f32 %v427_v29, 0.0  ;;  %v431_v39 = vadd.f32 %v430_v34, %v9996_v53  ;;  %v493_v53 = vpop.f32.mrb[11].mxu1  ;;  %v9421_v30 = vld [vmem:[#allocation6 + $0x320] ss:$16 sps:$4 sm:$0xff]   ;;  %v9430_v34 = vld [vmem:[#allocation6 + $0x348] ss:$16 sps:$4 sm:$0xff]  }
 0x1a2   :  { %1427 = vmatprep.subr.bf16.mxu0 %v9399_v24  ;;  %1573 = vmatprep.subr.bf16.mxu1 %v9402_v25  ;;  %v534_v52 = vmax.f32 %v429_v33, 0.0  ;;  %v494_v62 = vadd.f32 %v493_v53, %v10014_v17  ;;  %v497_v11 = vpop.f32.mrb[12].mxu1  ;;  %v9432_v33 = vld [vmem:[#allocation6 + $0x34c] ss:$16 sps:$4 sm:$0xff]   ;;  %v9451_v55 = vld [vmem:[#allocation6 + $0x3c0] ss:$16 sps:$4 sm:$0xff]  }
 0x1a3   :  { %v535_v46 = vmax.f32 %v431_v39, 0.0  ;;  %v498_v15 = vadd.f32 %v497_v11, %v10010_v14  ;;  %v499_v16 = vpop.f32.mrb[13].mxu1  ;;  %v9436_v39 = vld [vmem:[#allocation6 + $0x368] ss:$16 sps:$4 sm:$0xff]   ;;  %v9459_v53 = vld [vmem:[#allocation6 + $0x3e4] ss:$16 sps:$4 sm:$0xff]  }
 0x1a4   :  { %v550_v54 = vpack.c.bf16 %v534_v52, %v530_v32  ;;  %v529_v6 = vmax.f32 %v494_v62, 0.0  ;;  %v500_v18 = vadd.f32 %v499_v16, %v10014_v17  ;;  %v501_v19 = vpop.f32.mrb[14].mxu1  ;;  %v9429_v32 = vld [vmem:[#allocation6 + $0x344] ss:$16 sps:$4 sm:$0xff]   ;;  %v9442_v52 = vld [vmem:[#allocation6 + $0x388] ss:$16 sps:$4 sm:$0xff]  }
 0x1a5   :  { %1428 = vmatpush1.bf16.msra.mxu0 %v9397_v36  ;;  %1574 = vmatpush1.bf16.msra.mxu1 %v9400_v37  ;;  %v551_v60 = vpack.c.bf16 %v535_v46, %v531_v38  ;;  %v532_v20 = vmax.f32 %v498_v15, 0.0  ;;  %v502_v21 = vadd.f32 %v501_v19, %v10010_v14  ;;  %v503_v0 = vpop.f32.mrb[15].mxu1  ;;  %v9424_v14 = vld [vmem:[#allocation6 + $0x328] ss:$16 sps:$4 sm:$0xff]   ;;  %v9435_v36 = vld [vmem:[#allocation6 + $0x364] ss:$16 sps:$4 sm:$0xff]  }
 0x1a6   :  { %1429 = vmatprep.subr.bf16.mxu0 %v9405_v42  ;;  %1575 = vmatprep.subr.bf16.mxu1 %v9408_v43  ;;  %v10048_v10 = vpack.c.bf16 %v529_v6, %v525_v61  ;;  %v533_v24 = vmax.f32 %v500_v18, 0.0  ;;  %v504_v25 = vadd.f32 %v503_v0, %v10014_v17  ;;  %v9427_v17 = vld [vmem:[#allocation6 + $0x340] ss:$16 sps:$4 sm:$0xff]   ;;  %v9438_v37 = vld [vmem:[#allocation6 + $0x36c] ss:$16 sps:$4 sm:$0xff]   ;;  %v1716_v19 = vld [vmem:[#allocation9 + $0x100] sm:$0xff] }
 0x1a7   :  { %1406 = vmatprep.mubr.bf16.mxu0 %v551_v60  ;;  %1552 = vmatprep.mubr.bf16.mxu1 %v551_v60  ;;  %v536_v28 = vmax.f32 %v502_v21, 0.0  ;;  %v9433_v38 = vld [vmem:[#allocation6 + $0x360] ss:$16 sps:$4 sm:$0xff]   ;;  %v9444_v42 = vld [vmem:[#allocation6 + $0x38c] ss:$16 sps:$4 sm:$0xff]   ;;  %v1692_v60 = vld [vmem:[#allocation9 + $0x40] sm:$0xff] }
 0x1a8   :  { %1407 = vmatmul.mubr.bf16.gmra.mrb[28].mxu0 %v550_v54  ;;  %1553 = vmatmul.mubr.bf16.gmra.mrb[28].mxu1 %v550_v54  ;;  %v9439_v43 = vld [vmem:[#allocation6 + $0x380] ss:$16 sps:$4 sm:$0xff]   ;;  %v9456_v54 = vld [vmem:[#allocation6 + $0x3cc] ss:$16 sps:$4 sm:$0xff]  }
 0x1a9   :  { %1430 = vmatpush1.bf16.msra.mxu0 %v9403_v57  ;;  %1576 = vmatpush1.bf16.msra.mxu1 %v9406_v58  ;;  %v10056_v29 = vpack.c.bf16 %v536_v28, %v532_v20  ;;  %v9445_v46 = vld [vmem:[#allocation6 + $0x3a0] ss:$16 sps:$4 sm:$0xff]   ;;  %v9462_v57 = vld [vmem:[#allocation6 + $0x3ec] ss:$16 sps:$4 sm:$0xff]   ;;  %v1684_v58 = vld [vmem:[#allocation9] sm:$0xff] }
 0x1aa   :  { %1431 = vmatprep.subr.bf16.mxu0 %v9411_v63  ;;  %1577 = vmatprep.subr.bf16.mxu1 %v9414_v3  ;;  %v1685_v61 = vld [vmem:[#allocation9 + $0x8] sm:$0xff]  ;;  %v9460_v3 = vld [vmem:[#allocation6 + $0x3e8] ss:$16 sps:$4 sm:$0xff]   ;;  %v7929_v5 = vcombine.high %v1684_v58, %v1692_v60 }
 0x1ab   :  { %1449 = vmatprep.mubr.bf16.mxu0 %v10028_v2  ;;  %1595 = vmatprep.mubr.bf16.mxu1 %v10028_v2  ;;  %v537_v2 = vmax.f32 %v504_v25, 0.0  ;;  %v1693_v62 = vld [vmem:[#allocation9 + $0x48] sm:$0xff]  ;;  %v1724_v20 = vld [vmem:[#allocation9 + $0x140] sm:$0xff] }
 0x1ac   :  { %v9457_v63 = vld [vmem:[#allocation6 + $0x3e0] ss:$16 sps:$4 sm:$0xff]   ;;  %v7931_v6 = vcombine.high %v1685_v61, %v1693_v62  ;;  %v7930_v15 = vcombine.low %v1685_v61, %v1693_v62 }
 0x1ad   :  { %1432 = vmatpush1.bf16.msra.mxu0 %v9409_v8  ;;  %1578 = vmatpush1.bf16.msra.mxu1 %v9412_v9  ;;  %v10058_v31 = vpack.c.bf16 %v537_v2, %v533_v24  ;;  %v1700_v8 = vld [vmem:[#allocation9 + $0x80] sm:$0xff]  ;;  %v1701_v11 = vld [vmem:[#allocation9 + $0x88] sm:$0xff]  ;;  %v7961_v24 = vcombine.high %v1716_v19, %v1724_v20 }
 0x1ae   :  { %1433 = vmatprep.subr.bf16.mxu0 %v9417_v12  ;;  %1579 = vmatprep.subr.bf16.mxu1 %v9420_v13  ;;  %v1708_v9 = vld [vmem:[#allocation9 + $0xc0] sm:$0xff]  ;;  %v1709_v12 = vld [vmem:[#allocation9 + $0xc8] sm:$0xff]  ;;  %v7928_v13 = vcombine.low %v1684_v58, %v1692_v60 }
 0x1af   :  { %v7945_v16 = vcombine.high %v1700_v8, %v1708_v9  ;;  %v7947_v18 = vcombine.high %v1701_v11, %v1709_v12  ;;  %v1717_v21 = vld [vmem:[#allocation9 + $0x108] sm:$0xff]  ;;  %v1796_v58 = vld [vmem:[#allocation9 + $0x380] sm:$0xff] }
 0x1b0   :  { %v1725_v0 = vld [vmem:[#allocation9 + $0x148] sm:$0xff]  ;;  %v1804_v60 = vld [vmem:[#allocation9 + $0x3c0] sm:$0xff] }
 0x1b1   :  { %1434 = vmatpush1.bf16.msra.mxu0 %v9415_v22  ;;  %1580 = vmatpush1.bf16.msra.mxu1 %v9418_v23  ;;  %v7944_v22 = vcombine.low %v1700_v8, %v1708_v9  ;;  %v7946_v23 = vcombine.low %v1701_v11, %v1709_v12  ;;  %v7963_v25 = vcombine.high %v1717_v21, %v1725_v0  ;;  %v1733_v28 = vld [vmem:[#allocation9 + $0x188] sm:$0xff] }
 0x1b2   :  { %1435 = vmatprep.subr.bf16.mxu0 %v9423_v26  ;;  %1581 = vmatprep.subr.bf16.mxu1 %v9426_v27  ;;  %v1732_v26 = vld [vmem:[#allocation9 + $0x180] sm:$0xff]  ;;  %v1741_v2 = vld [vmem:[#allocation9 + $0x1c8] sm:$0xff]  ;;  %v8040_v11 = vcombine.low %v1796_v58, %v1804_v60 }
 0x1b3   :  { %v1740_v27 = vld [vmem:[#allocation9 + $0x1c0] sm:$0xff]  ;;  %v1797_v61 = vld [vmem:[#allocation9 + $0x388] sm:$0xff] }
 0x1b4   :  { %v1805_v62 = vld [vmem:[#allocation9 + $0x3c8] sm:$0xff] }
 0x1b5   :  { %1436 = vmatpush1.bf16.msra.mxu0 %v9421_v30  ;;  %1582 = vmatpush1.bf16.msra.mxu1 %v9424_v14  ;;  %v7962_v30 = vcombine.low %v1717_v21, %v1725_v0  ;;  %v7977_v14 = vcombine.high %v1732_v26, %v1740_v27  ;;  %v1813_v8 = vld [vmem:[#allocation9 + $0x408] sm:$0xff]  ;;  %v8042_v12 = vcombine.low %v1797_v61, %v1805_v62 }
 0x1b6   :  { %1437 = vmatprep.subr.bf16.mxu0 %v9429_v32  ;;  %1583 = vmatprep.subr.bf16.mxu1 %v9432_v33  ;;  %v1748_v32 = vld [vmem:[#allocation9 + $0x200] sm:$0xff]  ;;  %v1821_v9 = vld [vmem:[#allocation9 + $0x448] sm:$0xff] }
 0x1b7   :  { %v1756_v33 = vld [vmem:[#allocation9 + $0x240] sm:$0xff]  ;;  %v8058_v0 = vcombine.low %v1813_v8, %v1821_v9 }
 0x1b9   :  { %1438 = vmatpush1.bf16.msra.mxu0 %v9427_v17  ;;  %1584 = vmatpush1.bf16.msra.mxu1 %v9430_v34  ;;  %v1749_v17 = vld [vmem:[#allocation9 + $0x208] sm:$0xff] }
 0x1ba   :  { %1439 = vmatprep.subr.bf16.mxu0 %v9435_v36  ;;  %1585 = vmatprep.subr.bf16.mxu1 %v9438_v37  ;;  %v1757_v34 = vld [vmem:[#allocation9 + $0x248] sm:$0xff]  ;;  %v7976_v36 = vcombine.low %v1732_v26, %v1740_v27  ;;  %v7978_v37 = vcombine.low %v1733_v28, %v1741_v2 }
 0x1bb   :  { %v1853_v26 = vld [vmem:[#allocation9 + $0x548] sm:$0xff] }
 0x1bd   :  { %1440 = vmatpush1.bf16.msra.mxu0 %v9433_v38  ;;  %1586 = vmatpush1.bf16.msra.mxu1 %v9436_v39  ;;  %v7993_v38 = vcombine.high %v1748_v32, %v1756_v33  ;;  %v7995_v39 = vcombine.high %v1749_v17, %v1757_v34 }
 0x1be   :  { %1441 = vmatprep.subr.bf16.mxu0 %v9441_v41  ;;  %1587 = vmatprep.subr.bf16.mxu1 %v9444_v42  ;;  %v1764_v41 = vld [vmem:[#allocation9 + $0x280] sm:$0xff] }
 0x1bf   :  { %v1772_v42 = vld [vmem:[#allocation9 + $0x2c0] sm:$0xff] }
 0x1c1   :  { %1442 = vmatpush1.bf16.msra.mxu0 %v9439_v43  ;;  %1588 = vmatpush1.bf16.msra.mxu1 %v9442_v52  ;;  %v1765_v43 = vld [vmem:[#allocation9 + $0x288] sm:$0xff] }
 0x1c2   :  { %1443 = vmatprep.subr.bf16.mxu0 %v9447_v44  ;;  %1589 = vmatprep.subr.bf16.mxu1 %v9450_v45  ;;  %v1773_v52 = vld [vmem:[#allocation9 + $0x2c8] sm:$0xff]  ;;  %v7994_v44 = vcombine.low %v1749_v17, %v1757_v34  ;;  %v8009_v45 = vcombine.high %v1764_v41, %v1772_v42 }
 0x1c5   :  { %1444 = vmatpush1.bf16.msra.mxu0 %v9445_v46  ;;  %1590 = vmatpush1.bf16.msra.mxu1 %v9448_v47  ;;  %v1780_v46 = vld [vmem:[#allocation9 + $0x300] sm:$0xff] }
 0x1c6   :  { %1445 = vmatprep.subr.bf16.mxu0 %v9453_v50  ;;  %1591 = vmatprep.subr.bf16.mxu1 %v9456_v54  ;;  %v1788_v47 = vld [vmem:[#allocation9 + $0x340] sm:$0xff]  ;;  %v1781_v50 = vld [vmem:[#allocation9 + $0x308] sm:$0xff] }
 0x1c7   :  { %v1789_v54 = vld [vmem:[#allocation9 + $0x348] sm:$0xff] }
 0x1c9   :  { %1446 = vmatpush1.bf16.msra.mxu0 %v9451_v55  ;;  %1592 = vmatpush1.bf16.msra.mxu1 %v9454_v56  ;;  %v8008_v55 = vcombine.low %v1764_v41, %v1772_v42  ;;  %v8010_v56 = vcombine.low %v1765_v43, %v1773_v52  ;;  %v1885_v41 = vld [vmem:[#allocation9 + $0x648] sm:$0xff] }
 0x1ca   :  { %1447 = vmatprep.subr.bf16.mxu0 %v9459_v53  ;;  %1593 = vmatprep.subr.bf16.mxu1 %v9462_v57  ;;  %v8025_v53 = vcombine.high %v1780_v46, %v1788_v47  ;;  %v8027_v57 = vcombine.high %v1781_v50, %v1789_v54 }
 0x1cd   :  { %1448 = vmatpush1.bf16.msra.mxu0 %v9457_v63  ;;  %1594 = vmatpush1.bf16.msra.mxu1 %v9460_v3  ;;  %v8026_v63 = vcombine.low %v1781_v50, %v1789_v54  ;;  %v8041_v3 = vcombine.high %v1796_v58, %v1804_v60  ;;  %v1916_v58 = vld [vmem:[#allocation9 + $0x740] sm:$0xff]  ;;  %v1909_v60 = vld [vmem:[#allocation9 + $0x708] sm:$0xff] }
 0x1ce   :  { %4840 = vmatprep.subr.bf16.mxu0 %v7929_v5  ;;  %4986 = vmatprep.subr.bf16.mxu1 %v7931_v6  ;;  %v1812_v5 = vld [vmem:[#allocation9 + $0x400] sm:$0xff] }
 0x1cf   :  { %v1820_v6 = vld [vmem:[#allocation9 + $0x440] sm:$0xff] }
 0x1d0   :  { %1450 = vmatmul.mubr.bf16.vlgmr.msra.gmra.mrb[16].mxu0 %v10025_v59  ;;  %1596 = vmatmul.mubr.bf16.vlgmr.msra.gmra.mrb[16].mxu1 %v10025_v59  ;;  %v7960_v59 = vcombine.low %v1716_v19, %v1724_v20  ;;  %v1829_v19 = vld [vmem:[#allocation9 + $0x488] sm:$0xff]  ;;  %v8056_v21 = vcombine.low %v1812_v5, %v1820_v6 }
 0x1d1   :  { %1459 = vmatprep.mubr.bf16.mxu0 %v10040_v40  ;;  %1605 = vmatprep.mubr.bf16.mxu1 %v10040_v40  ;;  %v7979_v40 = vcombine.high %v1733_v28, %v1741_v2  ;;  %v1837_v20 = vld [vmem:[#allocation9 + $0x4c8] sm:$0xff] }
 0x1d2   :  { %4841 = vmatpush1.bf16.msra.mxu0 %v7928_v13  ;;  %4987 = vmatpush1.bf16.msra.mxu1 %v7930_v15  ;;  %v8057_v13 = vcombine.high %v1812_v5, %v1820_v6  ;;  %v8059_v15 = vcombine.high %v1813_v8, %v1821_v9  ;;  %v8074_v28 = vcombine.low %v1829_v19, %v1837_v20  ;;  %v1932_v5 = vld [vmem:[#allocation9 + $0x7c0] sm:$0xff]  ;;  %v1925_v6 = vld [vmem:[#allocation9 + $0x788] sm:$0xff] }
 0x1d3   :  { %4842 = vmatprep.subr.bf16.mxu0 %v7945_v16  ;;  %4988 = vmatprep.subr.bf16.mxu1 %v7947_v18  ;;  %v1828_v16 = vld [vmem:[#allocation9 + $0x480] sm:$0xff]  ;;  %v1933_v9 = vld [vmem:[#allocation9 + $0x7c8] sm:$0xff] }
 0x1d4   :  { %v1836_v18 = vld [vmem:[#allocation9 + $0x4c0] sm:$0xff] }
 0x1d5   :  { %v8072_v27 = vcombine.low %v1828_v16, %v1836_v18 }
 0x1d6   :  { %4843 = vmatpush1.bf16.msra.mxu0 %v7944_v22  ;;  %4989 = vmatpush1.bf16.msra.mxu1 %v7946_v23  ;;  %v8075_v22 = vcombine.high %v1829_v19, %v1837_v20  ;;  %v1844_v23 = vld [vmem:[#allocation9 + $0x500] sm:$0xff]  ;;  %v10082_v20 = vld [vmem:[#allocation9 + $0x848] sm:$0xff] }
 0x1d7   :  { %4844 = vmatprep.subr.bf16.mxu0 %v7961_v24  ;;  %4990 = vmatprep.subr.bf16.mxu1 %v7963_v25  ;;  %v1852_v24 = vld [vmem:[#allocation9 + $0x540] sm:$0xff]  ;;  %v1845_v25 = vld [vmem:[#allocation9 + $0x508] sm:$0xff] }
 0x1d8   :  { %1460 = vmatmul.mubr.bf16.gmra.mrb[20].mxu0 %v10037_v35  ;;  %1606 = vmatmul.mubr.bf16.gmra.mrb[20].mxu1 %v10037_v35  ;;  %v7992_v35 = vcombine.low %v1748_v32, %v1756_v33  ;;  %v8089_v2 = vcombine.high %v1844_v23, %v1852_v24  ;;  %v1869_v32 = vld [vmem:[#allocation9 + $0x5c8] sm:$0xff]  ;;  %v8088_v33 = vcombine.low %v1844_v23, %v1852_v24 }
 0x1d9   :  { %1469 = vmatprep.mubr.bf16.mxu0 %v10048_v10  ;;  %1615 = vmatprep.mubr.bf16.mxu1 %v10048_v10  ;;  %v8011_v10 = vcombine.high %v1765_v43, %v1773_v52  ;;  %v8090_v17 = vcombine.low %v1845_v25, %v1853_v26 }
 0x1da   :  { %4845 = vmatpush1.bf16.msra.mxu0 %v7960_v59  ;;  %4991 = vmatpush1.bf16.msra.mxu1 %v7962_v30  ;;  %v8091_v59 = vcombine.high %v1845_v25, %v1853_v26  ;;  %v1860_v30 = vld [vmem:[#allocation9 + $0x580] sm:$0xff] }
 0x1db   :  { %4846 = vmatprep.subr.bf16.mxu0 %v7977_v14  ;;  %4992 = vmatprep.subr.bf16.mxu1 %v7979_v40  ;;  %v1868_v14 = vld [vmem:[#allocation9 + $0x5c0] sm:$0xff]  ;;  %v1861_v40 = vld [vmem:[#allocation9 + $0x588] sm:$0xff] }
 0x1dc   :  { %v8105_v34 = vcombine.high %v1860_v30, %v1868_v14  ;;  %v8104_v42 = vcombine.low %v1860_v30, %v1868_v14  ;;  %v8106_v43 = vcombine.low %v1861_v40, %v1869_v32 }
 0x1de   :  { %4847 = vmatpush1.bf16.msra.mxu0 %v7976_v36  ;;  %4993 = vmatpush1.bf16.msra.mxu1 %v7978_v37  ;;  %v8107_v36 = vcombine.high %v1861_v40, %v1869_v32  ;;  %v1876_v37 = vld [vmem:[#allocation9 + $0x600] sm:$0xff] }
 0x1df   :  { %4848 = vmatprep.subr.bf16.mxu0 %v7993_v38  ;;  %4994 = vmatprep.subr.bf16.mxu1 %v7995_v39  ;;  %v1884_v38 = vld [vmem:[#allocation9 + $0x640] sm:$0xff]  ;;  %v1877_v39 = vld [vmem:[#allocation9 + $0x608] sm:$0xff] }
 0x1e0   :  { %1470 = vmatmul.mubr.bf16.gmra.mrb[24].mxu0 %v10046_v7  ;;  %1616 = vmatmul.mubr.bf16.gmra.mrb[24].mxu1 %v10046_v7  ;;  %v8024_v7 = vcombine.low %v1780_v46, %v1788_v47  ;;  %v8121_v52 = vcombine.high %v1876_v37, %v1884_v38  ;;  %v1901_v46 = vld [vmem:[#allocation9 + $0x6c8] sm:$0xff]  ;;  %v8120_v47 = vcombine.low %v1876_v37, %v1884_v38 }
 0x1e1   :  { %1479 = vmatprep.mubr.bf16.mxu0 %v10058_v31  ;;  %1625 = vmatprep.mubr.bf16.mxu1 %v10058_v31  ;;  %v8043_v31 = vcombine.high %v1797_v61, %v1805_v62  ;;  %v8122_v50 = vcombine.low %v1877_v39, %v1885_v41  ;;  %v1917_v62 = vld [vmem:[#allocation9 + $0x748] sm:$0xff] }
 0x1e2   :  { %4849 = vmatpush1.bf16.msra.mxu0 %v7992_v35  ;;  %4995 = vmatpush1.bf16.msra.mxu1 %v7994_v44  ;;  %v8123_v35 = vcombine.high %v1877_v39, %v1885_v41  ;;  %v1892_v44 = vld [vmem:[#allocation9 + $0x680] sm:$0xff] }
 0x1e3   :  { %4850 = vmatprep.subr.bf16.mxu0 %v8009_v45  ;;  %4996 = vmatprep.subr.bf16.mxu1 %v8011_v10  ;;  %v1900_v45 = vld [vmem:[#allocation9 + $0x6c0] sm:$0xff]  ;;  %v1893_v10 = vld [vmem:[#allocation9 + $0x688] sm:$0xff] }
 0x1e4   :  { %v8137_v54 = vcombine.high %v1892_v44, %v1900_v45 }
 0x1e6   :  { %4851 = vmatpush1.bf16.msra.mxu0 %v8008_v55  ;;  %4997 = vmatpush1.bf16.msra.mxu1 %v8010_v56  ;;  %v8139_v55 = vcombine.high %v1893_v10, %v1901_v46  ;;  %v8136_v56 = vcombine.low %v1892_v44, %v1900_v45 }
 0x1e7   :  { %4852 = vmatprep.subr.bf16.mxu0 %v8025_v53  ;;  %4998 = vmatprep.subr.bf16.mxu1 %v8027_v57  ;;  %v8138_v53 = vcombine.low %v1893_v10, %v1901_v46  ;;  %v1908_v57 = vld [vmem:[#allocation9 + $0x700] sm:$0xff]  ;;  %v10114_v10 = vld [vmem:[#allocation9 + $0x888] sm:$0xff] }
 0x1e8   :  { %1480 = vmatmul.mubr.bf16.gmra.mrb[28].mxu0 %v10056_v29  ;;  %1626 = vmatmul.mubr.bf16.gmra.mrb[28].mxu1 %v10056_v29  ;;  %v8073_v29 = vcombine.high %v1828_v16, %v1836_v18  ;;  %v8153_v61 = vcombine.high %v1908_v57, %v1916_v58  ;;  %v10076_v16 = vld [vmem:[#allocation9 + $0x840] sm:$0xff]  ;;  %v10078_v18 = vld [vmem:[#allocation9 + $0x808] sm:$0xff] }
 0x1e9   :  { %v10116_v46 = vld [vmem:[#allocation9 + $0x8c8] sm:$0xff] }
 0x1ea   :  { %4853 = vmatpush1.bf16.msra.mxu0 %v8024_v7  ;;  %4999 = vmatpush1.bf16.msra.mxu1 %v8026_v63  ;;  %v8152_v7 = vcombine.low %v1908_v57, %v1916_v58  ;;  %v8154_v63 = vcombine.low %v1909_v60, %v1917_v62 }
 0x1eb   :  { %4854 = vmatprep.subr.bf16.mxu0 %v8041_v3  ;;  %5000 = vmatprep.subr.bf16.mxu1 %v8043_v31  ;;  %v8155_v3 = vcombine.high %v1909_v60, %v1917_v62  ;;  %v1924_v31 = vld [vmem:[#allocation9 + $0x780] sm:$0xff] }
 0x1ec   :  { %v8169_v8 = vcombine.high %v1924_v31, %v1932_v5 }
 0x1ee   :  { %4855 = vmatpush1.bf16.msra.mxu0 %v8040_v11  ;;  %5001 = vmatpush1.bf16.msra.mxu1 %v8042_v12  ;;  %v8168_v11 = vcombine.low %v1924_v31, %v1932_v5  ;;  %v8170_v12 = vcombine.low %v1925_v6, %v1933_v9  ;;  %v8202_v31 = vcombine.low %v10114_v10, %v10116_v46  ;;  %v10136_v5 = vld [vmem:[#allocation9 + $0x908] sm:$0xff] }
 0x1ef   :  { %4856 = vmatprep.subr.bf16.mxu0 %v8057_v13  ;;  %5002 = vmatprep.subr.bf16.mxu1 %v8059_v15  ;;  %v8171_v13 = vcombine.high %v1925_v6, %v1933_v9  ;;  %v10074_v15 = vld [vmem:[#allocation9 + $0x800] sm:$0xff]  ;;  %v10138_v6 = vld [vmem:[#allocation9 + $0x948] sm:$0xff] }
 0x1f0   :  { %v8185_v19 = vcombine.high %v10074_v15, %v10076_v16 }
 0x1f2   :  { %4857 = vmatpush1.bf16.msra.mxu0 %v8056_v21  ;;  %5003 = vmatpush1.bf16.msra.mxu1 %v8058_v0  ;;  %v8184_v21 = vcombine.low %v10074_v15, %v10076_v16  ;;  %v8186_v0 = vcombine.low %v10078_v18, %v10082_v20  ;;  %v10174_v15 = vld [vmem:[#allocation9 + $0x9c8] sm:$0xff] }
 0x1f3   :  { %4858 = vmatprep.subr.bf16.mxu0 %v8073_v29  ;;  %5004 = vmatprep.subr.bf16.mxu1 %v8075_v22  ;;  %v8187_v29 = vcombine.high %v10078_v18, %v10082_v20  ;;  %v682_v22 = vld [vmem:[#allocation7] sm:$0xf] }
 0x1f4   :  { %v10091_v23 = vrot.slane %v682_v22, %v9987_v49  ;;  %v10094_v24 = vrot.slane %v682_v22, %v10003_v1  ;;  %v10097_v25 = vrot.slane %v682_v22, %v9990_v51  ;;  %v10100_v26 = vrot.slane %v682_v22, %v10006_v4 }
 0x1f6   :  { %4859 = vmatpush1.bf16.msra.mxu0 %v8072_v27  ;;  %5005 = vmatpush1.bf16.msra.mxu1 %v8074_v28 }
 0x1f7   :  { %4860 = vmatprep.subr.bf16.mxu0 %v8089_v2  ;;  %5006 = vmatprep.subr.bf16.mxu1 %v8091_v59 }
 0x1fa   :  { %4861 = vmatpush1.bf16.msra.mxu0 %v8088_v33  ;;  %5007 = vmatpush1.bf16.msra.mxu1 %v8090_v17 }
 0x1fb   :  { %4862 = vmatprep.subr.bf16.mxu0 %v8105_v34  ;;  %5008 = vmatprep.subr.bf16.mxu1 %v8107_v36 }
 0x1fe   :  { %4863 = vmatpush1.bf16.msra.mxu0 %v8104_v42  ;;  %5009 = vmatpush1.bf16.msra.mxu1 %v8106_v43  ;;  %v10110_v42 = vld [vmem:[#allocation9 + $0x880] sm:$0xff] }
 0x1ff   :  { %4864 = vmatprep.subr.bf16.mxu0 %v8121_v52  ;;  %5010 = vmatprep.subr.bf16.mxu1 %v8123_v35  ;;  %v10112_v43 = vld [vmem:[#allocation9 + $0x8c0] sm:$0xff] }
 0x200   :  { %v8201_v60 = vcombine.high %v10110_v42, %v10112_v43 }
 0x202   :  { %4865 = vmatpush1.bf16.msra.mxu0 %v8120_v47  ;;  %5011 = vmatpush1.bf16.msra.mxu1 %v8122_v50 }
 0x203   :  { %4866 = vmatprep.subr.bf16.mxu0 %v8137_v54  ;;  %5012 = vmatprep.subr.bf16.mxu1 %v8139_v55 }
 0x206   :  { %4867 = vmatpush1.bf16.msra.mxu0 %v8136_v56  ;;  %5013 = vmatpush1.bf16.msra.mxu1 %v8138_v53  ;;  %v10118_v56 = vld [vmem:[#allocation9 + $0x900] sm:$0xff] }
 0x207   :  { %4868 = vmatprep.subr.bf16.mxu0 %v8153_v61  ;;  %5014 = vmatprep.subr.bf16.mxu1 %v8155_v3  ;;  %v10120_v53 = vld [vmem:[#allocation9 + $0x940] sm:$0xff]  ;;  %v8200_v3 = vcombine.low %v10110_v42, %v10112_v43  ;;  %v10172_v43 = vld [vmem:[#allocation9 + $0x988] sm:$0xff] }
 0x20a   :  { %4869 = vmatpush1.bf16.msra.mxu0 %v8152_v7  ;;  %5015 = vmatpush1.bf16.msra.mxu1 %v8154_v63 }
 0x20b   :  { %4870 = vmatprep.subr.bf16.mxu0 %v8169_v8  ;;  %5016 = vmatprep.subr.bf16.mxu1 %v8171_v13  ;;  %v8203_v13 = vcombine.high %v10114_v10, %v10116_v46  ;;  %v10186_v10 = vld [vmem:[#allocation9 + $0xa40] sm:$0xff] }
 0x20e   :  { %4871 = vmatpush1.bf16.msra.mxu0 %v8168_v11  ;;  %5017 = vmatpush1.bf16.msra.mxu1 %v8170_v12 }
 0x20f   :  { %4913 = vmatprep.subr.bf16.mxu0 %v8185_v19  ;;  %5059 = vmatprep.subr.bf16.mxu1 %v8187_v29  ;;  %v8217_v19 = vcombine.high %v10118_v56, %v10120_v53 }
 0x2a3   :  { %v1451_v27 = vpop.f32.mrb[16].mxu0  ;;  %v1597_v28 = vpop.f32.mrb[16].mxu1 }
 0x2a4   :  { %v8889_v2 = vadd.f32 %v1451_v27, %v10091_v23  ;;  %v8905_v59 = vadd.f32 %v1597_v28, %v10094_v24  ;;  %v1453_v30 = vpop.f32.mrb[17].mxu0  ;;  %v1599_v14 = vpop.f32.mrb[17].mxu1 }
 0x2a5   :  { %v8890_v40 = vadd.f32 %v1453_v30, %v10097_v25  ;;  %v8906_v32 = vadd.f32 %v1599_v14, %v10100_v26  ;;  %v1455_v33 = vpop.f32.mrb[18].mxu0  ;;  %v1601_v17 = vpop.f32.mrb[18].mxu1 }
 0x2a6   :  { %v8891_v34 = vadd.f32 %v1455_v33, %v10091_v23  ;;  %v8907_v36 = vadd.f32 %v1601_v17, %v10094_v24  ;;  %v1457_v37 = vpop.f32.mrb[19].mxu0  ;;  %v1603_v38 = vpop.f32.mrb[19].mxu1  ;;  %v1636_v52 = vmax.f32 %v8889_v2, 0.0  ;;  %v1638_v35 = vmax.f32 %v8905_v59, 0.0 }
 0x2a7   :  { %v8892_v39 = vadd.f32 %v1457_v37, %v10097_v25  ;;  %v8908_v41 = vadd.f32 %v1603_v38, %v10100_v26  ;;  %v1637_v47 = vmax.f32 %v8890_v40, 0.0  ;;  %v1639_v50 = vmax.f32 %v8906_v32, 0.0  ;;  %v10170_v37 = vld [vmem:[#allocation9 + $0x9c0] sm:$0xff] }
 0x2a8   :  { %v1640_v44 = vmax.f32 %v8891_v34, 0.0  ;;  %v1642_v45 = vmax.f32 %v8907_v36, 0.0  ;;  %v8216_v2 = vcombine.low %v10118_v56, %v10120_v53  ;;  %v8218_v32 = vcombine.low %v10136_v5, %v10138_v6  ;;  %v10168_v36 = vld [vmem:[#allocation9 + $0x980] sm:$0xff]  ;;  %v10225_v56 = vld [vmem:[#allocation9 + $0xa88] sm:$0xff] }
 0x2a9   :  { %v1641_v54 = vmax.f32 %v8892_v39, 0.0  ;;  %v1643_v55 = vmax.f32 %v8908_v41, 0.0  ;;  %v8219_v34 = vcombine.high %v10136_v5, %v10138_v6  ;;  %v8235_v6 = vcombine.high %v10172_v43, %v10174_v15  ;;  %v2029_v53 = vld [vmem:[#allocation9 + $0xac8] sm:$0xff] }
 0x2aa   :  { %v10122_v57 = vpack.c.bf16 %v1640_v44, %v1636_v52  ;;  %v10124_v58 = vpack.c.bf16 %v1642_v45, %v1638_v35  ;;  %v8232_v35 = vcombine.low %v10168_v36, %v10170_v37  ;;  %v8233_v44 = vcombine.high %v10168_v36, %v10170_v37  ;;  %v10184_v45 = vld [vmem:[#allocation9 + $0xa00] sm:$0xff] }
 0x2ab   :  { %v10128_v61 = vpack.c.bf16 %v1641_v54, %v1637_v47  ;;  %v10130_v62 = vpack.c.bf16 %v1643_v55, %v1639_v50  ;;  %v1461_v7 = vpop.f32.mrb[20].mxu0  ;;  %v1607_v63 = vpop.f32.mrb[20].mxu1  ;;  %v8234_v55 = vcombine.low %v10172_v43, %v10174_v15 }
 0x2ac   :  { %v8893_v8 = vadd.f32 %v1461_v7, %v10091_v23  ;;  %v8909_v9 = vadd.f32 %v1607_v63, %v10094_v24  ;;  %v1463_v11 = vpop.f32.mrb[21].mxu0  ;;  %v1609_v12 = vpop.f32.mrb[21].mxu1 }
 0x2ad   :  { %v8894_v29 = vadd.f32 %v1463_v11, %v10097_v25  ;;  %v8910_v22 = vadd.f32 %v1609_v12, %v10100_v26  ;;  %v1465_v27 = vpop.f32.mrb[22].mxu0  ;;  %v1611_v28 = vpop.f32.mrb[22].mxu1  ;;  %4872 = vmatprep.mubr.bf16.mxu0 %v10128_v61  ;;  %5018 = vmatprep.mubr.bf16.mxu1 %v10128_v61 }
 0x2ae   :  { %v8895_v59 = vadd.f32 %v1465_v27, %v10091_v23  ;;  %v8911_v30 = vadd.f32 %v1611_v28, %v10094_v24  ;;  %v1467_v14 = vpop.f32.mrb[23].mxu0  ;;  %v1613_v40 = vpop.f32.mrb[23].mxu1  ;;  %4873 = vmatmul.mubr.bf16.vlgmr.msra.gmra.mrb[32].mxu0 %v10122_v57  ;;  %5019 = vmatmul.mubr.bf16.vlgmr.msra.gmra.mrb[32].mxu1 %v10122_v57  ;;  %v1644_v38 = vmax.f32 %v8893_v8, 0.0  ;;  %v1646_v39 = vmax.f32 %v8909_v9, 0.0  ;;  %v10198_v8 = vld [vmem:[#allocation9 + $0xa08] sm:$0xff] }
 0x2af   :  { %v8896_v33 = vadd.f32 %v1467_v14, %v10097_v25  ;;  %v8912_v17 = vadd.f32 %v1613_v40, %v10100_v26  ;;  %4914 = vmatpush1.bf16.msra.mxu0 %v8184_v21  ;;  %5060 = vmatpush1.bf16.msra.mxu1 %v8186_v0  ;;  %v1645_v16 = vmax.f32 %v8894_v29, 0.0  ;;  %v1647_v18 = vmax.f32 %v8910_v22, 0.0  ;;  %v10221_v40 = vld [vmem:[#allocation9 + $0xa80] sm:$0xff] }
 0x2b0   :  { %v1648_v41 = vmax.f32 %v8895_v59, 0.0  ;;  %v1650_v42 = vmax.f32 %v8911_v30, 0.0  ;;  %4915 = vmatprep.subr.bf16.mxu0 %v8201_v60  ;;  %5061 = vmatprep.subr.bf16.mxu1 %v8203_v13  ;;  %v8249_v13 = vcombine.high %v10184_v45, %v10186_v10  ;;  %v8248_v28 = vcombine.low %v10184_v45, %v10186_v10  ;;  %v10241_v45 = vld [vmem:[#allocation9 + $0xb00] sm:$0xff] }
 0x2b1   :  { %v1649_v20 = vmax.f32 %v8896_v33, 0.0  ;;  %v1651_v21 = vmax.f32 %v8912_v17, 0.0  ;;  %v10223_v33 = vld [vmem:[#allocation9 + $0xac0] sm:$0xff] }
 0x2b2   :  { %v10176_v0 = vpack.c.bf16 %v1648_v41, %v1644_v38  ;;  %v10178_v52 = vpack.c.bf16 %v1650_v42, %v1646_v39  ;;  %v8265_v15 = vcombine.high %v10221_v40, %v10223_v33  ;;  %v10243_v10 = vld [vmem:[#allocation9 + $0xb40] sm:$0xff] }
 0x2b3   :  { %v10188_v46 = vpack.c.bf16 %v1649_v20, %v1645_v16  ;;  %v10190_v47 = vpack.c.bf16 %v1651_v21, %v1647_v18  ;;  %4916 = vmatpush1.bf16.msra.mxu0 %v8200_v3  ;;  %5062 = vmatpush1.bf16.msra.mxu1 %v8202_v31  ;;  %v1471_v50 = vpop.f32.mrb[24].mxu0  ;;  %v1617_v54 = vpop.f32.mrb[24].mxu1  ;;  %v10200_v3 = vld [vmem:[#allocation9 + $0xa48] sm:$0xff] }
 0x2b4   :  { %v8897_v60 = vadd.f32 %v1471_v50, %v10091_v23  ;;  %v8913_v7 = vadd.f32 %v1617_v54, %v10094_v24  ;;  %v1473_v63 = vpop.f32.mrb[25].mxu0  ;;  %v1619_v5 = vpop.f32.mrb[25].mxu1  ;;  %4917 = vmatprep.subr.bf16.mxu0 %v8217_v19  ;;  %5063 = vmatprep.subr.bf16.mxu1 %v8219_v34  ;;  %v8251_v14 = vcombine.high %v10198_v8, %v10200_v3 }
 0x2b5   :  { %v8898_v31 = vadd.f32 %v1473_v63, %v10097_v25  ;;  %v8914_v9 = vadd.f32 %v1619_v5, %v10100_v26  ;;  %v1475_v11 = vpop.f32.mrb[26].mxu0  ;;  %v1621_v12 = vpop.f32.mrb[26].mxu1  ;;  %4882 = vmatprep.mubr.bf16.mxu0 %v10188_v46  ;;  %5028 = vmatprep.mubr.bf16.mxu1 %v10188_v46  ;;  %v8250_v43 = vcombine.low %v10198_v8, %v10200_v3  ;;  %v2045_v63 = vld [vmem:[#allocation9 + $0xb48] sm:$0xff] }
 0x2b6   :  { %v8899_v19 = vadd.f32 %v1475_v11, %v10091_v23  ;;  %v8915_v29 = vadd.f32 %v1621_v12, %v10094_v24  ;;  %v1477_v22 = vpop.f32.mrb[27].mxu0  ;;  %v1623_v27 = vpop.f32.mrb[27].mxu1  ;;  %4883 = vmatmul.mubr.bf16.gmra.mrb[36].mxu0 %v10176_v0  ;;  %5029 = vmatmul.mubr.bf16.gmra.mrb[36].mxu1 %v10176_v0  ;;  %v1652_v17 = vmax.f32 %v8897_v60, 0.0  ;;  %v1654_v34 = vmax.f32 %v8913_v7, 0.0 }
 0x2b7   :  { %v8900_v59 = vadd.f32 %v1477_v22, %v10097_v25  ;;  %v8916_v30 = vadd.f32 %v1623_v27, %v10100_v26  ;;  %4918 = vmatpush1.bf16.msra.mxu0 %v8216_v2  ;;  %5064 = vmatpush1.bf16.msra.mxu1 %v8218_v32  ;;  %v1653_v38 = vmax.f32 %v8898_v31, 0.0  ;;  %v1655_v39 = vmax.f32 %v8914_v9, 0.0 }
 0x2b8   :  { %v1656_v36 = vmax.f32 %v8899_v19, 0.0  ;;  %v1658_v37 = vmax.f32 %v8915_v29, 0.0  ;;  %4919 = vmatprep.subr.bf16.mxu0 %v8233_v44  ;;  %5065 = vmatprep.subr.bf16.mxu1 %v8235_v6  ;;  %v8264_v44 = vcombine.low %v10221_v40, %v10223_v33  ;;  %v8266_v31 = vcombine.low %v10225_v56, %v2029_v53 }
 0x2b9   :  { %v1657_v41 = vmax.f32 %v8900_v59, 0.0  ;;  %v1659_v42 = vmax.f32 %v8916_v30, 0.0  ;;  %v8281_v19 = vcombine.high %v10241_v45, %v10243_v10 }
 0x2ba   :  { %v10227_v2 = vpack.c.bf16 %v1656_v36, %v1652_v17  ;;  %v10229_v32 = vpack.c.bf16 %v1658_v37, %v1654_v34  ;;  %v2052_v34 = vld [vmem:[#allocation9 + $0xb80] sm:$0xff] }
 0x2bb   :  { %v10235_v16 = vpack.c.bf16 %v1657_v41, %v1653_v38  ;;  %v10237_v18 = vpack.c.bf16 %v1659_v42, %v1655_v39  ;;  %4920 = vmatpush1.bf16.msra.mxu0 %v8232_v35  ;;  %5066 = vmatpush1.bf16.msra.mxu1 %v8234_v55  ;;  %v1481_v20 = vpop.f32.mrb[28].mxu0  ;;  %v1627_v21 = vpop.f32.mrb[28].mxu1  ;;  %v8267_v35 = vcombine.high %v10225_v56, %v2029_v53  ;;  %v2037_v55 = vld [vmem:[#allocation9 + $0xb08] sm:$0xff]  ;;  %v2068_v56 = vld [vmem:[#allocation9 + $0xc00] sm:$0xff] }
 0x2bc   :  { %v8901_v50 = vadd.f32 %v1481_v20, %v10091_v23  ;;  %v8917_v54 = vadd.f32 %v1627_v21, %v10094_v24  ;;  %v1483_v60 = vpop.f32.mrb[29].mxu0  ;;  %v1629_v7 = vpop.f32.mrb[29].mxu1  ;;  %4921 = vmatprep.subr.bf16.mxu0 %v8249_v13  ;;  %5067 = vmatprep.subr.bf16.mxu1 %v8251_v14  ;;  %v8283_v27 = vcombine.high %v2037_v55, %v2045_v63  ;;  %v2061_v38 = vld [vmem:[#allocation9 + $0xbc8] sm:$0xff] }
 0x2bd   :  { %v8902_v5 = vadd.f32 %v1483_v60, %v10097_v25  ;;  %v8918_v6 = vadd.f32 %v1629_v7, %v10100_v26  ;;  %v1485_v8 = vpop.f32.mrb[30].mxu0  ;;  %v1631_v3 = vpop.f32.mrb[30].mxu1  ;;  %4892 = vmatprep.mubr.bf16.mxu0 %v10235_v16  ;;  %5038 = vmatprep.mubr.bf16.mxu1 %v10235_v16  ;;  %v8282_v42 = vcombine.low %v2037_v55, %v2045_v63  ;;  %v2069_v20 = vld [vmem:[#allocation9 + $0xc08] sm:$0xff]  ;;  %v2092_v60 = vld [vmem:[#allocation9 + $0xcc0] sm:$0xff] }
 0x2be   :  { %v8903_v9 = vadd.f32 %v1485_v8, %v10091_v23  ;;  %v8919_v11 = vadd.f32 %v1631_v3, %v10094_v24  ;;  %v1487_v12 = vpop.f32.mrb[31].mxu0  ;;  %v1633_v13 = vpop.f32.mrb[31].mxu1  ;;  %4893 = vmatmul.mubr.bf16.gmra.mrb[40].mxu0 %v10227_v2  ;;  %5039 = vmatmul.mubr.bf16.gmra.mrb[40].mxu1 %v10227_v2  ;;  %v1660_v59 = vmax.f32 %v8901_v50, 0.0  ;;  %v1662_v23 = vmax.f32 %v8917_v54, 0.0  ;;  %v2077_v21 = vld [vmem:[#allocation9 + $0xc48] sm:$0xff]  ;;  %v2084_v54 = vld [vmem:[#allocation9 + $0xc80] sm:$0xff] }
 0x2bf   :  { %v8904_v29 = vadd.f32 %v1487_v12, %v10097_v25  ;;  %v8920_v22 = vadd.f32 %v1633_v13, %v10100_v26  ;;  %4922 = vmatpush1.bf16.msra.mxu0 %v8248_v28  ;;  %5068 = vmatpush1.bf16.msra.mxu1 %v8250_v43  ;;  %v1661_v14 = vmax.f32 %v8902_v5, 0.0  ;;  %v1663_v40 = vmax.f32 %v8918_v6, 0.0  ;;  %v2060_v26 = vld [vmem:[#allocation9 + $0xbc0] sm:$0xff]  ;;  %v2053_v28 = vld [vmem:[#allocation9 + $0xb88] sm:$0xff] }
 0x2c0   :  { %v1664_v30 = vmax.f32 %v8903_v9, 0.0  ;;  %v1666_v24 = vmax.f32 %v8919_v11, 0.0  ;;  %4923 = vmatprep.subr.bf16.mxu0 %v8265_v15  ;;  %5069 = vmatprep.subr.bf16.mxu1 %v8267_v35  ;;  %v8280_v25 = vcombine.low %v10241_v45, %v10243_v10  ;;  %v8297_v53 = vcombine.high %v2052_v34, %v2060_v26  ;;  %v2076_v15 = vld [vmem:[#allocation9 + $0xc40] sm:$0xff]  ;;  %v2085_v7 = vld [vmem:[#allocation9 + $0xc88] sm:$0xff] }
 0x2c1   :  { %v1665_v33 = vmax.f32 %v8904_v29, 0.0  ;;  %v1667_v17 = vmax.f32 %v8920_v22, 0.0  ;;  %v8299_v43 = vcombine.high %v2053_v28, %v2061_v38  ;;  %v8298_v45 = vcombine.low %v2053_v28, %v2061_v38  ;;  %v2093_v35 = vld [vmem:[#allocation9 + $0xcc8] sm:$0xff]  ;;  %v2100_v8 = vld [vmem:[#allocation9 + $0xd00] sm:$0xff] }
 0x2c2   :  { %v10261_v36 = vpack.c.bf16 %v1664_v30, %v1660_v59  ;;  %v10263_v37 = vpack.c.bf16 %v1666_v24, %v1662_v23  ;;  %v8313_v10 = vcombine.high %v2068_v56, %v2076_v15  ;;  %v8315_v50 = vcombine.high %v2069_v20, %v2077_v21  ;;  %v2108_v3 = vld [vmem:[#allocation9 + $0xd40] sm:$0xff]  ;;  %v2109_v9 = vld [vmem:[#allocation9 + $0xd48] sm:$0xff] }
 0x2c3   :  { %v10267_v39 = vpack.c.bf16 %v1665_v33, %v1661_v14  ;;  %v10269_v41 = vpack.c.bf16 %v1667_v17, %v1663_v40  ;;  %4924 = vmatpush1.bf16.msra.mxu0 %v8264_v44  ;;  %5070 = vmatpush1.bf16.msra.mxu1 %v8266_v31  ;;  %v8296_v44 = vcombine.low %v2052_v34, %v2060_v26  ;;  %v2101_v31 = vld [vmem:[#allocation9 + $0xd08] sm:$0xff]  ;;  %v2116_v29 = vld [vmem:[#allocation9 + $0xd80] sm:$0xff] }
 0x2c4   :  { %4925 = vmatprep.subr.bf16.mxu0 %v8281_v19  ;;  %5071 = vmatprep.subr.bf16.mxu1 %v8283_v27  ;;  %v8312_v55 = vcombine.low %v2068_v56, %v2076_v15  ;;  %v8314_v63 = vcombine.low %v2069_v20, %v2077_v21  ;;  %v8329_v5 = vcombine.high %v2084_v54, %v2092_v60  ;;  %v2124_v22 = vld [vmem:[#allocation9 + $0xdc0] sm:$0xff]  ;;  %v2117_v27 = vld [vmem:[#allocation9 + $0xd88] sm:$0xff] }
 0x2c5   :  { %4902 = vmatprep.mubr.bf16.mxu0 %v10267_v39  ;;  %5048 = vmatprep.mubr.bf16.mxu1 %v10267_v39  ;;  %v8331_v6 = vcombine.high %v2085_v7, %v2093_v35  ;;  %v8328_v11 = vcombine.low %v2084_v54, %v2092_v60  ;;  %v8330_v12 = vcombine.low %v2085_v7, %v2093_v35  ;;  %v2125_v59 = vld [vmem:[#allocation9 + $0xdc8] sm:$0xff]  ;;  %v2132_v40 = vld [vmem:[#allocation9 + $0xe00] sm:$0xff] }
 0x2c6   :  { %4903 = vmatmul.mubr.bf16.gmra.mrb[44].mxu0 %v10261_v36  ;;  %5049 = vmatmul.mubr.bf16.gmra.mrb[44].mxu1 %v10261_v36  ;;  %v8345_v13 = vcombine.high %v2100_v8, %v2108_v3  ;;  %v8347_v19 = vcombine.high %v2101_v31, %v2109_v9  ;;  %v8344_v23 = vcombine.low %v2100_v8, %v2108_v3  ;;  %v2140_v33 = vld [vmem:[#allocation9 + $0xe40] sm:$0xff]  ;;  %v2133_v17 = vld [vmem:[#allocation9 + $0xe08] sm:$0xff] }
 0x2c7   :  { %4926 = vmatpush1.bf16.msra.mxu0 %v8280_v25  ;;  %5072 = vmatpush1.bf16.msra.mxu1 %v8282_v42  ;;  %v8346_v30 = vcombine.low %v2101_v31, %v2109_v9  ;;  %v8361_v24 = vcombine.high %v2116_v29, %v2124_v22  ;;  %v8363_v14 = vcombine.high %v2117_v27, %v2125_v59  ;;  %v2141_v34 = vld [vmem:[#allocation9 + $0xe48] sm:$0xff]  ;;  %v2148_v42 = vld [vmem:[#allocation9 + $0xe80] sm:$0xff] }
 0x2c8   :  { %4945 = vmatprep.mubr.bf16.mxu0 %v10130_v62  ;;  %5091 = vmatprep.mubr.bf16.mxu1 %v10130_v62  ;;  %v8360_v25 = vcombine.low %v2116_v29, %v2124_v22  ;;  %v8362_v26 = vcombine.low %v2117_v27, %v2125_v59  ;;  %v8377_v28 = vcombine.high %v2132_v40, %v2140_v33  ;;  %v2156_v56 = vld [vmem:[#allocation9 + $0xec0] sm:$0xff]  ;;  %v2173_v54 = vld [vmem:[#allocation9 + $0xf48] sm:$0xff]  ;;  %v1695_v29 = vld [vmem:[#allocation9 + $0x58] sm:$0xff] }
 0x2c9   :  { %4927 = vmatprep.subr.bf16.mxu0 %v8297_v53  ;;  %5073 = vmatprep.subr.bf16.mxu1 %v8299_v43  ;;  %v8379_v38 = vcombine.high %v2133_v17, %v2141_v34  ;;  %v2149_v53 = vld [vmem:[#allocation9 + $0xe88] sm:$0xff]  ;;  %v8376_v15 = vcombine.low %v2132_v40, %v2140_v33  ;;  %v8378_v20 = vcombine.low %v2133_v17, %v2141_v34  ;;  %v1711_v40 = vld [vmem:[#allocation9 + $0xd8] sm:$0xff] }
 0x2ca   :  { %v2157_v43 = vld [vmem:[#allocation9 + $0xec8] sm:$0xff]  ;;  %v8393_v21 = vcombine.high %v2148_v42, %v2156_v56  ;;  %v8392_v60 = vcombine.low %v2148_v42, %v2156_v56  ;;  %v1727_v42 = vld [vmem:[#allocation9 + $0x158] sm:$0xff] }
 0x2cb   :  { %4928 = vmatpush1.bf16.msra.mxu0 %v8296_v44  ;;  %5074 = vmatpush1.bf16.msra.mxu1 %v8298_v45  ;;  %v8395_v44 = vcombine.high %v2149_v53, %v2157_v43  ;;  %v2164_v45 = vld [vmem:[#allocation9 + $0xf00] sm:$0xff]  ;;  %v8394_v7 = vcombine.low %v2149_v53, %v2157_v43  ;;  %v2189_v8 = vld [vmem:[#allocation9 + $0xfc8] sm:$0xff] }
 0x2cc   :  { %4929 = vmatprep.subr.bf16.mxu0 %v8313_v10  ;;  %5075 = vmatprep.subr.bf16.mxu1 %v8315_v50  ;;  %v2172_v10 = vld [vmem:[#allocation9 + $0xf40] sm:$0xff]  ;;  %v2165_v50 = vld [vmem:[#allocation9 + $0xf08] sm:$0xff] }
 0x2cd   :  { %v8409_v35 = vcombine.high %v2164_v45, %v2172_v10  ;;  %v8408_v3 = vcombine.low %v2164_v45, %v2172_v10  ;;  %v8410_v31 = vcombine.low %v2165_v50, %v2173_v54  ;;  %v1743_v45 = vld [vmem:[#allocation9 + $0x1d8] sm:$0xff] }
 0x2cf   :  { %4930 = vmatpush1.bf16.msra.mxu0 %v8312_v55  ;;  %5076 = vmatpush1.bf16.msra.mxu1 %v8314_v63  ;;  %v8411_v55 = vcombine.high %v2165_v50, %v2173_v54  ;;  %v2180_v63 = vld [vmem:[#allocation9 + $0xf80] sm:$0xff] }
 0x2d0   :  { %4931 = vmatprep.subr.bf16.mxu0 %v8329_v5  ;;  %5077 = vmatprep.subr.bf16.mxu1 %v8331_v6  ;;  %v2188_v5 = vld [vmem:[#allocation9 + $0xfc0] sm:$0xff]  ;;  %v2181_v6 = vld [vmem:[#allocation9 + $0xf88] sm:$0xff] }
 0x2d1   :  { %v8425_v9 = vcombine.high %v2180_v63, %v2188_v5  ;;  %v8424_v22 = vcombine.low %v2180_v63, %v2188_v5  ;;  %v8426_v27 = vcombine.low %v2181_v6, %v2189_v8  ;;  %v1759_v63 = vld [vmem:[#allocation9 + $0x258] sm:$0xff] }
 0x2d3   :  { %4932 = vmatpush1.bf16.msra.mxu0 %v8328_v11  ;;  %5078 = vmatpush1.bf16.msra.mxu1 %v8330_v12  ;;  %v8427_v11 = vcombine.high %v2181_v6, %v2189_v8  ;;  %v1686_v12 = vld [vmem:[#allocation9 + $0x10] sm:$0xff] }
 0x2d4   :  { %4933 = vmatprep.subr.bf16.mxu0 %v8345_v13  ;;  %5079 = vmatprep.subr.bf16.mxu1 %v8347_v19  ;;  %v1694_v13 = vld [vmem:[#allocation9 + $0x50] sm:$0xff]  ;;  %v1687_v19 = vld [vmem:[#allocation9 + $0x18] sm:$0xff] }
 0x2d5   :  { %v7933_v59 = vcombine.high %v1686_v12, %v1694_v13  ;;  %v7932_v33 = vcombine.low %v1686_v12, %v1694_v13  ;;  %v7934_v17 = vcombine.low %v1687_v19, %v1695_v29  ;;  %v1775_v12 = vld [vmem:[#allocation9 + $0x2d8] sm:$0xff] }
 0x2d7   :  { %4934 = vmatpush1.bf16.msra.mxu0 %v8344_v23  ;;  %5080 = vmatpush1.bf16.msra.mxu1 %v8346_v30  ;;  %v7935_v23 = vcombine.high %v1687_v19, %v1695_v29  ;;  %v1702_v30 = vld [vmem:[#allocation9 + $0x90] sm:$0xff] }
 0x2d8   :  { %4935 = vmatprep.subr.bf16.mxu0 %v8361_v24  ;;  %5081 = vmatprep.subr.bf16.mxu1 %v8363_v14  ;;  %v1710_v24 = vld [vmem:[#allocation9 + $0xd0] sm:$0xff]  ;;  %v1703_v14 = vld [vmem:[#allocation9 + $0x98] sm:$0xff] }
 0x2d9   :  { %v7949_v34 = vcombine.high %v1702_v30, %v1710_v24  ;;  %v7948_v56 = vcombine.low %v1702_v30, %v1710_v24  ;;  %v7950_v53 = vcombine.low %v1703_v14, %v1711_v40  ;;  %v1791_v30 = vld [vmem:[#allocation9 + $0x358] sm:$0xff] }
 0x2db   :  { %4936 = vmatpush1.bf16.msra.mxu0 %v8360_v25  ;;  %5082 = vmatpush1.bf16.msra.mxu1 %v8362_v26  ;;  %v7951_v25 = vcombine.high %v1703_v14, %v1711_v40  ;;  %v1718_v26 = vld [vmem:[#allocation9 + $0x110] sm:$0xff] }
 0x2dc   :  { %4937 = vmatprep.subr.bf16.mxu0 %v8377_v28  ;;  %5083 = vmatprep.subr.bf16.mxu1 %v8379_v38  ;;  %v1726_v28 = vld [vmem:[#allocation9 + $0x150] sm:$0xff]  ;;  %v1719_v38 = vld [vmem:[#allocation9 + $0x118] sm:$0xff] }
 0x2dd   :  { %v7965_v43 = vcombine.high %v1718_v26, %v1726_v28  ;;  %v7964_v10 = vcombine.low %v1718_v26, %v1726_v28  ;;  %v7966_v50 = vcombine.low %v1719_v38, %v1727_v42  ;;  %v1807_v26 = vld [vmem:[#allocation9 + $0x3d8] sm:$0xff] }
 0x2df   :  { %4938 = vmatpush1.bf16.msra.mxu0 %v8376_v15  ;;  %5084 = vmatpush1.bf16.msra.mxu1 %v8378_v20  ;;  %v7967_v15 = vcombine.high %v1719_v38, %v1727_v42  ;;  %v1734_v20 = vld [vmem:[#allocation9 + $0x190] sm:$0xff] }
 0x2e0   :  { %4939 = vmatprep.subr.bf16.mxu0 %v8393_v21  ;;  %5085 = vmatprep.subr.bf16.mxu1 %v8395_v44  ;;  %v1742_v21 = vld [vmem:[#allocation9 + $0x1d0] sm:$0xff]  ;;  %v1735_v44 = vld [vmem:[#allocation9 + $0x198] sm:$0xff] }
 0x2e1   :  { %v7981_v54 = vcombine.high %v1734_v20, %v1742_v21  ;;  %v7980_v5 = vcombine.low %v1734_v20, %v1742_v21  ;;  %v7982_v6 = vcombine.low %v1735_v44, %v1743_v45  ;;  %v1823_v20 = vld [vmem:[#allocation9 + $0x458] sm:$0xff] }
 0x2e3   :  { %4940 = vmatpush1.bf16.msra.mxu0 %v8392_v60  ;;  %5086 = vmatpush1.bf16.msra.mxu1 %v8394_v7  ;;  %v7983_v60 = vcombine.high %v1735_v44, %v1743_v45  ;;  %v1750_v7 = vld [vmem:[#allocation9 + $0x210] sm:$0xff] }
 0x2e4   :  { %4941 = vmatprep.subr.bf16.mxu0 %v8409_v35  ;;  %5087 = vmatprep.subr.bf16.mxu1 %v8411_v55  ;;  %v1758_v35 = vld [vmem:[#allocation9 + $0x250] sm:$0xff]  ;;  %v1751_v55 = vld [vmem:[#allocation9 + $0x218] sm:$0xff] }
 0x2e5   :  { %v7997_v8 = vcombine.high %v1750_v7, %v1758_v35  ;;  %v7996_v13 = vcombine.low %v1750_v7, %v1758_v35  ;;  %v7998_v19 = vcombine.low %v1751_v55, %v1759_v63  ;;  %v1839_v7 = vld [vmem:[#allocation9 + $0x4d8] sm:$0xff] }
 0x2e7   :  { %4942 = vmatpush1.bf16.msra.mxu0 %v8408_v3  ;;  %5088 = vmatpush1.bf16.msra.mxu1 %v8410_v31  ;;  %v7999_v3 = vcombine.high %v1751_v55, %v1759_v63  ;;  %v1766_v31 = vld [vmem:[#allocation9 + $0x290] sm:$0xff] }
 0x2e8   :  { %4943 = vmatprep.subr.bf16.mxu0 %v8425_v9  ;;  %5089 = vmatprep.subr.bf16.mxu1 %v8427_v11  ;;  %v1774_v9 = vld [vmem:[#allocation9 + $0x2d0] sm:$0xff]  ;;  %v1767_v11 = vld [vmem:[#allocation9 + $0x298] sm:$0xff] }
 0x2e9   :  { %v8013_v29 = vcombine.high %v1766_v31, %v1774_v9  ;;  %v8012_v24 = vcombine.low %v1766_v31, %v1774_v9  ;;  %v8014_v14 = vcombine.low %v1767_v11, %v1775_v12  ;;  %v1855_v31 = vld [vmem:[#allocation9 + $0x558] sm:$0xff] }
 0x2eb   :  { %4944 = vmatpush1.bf16.msra.mxu0 %v8424_v22  ;;  %5090 = vmatpush1.bf16.msra.mxu1 %v8426_v27  ;;  %v8015_v22 = vcombine.high %v1767_v11, %v1775_v12  ;;  %v1782_v27 = vld [vmem:[#allocation9 + $0x310] sm:$0xff] }
 0x2ec   :  { %5132 = vmatprep.subr.bf16.mxu0 %v7933_v59  ;;  %5278 = vmatprep.subr.bf16.mxu1 %v7935_v23  ;;  %v1790_v59 = vld [vmem:[#allocation9 + $0x350] sm:$0xff]  ;;  %v1783_v23 = vld [vmem:[#allocation9 + $0x318] sm:$0xff] }
 0x2ed   :  { %v8029_v40 = vcombine.high %v1782_v27, %v1790_v59  ;;  %v8028_v28 = vcombine.low %v1782_v27, %v1790_v59  ;;  %v8030_v38 = vcombine.low %v1783_v23, %v1791_v30  ;;  %v1871_v27 = vld [vmem:[#allocation9 + $0x5d8] sm:$0xff] }
 0x2ee   :  { %4946 = vmatmul.mubr.bf16.vlgmr.msra.gmra.mrb[32].mxu0 %v10124_v58  ;;  %5092 = vmatmul.mubr.bf16.vlgmr.msra.gmra.mrb[32].mxu1 %v10124_v58 }
 0x2ef   :  { %4955 = vmatprep.mubr.bf16.mxu0 %v10190_v47  ;;  %5101 = vmatprep.mubr.bf16.mxu1 %v10190_v47 }
 0x2f0   :  { %5133 = vmatpush1.bf16.msra.mxu0 %v7932_v33  ;;  %5279 = vmatpush1.bf16.msra.mxu1 %v7934_v17  ;;  %v8031_v33 = vcombine.high %v1783_v23, %v1791_v30  ;;  %v1798_v17 = vld [vmem:[#allocation9 + $0x390] sm:$0xff] }
 0x2f1   :  { %5134 = vmatprep.subr.bf16.mxu0 %v7949_v34  ;;  %5280 = vmatprep.subr.bf16.mxu1 %v7951_v25  ;;  %v1806_v34 = vld [vmem:[#allocation9 + $0x3d0] sm:$0xff]  ;;  %v1799_v25 = vld [vmem:[#allocation9 + $0x398] sm:$0xff] }
 0x2f2   :  { %v8045_v42 = vcombine.high %v1798_v17, %v1806_v34  ;;  %v8044_v21 = vcombine.low %v1798_v17, %v1806_v34  ;;  %v8046_v44 = vcombine.low %v1799_v25, %v1807_v26  ;;  %v1887_v17 = vld [vmem:[#allocation9 + $0x658] sm:$0xff] }
 0x2f4   :  { %5135 = vmatpush1.bf16.msra.mxu0 %v7948_v56  ;;  %5281 = vmatpush1.bf16.msra.mxu1 %v7950_v53  ;;  %v8047_v56 = vcombine.high %v1799_v25, %v1807_v26  ;;  %v1814_v53 = vld [vmem:[#allocation9 + $0x410] sm:$0xff] }
 0x2f5   :  { %5136 = vmatprep.subr.bf16.mxu0 %v7965_v43  ;;  %5282 = vmatprep.subr.bf16.mxu1 %v7967_v15  ;;  %v1822_v43 = vld [vmem:[#allocation9 + $0x450] sm:$0xff]  ;;  %v1815_v15 = vld [vmem:[#allocation9 + $0x418] sm:$0xff] }
 0x2f6   :  { %4956 = vmatmul.mubr.bf16.gmra.mrb[36].mxu0 %v10178_v52  ;;  %5102 = vmatmul.mubr.bf16.gmra.mrb[36].mxu1 %v10178_v52  ;;  %v8061_v45 = vcombine.high %v1814_v53, %v1822_v43  ;;  %v8060_v35 = vcombine.low %v1814_v53, %v1822_v43  ;;  %v8062_v55 = vcombine.low %v1815_v15, %v1823_v20  ;;  %v1903_v53 = vld [vmem:[#allocation9 + $0x6d8] sm:$0xff] }
 0x2f7   :  { %4965 = vmatprep.mubr.bf16.mxu0 %v10237_v18  ;;  %5111 = vmatprep.mubr.bf16.mxu1 %v10237_v18 }
 0x2f8   :  { %5137 = vmatpush1.bf16.msra.mxu0 %v7964_v10  ;;  %5283 = vmatpush1.bf16.msra.mxu1 %v7966_v50  ;;  %v8063_v10 = vcombine.high %v1815_v15, %v1823_v20  ;;  %v1830_v50 = vld [vmem:[#allocation9 + $0x490] sm:$0xff] }
 0x2f9   :  { %5138 = vmatprep.subr.bf16.mxu0 %v7981_v54  ;;  %5284 = vmatprep.subr.bf16.mxu1 %v7983_v60  ;;  %v1838_v54 = vld [vmem:[#allocation9 + $0x4d0] sm:$0xff]  ;;  %v1831_v60 = vld [vmem:[#allocation9 + $0x498] sm:$0xff] }
 0x2fa   :  { %v8077_v63 = vcombine.high %v1830_v50, %v1838_v54  ;;  %v8076_v9 = vcombine.low %v1830_v50, %v1838_v54  ;;  %v8078_v11 = vcombine.low %v1831_v60, %v1839_v7  ;;  %v1919_v50 = vld [vmem:[#allocation9 + $0x758] sm:$0xff] }
 0x2fc   :  { %5139 = vmatpush1.bf16.msra.mxu0 %v7980_v5  ;;  %5285 = vmatpush1.bf16.msra.mxu1 %v7982_v6  ;;  %v8079_v5 = vcombine.high %v1831_v60, %v1839_v7  ;;  %v1846_v6 = vld [vmem:[#allocation9 + $0x510] sm:$0xff] }
 0x2fd   :  { %5140 = vmatprep.subr.bf16.mxu0 %v7997_v8  ;;  %5286 = vmatprep.subr.bf16.mxu1 %v7999_v3  ;;  %v1854_v8 = vld [vmem:[#allocation9 + $0x550] sm:$0xff]  ;;  %v1847_v3 = vld [vmem:[#allocation9 + $0x518] sm:$0xff] }
 0x2fe   :  { %4966 = vmatmul.mubr.bf16.gmra.mrb[40].mxu0 %v10229_v32  ;;  %5112 = vmatmul.mubr.bf16.gmra.mrb[40].mxu1 %v10229_v32  ;;  %v8093_v12 = vcombine.high %v1846_v6, %v1854_v8  ;;  %v8092_v59 = vcombine.low %v1846_v6, %v1854_v8  ;;  %v8094_v23 = vcombine.low %v1847_v3, %v1855_v31  ;;  %v1935_v6 = vld [vmem:[#allocation9 + $0x7d8] sm:$0xff] }
 0x2ff   :  { %4975 = vmatprep.mubr.bf16.mxu0 %v10269_v41  ;;  %5121 = vmatprep.mubr.bf16.mxu1 %v10269_v41 }
 0x300   :  { %5141 = vmatpush1.bf16.msra.mxu0 %v7996_v13  ;;  %5287 = vmatpush1.bf16.msra.mxu1 %v7998_v19  ;;  %v8095_v13 = vcombine.high %v1847_v3, %v1855_v31  ;;  %v1862_v19 = vld [vmem:[#allocation9 + $0x590] sm:$0xff] }
 0x301   :  { %5142 = vmatprep.subr.bf16.mxu0 %v8013_v29  ;;  %5288 = vmatprep.subr.bf16.mxu1 %v8015_v22  ;;  %v1870_v29 = vld [vmem:[#allocation9 + $0x5d0] sm:$0xff]  ;;  %v1863_v22 = vld [vmem:[#allocation9 + $0x598] sm:$0xff] }
 0x302   :  { %v8109_v30 = vcombine.high %v1862_v19, %v1870_v29  ;;  %v8108_v34 = vcombine.low %v1862_v19, %v1870_v29  ;;  %v8110_v25 = vcombine.low %v1863_v22, %v1871_v27  ;;  %v1951_v19 = vld [vmem:[#allocation9 + $0x858] sm:$0xff] }
 0x304   :  { %5143 = vmatpush1.bf16.msra.mxu0 %v8012_v24  ;;  %5289 = vmatpush1.bf16.msra.mxu1 %v8014_v14  ;;  %v8111_v24 = vcombine.high %v1863_v22, %v1871_v27  ;;  %v1878_v14 = vld [vmem:[#allocation9 + $0x610] sm:$0xff] }
 0x305   :  { %5144 = vmatprep.subr.bf16.mxu0 %v8029_v40  ;;  %5290 = vmatprep.subr.bf16.mxu1 %v8031_v33  ;;  %v1886_v40 = vld [vmem:[#allocation9 + $0x650] sm:$0xff]  ;;  %v1879_v33 = vld [vmem:[#allocation9 + $0x618] sm:$0xff] }
 0x306   :  { %4976 = vmatmul.mubr.bf16.gmra.mrb[44].mxu0 %v10263_v37  ;;  %5122 = vmatmul.mubr.bf16.gmra.mrb[44].mxu1 %v10263_v37  ;;  %v8125_v26 = vcombine.high %v1878_v14, %v1886_v40  ;;  %v8124_v43 = vcombine.low %v1878_v14, %v1886_v40  ;;  %v8126_v15 = vcombine.low %v1879_v33, %v1887_v17  ;;  %v1967_v14 = vld [vmem:[#allocation9 + $0x8d8] sm:$0xff] }
 0x307   :  { %5164 = vmatprep.mubr.bf16.mxu0 %v10128_v61  ;;  %5310 = vmatprep.mubr.bf16.mxu1 %v10128_v61 }
 0x308   :  { %5145 = vmatpush1.bf16.msra.mxu0 %v8028_v28  ;;  %5291 = vmatpush1.bf16.msra.mxu1 %v8030_v38  ;;  %v8127_v28 = vcombine.high %v1879_v33, %v1887_v17  ;;  %v1894_v38 = vld [vmem:[#allocation9 + $0x690] sm:$0xff] }
 0x309   :  { %5146 = vmatprep.subr.bf16.mxu0 %v8045_v42  ;;  %5292 = vmatprep.subr.bf16.mxu1 %v8047_v56  ;;  %v1902_v42 = vld [vmem:[#allocation9 + $0x6d0] sm:$0xff]  ;;  %v1895_v56 = vld [vmem:[#allocation9 + $0x698] sm:$0xff] }
 0x30a   :  { %v8141_v20 = vcombine.high %v1894_v38, %v1902_v42  ;;  %v8140_v54 = vcombine.low %v1894_v38, %v1902_v42  ;;  %v8142_v60 = vcombine.low %v1895_v56, %v1903_v53  ;;  %v1983_v38 = vld [vmem:[#allocation9 + $0x958] sm:$0xff] }
 0x30c   :  { %5147 = vmatpush1.bf16.msra.mxu0 %v8044_v21  ;;  %5293 = vmatpush1.bf16.msra.mxu1 %v8046_v44  ;;  %v8143_v21 = vcombine.high %v1895_v56, %v1903_v53  ;;  %v1910_v44 = vld [vmem:[#allocation9 + $0x710] sm:$0xff] }
 0x30d   :  { %5148 = vmatprep.subr.bf16.mxu0 %v8061_v45  ;;  %5294 = vmatprep.subr.bf16.mxu1 %v8063_v10  ;;  %v1918_v45 = vld [vmem:[#allocation9 + $0x750] sm:$0xff]  ;;  %v1911_v10 = vld [vmem:[#allocation9 + $0x718] sm:$0xff] }
 0x30e   :  { %v8157_v7 = vcombine.high %v1910_v44, %v1918_v45  ;;  %v8156_v8 = vcombine.low %v1910_v44, %v1918_v45  ;;  %v8158_v3 = vcombine.low %v1911_v10, %v1919_v50  ;;  %v1999_v44 = vld [vmem:[#allocation9 + $0x9d8] sm:$0xff] }
 0x310   :  { %5149 = vmatpush1.bf16.msra.mxu0 %v8060_v35  ;;  %5295 = vmatpush1.bf16.msra.mxu1 %v8062_v55  ;;  %v8159_v35 = vcombine.high %v1911_v10, %v1919_v50  ;;  %v1926_v55 = vld [vmem:[#allocation9 + $0x790] sm:$0xff] }
 0x311   :  { %5150 = vmatprep.subr.bf16.mxu0 %v8077_v63  ;;  %5296 = vmatprep.subr.bf16.mxu1 %v8079_v5  ;;  %v1934_v63 = vld [vmem:[#allocation9 + $0x7d0] sm:$0xff]  ;;  %v1927_v5 = vld [vmem:[#allocation9 + $0x798] sm:$0xff] }
 0x312   :  { %v8173_v31 = vcombine.high %v1926_v55, %v1934_v63  ;;  %v8172_v29 = vcombine.low %v1926_v55, %v1934_v63  ;;  %v8174_v22 = vcombine.low %v1927_v5, %v1935_v6  ;;  %v2015_v55 = vld [vmem:[#allocation9 + $0xa58] sm:$0xff] }
 0x314   :  { %5151 = vmatpush1.bf16.msra.mxu0 %v8076_v9  ;;  %5297 = vmatpush1.bf16.msra.mxu1 %v8078_v11  ;;  %v8175_v9 = vcombine.high %v1927_v5, %v1935_v6  ;;  %v1942_v11 = vld [vmem:[#allocation9 + $0x810] sm:$0xff] }
 0x315   :  { %5152 = vmatprep.subr.bf16.mxu0 %v8093_v12  ;;  %5298 = vmatprep.subr.bf16.mxu1 %v8095_v13  ;;  %v1950_v12 = vld [vmem:[#allocation9 + $0x850] sm:$0xff]  ;;  %v1943_v13 = vld [vmem:[#allocation9 + $0x818] sm:$0xff] }
 0x316   :  { %v8189_v27 = vcombine.high %v1942_v11, %v1950_v12  ;;  %v8188_v40 = vcombine.low %v1942_v11, %v1950_v12  ;;  %v8190_v33 = vcombine.low %v1943_v13, %v1951_v19  ;;  %v2031_v11 = vld [vmem:[#allocation9 + $0xad8] sm:$0xff] }
 0x318   :  { %5153 = vmatpush1.bf16.msra.mxu0 %v8092_v59  ;;  %5299 = vmatpush1.bf16.msra.mxu1 %v8094_v23  ;;  %v8191_v59 = vcombine.high %v1943_v13, %v1951_v19  ;;  %v1958_v23 = vld [vmem:[#allocation9 + $0x890] sm:$0xff] }
 0x319   :  { %5154 = vmatprep.subr.bf16.mxu0 %v8109_v30  ;;  %5300 = vmatprep.subr.bf16.mxu1 %v8111_v24  ;;  %v1966_v30 = vld [vmem:[#allocation9 + $0x8d0] sm:$0xff]  ;;  %v1959_v24 = vld [vmem:[#allocation9 + $0x898] sm:$0xff] }
 0x31a   :  { %v8205_v17 = vcombine.high %v1958_v23, %v1966_v30  ;;  %v8204_v42 = vcombine.low %v1958_v23, %v1966_v30  ;;  %v8206_v56 = vcombine.low %v1959_v24, %v1967_v14  ;;  %v2047_v23 = vld [vmem:[#allocation9 + $0xb58] sm:$0xff] }
 0x31c   :  { %5155 = vmatpush1.bf16.msra.mxu0 %v8108_v34  ;;  %5301 = vmatpush1.bf16.msra.mxu1 %v8110_v25  ;;  %v8207_v34 = vcombine.high %v1959_v24, %v1967_v14  ;;  %v1974_v25 = vld [vmem:[#allocation9 + $0x910] sm:$0xff] }
 0x31d   :  { %5156 = vmatprep.subr.bf16.mxu0 %v8125_v26  ;;  %5302 = vmatprep.subr.bf16.mxu1 %v8127_v28  ;;  %v1982_v26 = vld [vmem:[#allocation9 + $0x950] sm:$0xff]  ;;  %v1975_v28 = vld [vmem:[#allocation9 + $0x918] sm:$0xff] }
 0x31e   :  { %v8221_v53 = vcombine.high %v1974_v25, %v1982_v26  ;;  %v8220_v45 = vcombine.low %v1974_v25, %v1982_v26  ;;  %v8222_v10 = vcombine.low %v1975_v28, %v1983_v38  ;;  %v2063_v25 = vld [vmem:[#allocation9 + $0xbd8] sm:$0xff] }
 0x320   :  { %5157 = vmatpush1.bf16.msra.mxu0 %v8124_v43  ;;  %5303 = vmatpush1.bf16.msra.mxu1 %v8126_v15  ;;  %v8223_v43 = vcombine.high %v1975_v28, %v1983_v38  ;;  %v1990_v15 = vld [vmem:[#allocation9 + $0x990] sm:$0xff] }
 0x321   :  { %5158 = vmatprep.subr.bf16.mxu0 %v8141_v20  ;;  %5304 = vmatprep.subr.bf16.mxu1 %v8143_v21  ;;  %v1998_v20 = vld [vmem:[#allocation9 + $0x9d0] sm:$0xff]  ;;  %v1991_v21 = vld [vmem:[#allocation9 + $0x998] sm:$0xff] }
 0x322   :  { %v8237_v50 = vcombine.high %v1990_v15, %v1998_v20  ;;  %v8236_v63 = vcombine.low %v1990_v15, %v1998_v20  ;;  %v8238_v5 = vcombine.low %v1991_v21, %v1999_v44  ;;  %v2079_v15 = vld [vmem:[#allocation9 + $0xc58] sm:$0xff] }
 0x324   :  { %5159 = vmatpush1.bf16.msra.mxu0 %v8140_v54  ;;  %5305 = vmatpush1.bf16.msra.mxu1 %v8142_v60  ;;  %v8239_v54 = vcombine.high %v1991_v21, %v1999_v44  ;;  %v2006_v60 = vld [vmem:[#allocation9 + $0xa10] sm:$0xff] }
 0x325   :  { %5160 = vmatprep.subr.bf16.mxu0 %v8157_v7  ;;  %5306 = vmatprep.subr.bf16.mxu1 %v8159_v35  ;;  %v2014_v7 = vld [vmem:[#allocation9 + $0xa50] sm:$0xff]  ;;  %v2007_v35 = vld [vmem:[#allocation9 + $0xa18] sm:$0xff] }
 0x326   :  { %v8253_v6 = vcombine.high %v2006_v60, %v2014_v7  ;;  %v8252_v12 = vcombine.low %v2006_v60, %v2014_v7  ;;  %v8254_v13 = vcombine.low %v2007_v35, %v2015_v55  ;;  %v2095_v60 = vld [vmem:[#allocation9 + $0xcd8] sm:$0xff] }
 0x328   :  { %5161 = vmatpush1.bf16.msra.mxu0 %v8156_v8  ;;  %5307 = vmatpush1.bf16.msra.mxu1 %v8158_v3  ;;  %v8255_v8 = vcombine.high %v2007_v35, %v2015_v55  ;;  %v2022_v3 = vld [vmem:[#allocation9 + $0xa90] sm:$0xff] }
 0x329   :  { %5162 = vmatprep.subr.bf16.mxu0 %v8173_v31  ;;  %5308 = vmatprep.subr.bf16.mxu1 %v8175_v9  ;;  %v2030_v31 = vld [vmem:[#allocation9 + $0xad0] sm:$0xff]  ;;  %v2023_v9 = vld [vmem:[#allocation9 + $0xa98] sm:$0xff] }
 0x32a   :  { %v8269_v19 = vcombine.high %v2022_v3, %v2030_v31  ;;  %v8268_v30 = vcombine.low %v2022_v3, %v2030_v31  ;;  %v8270_v24 = vcombine.low %v2023_v9, %v2031_v11  ;;  %v2111_v3 = vld [vmem:[#allocation9 + $0xd58] sm:$0xff] }
 0x32c   :  { %5163 = vmatpush1.bf16.msra.mxu0 %v8172_v29  ;;  %5309 = vmatpush1.bf16.msra.mxu1 %v8174_v22  ;;  %v8271_v29 = vcombine.high %v2023_v9, %v2031_v11  ;;  %v2038_v22 = vld [vmem:[#allocation9 + $0xb10] sm:$0xff] }
 0x32d   :  { %5205 = vmatprep.subr.bf16.mxu0 %v8189_v27  ;;  %5351 = vmatprep.subr.bf16.mxu1 %v8191_v59  ;;  %v2046_v27 = vld [vmem:[#allocation9 + $0xb50] sm:$0xff]  ;;  %v2039_v59 = vld [vmem:[#allocation9 + $0xb18] sm:$0xff] }
 0x32e   :  { %v8285_v14 = vcombine.high %v2038_v22, %v2046_v27  ;;  %v8284_v26 = vcombine.low %v2038_v22, %v2046_v27  ;;  %v8286_v28 = vcombine.low %v2039_v59, %v2047_v23  ;;  %v2127_v22 = vld [vmem:[#allocation9 + $0xdd8] sm:$0xff] }
 0x32f   :  { %5165 = vmatmul.mubr.bf16.vlgmr.msra.gmra.mrb[48].mxu0 %v10122_v57  ;;  %5311 = vmatmul.mubr.bf16.vlgmr.msra.gmra.mrb[48].mxu1 %v10122_v57 }
 0x330   :  { %5174 = vmatprep.mubr.bf16.mxu0 %v10188_v46  ;;  %5206 = vmatpush1.bf16.msra.mxu0 %v8188_v40  ;;  %v8287_v40 = vcombine.high %v2039_v59, %v2047_v23 }
 0x331   :  { %5320 = vmatprep.mubr.bf16.mxu1 %v10188_v46  ;;  %5352 = vmatpush1.bf16.msra.mxu1 %v8190_v33  ;;  %v2054_v33 = vld [vmem:[#allocation9 + $0xb90] sm:$0xff] }
 0x332   :  { %5207 = vmatprep.subr.bf16.mxu0 %v8205_v17  ;;  %5353 = vmatprep.subr.bf16.mxu1 %v8207_v34  ;;  %v2062_v17 = vld [vmem:[#allocation9 + $0xbd0] sm:$0xff]  ;;  %v2055_v34 = vld [vmem:[#allocation9 + $0xb98] sm:$0xff] }
 0x333   :  { %v8301_v38 = vcombine.high %v2054_v33, %v2062_v17  ;;  %v8300_v20 = vcombine.low %v2054_v33, %v2062_v17  ;;  %v8302_v21 = vcombine.low %v2055_v34, %v2063_v25  ;;  %v2143_v33 = vld [vmem:[#allocation9 + $0xe58] sm:$0xff] }
 0x334   :  { %5208 = vmatpush1.bf16.msra.mxu0 %v8204_v42  ;;  %v8303_v42 = vcombine.high %v2055_v34, %v2063_v25 }
 0x335   :  { %5354 = vmatpush1.bf16.msra.mxu1 %v8206_v56  ;;  %5209 = vmatprep.subr.bf16.mxu0 %v8221_v53  ;;  %v2070_v56 = vld [vmem:[#allocation9 + $0xc10] sm:$0xff] }
 0x336   :  { %5355 = vmatprep.subr.bf16.mxu1 %v8223_v43  ;;  %v2078_v53 = vld [vmem:[#allocation9 + $0xc50] sm:$0xff]  ;;  %v2071_v43 = vld [vmem:[#allocation9 + $0xc18] sm:$0xff] }
 0x337   :  { %5175 = vmatmul.mubr.bf16.gmra.mrb[52].mxu0 %v10176_v0  ;;  %5321 = vmatmul.mubr.bf16.gmra.mrb[52].mxu1 %v10176_v0  ;;  %v8317_v44 = vcombine.high %v2070_v56, %v2078_v53  ;;  %v8316_v7 = vcombine.low %v2070_v56, %v2078_v53  ;;  %v8318_v35 = vcombine.low %v2071_v43, %v2079_v15  ;;  %v2159_v56 = vld [vmem:[#allocation9 + $0xed8] sm:$0xff] }
 0x338   :  { %5184 = vmatprep.mubr.bf16.mxu0 %v10235_v16  ;;  %5210 = vmatpush1.bf16.msra.mxu0 %v8220_v45  ;;  %v8319_v45 = vcombine.high %v2071_v43, %v2079_v15 }
 0x339   :  { %5330 = vmatprep.mubr.bf16.mxu1 %v10235_v16  ;;  %5356 = vmatpush1.bf16.msra.mxu1 %v8222_v10  ;;  %v2086_v10 = vld [vmem:[#allocation9 + $0xc90] sm:$0xff] }
 0x33a   :  { %5211 = vmatprep.subr.bf16.mxu0 %v8237_v50  ;;  %5357 = vmatprep.subr.bf16.mxu1 %v8239_v54  ;;  %v2094_v50 = vld [vmem:[#allocation9 + $0xcd0] sm:$0xff]  ;;  %v2087_v54 = vld [vmem:[#allocation9 + $0xc98] sm:$0xff] }
 0x33b   :  { %v8333_v55 = vcombine.high %v2086_v10, %v2094_v50  ;;  %v8332_v31 = vcombine.low %v2086_v10, %v2094_v50  ;;  %v8334_v9 = vcombine.low %v2087_v54, %v2095_v60  ;;  %v2175_v10 = vld [vmem:[#allocation9 + $0xf58] sm:$0xff] }
 0x33c   :  { %5212 = vmatpush1.bf16.msra.mxu0 %v8236_v63  ;;  %v8335_v63 = vcombine.high %v2087_v54, %v2095_v60 }
 0x33d   :  { %5358 = vmatpush1.bf16.msra.mxu1 %v8238_v5  ;;  %5213 = vmatprep.subr.bf16.mxu0 %v8253_v6  ;;  %v2102_v5 = vld [vmem:[#allocation9 + $0xd10] sm:$0xff] }
 0x33e   :  { %5359 = vmatprep.subr.bf16.mxu1 %v8255_v8  ;;  %v2110_v6 = vld [vmem:[#allocation9 + $0xd50] sm:$0xff]  ;;  %v2103_v8 = vld [vmem:[#allocation9 + $0xd18] sm:$0xff] }
 0x33f   :  { %5185 = vmatmul.mubr.bf16.gmra.mrb[56].mxu0 %v10227_v2  ;;  %5331 = vmatmul.mubr.bf16.gmra.mrb[56].mxu1 %v10227_v2  ;;  %v8349_v11 = vcombine.high %v2102_v5, %v2110_v6  ;;  %v8348_v27 = vcombine.low %v2102_v5, %v2110_v6  ;;  %v8350_v59 = vcombine.low %v2103_v8, %v2111_v3  ;;  %v2191_v5 = vld [vmem:[#allocation9 + $0xfd8] sm:$0xff] }
 0x340   :  { %5194 = vmatprep.mubr.bf16.mxu0 %v10267_v39  ;;  %5214 = vmatpush1.bf16.msra.mxu0 %v8252_v12  ;;  %v8351_v12 = vcombine.high %v2103_v8, %v2111_v3 }
 0x341   :  { %5340 = vmatprep.mubr.bf16.mxu1 %v10267_v39  ;;  %5360 = vmatpush1.bf16.msra.mxu1 %v8254_v13  ;;  %v2118_v13 = vld [vmem:[#allocation9 + $0xd90] sm:$0xff] }
 0x342   :  { %5215 = vmatprep.subr.bf16.mxu0 %v8269_v19  ;;  %5361 = vmatprep.subr.bf16.mxu1 %v8271_v29  ;;  %v2126_v19 = vld [vmem:[#allocation9 + $0xdd0] sm:$0xff]  ;;  %v2119_v29 = vld [vmem:[#allocation9 + $0xd98] sm:$0xff] }
 0x343   :  { %v8365_v23 = vcombine.high %v2118_v13, %v2126_v19  ;;  %v8364_v17 = vcombine.low %v2118_v13, %v2126_v19  ;;  %v8366_v34 = vcombine.low %v2119_v29, %v2127_v22  ;;  %v1697_v13 = vld [vmem:[#allocation9 + $0x68] sm:$0xff] }
 0x344   :  { %5216 = vmatpush1.bf16.msra.mxu0 %v8268_v30  ;;  %v8367_v30 = vcombine.high %v2119_v29, %v2127_v22 }
 0x345   :  { %5362 = vmatpush1.bf16.msra.mxu1 %v8270_v24  ;;  %5217 = vmatprep.subr.bf16.mxu0 %v8285_v14  ;;  %v2134_v24 = vld [vmem:[#allocation9 + $0xe10] sm:$0xff] }
 0x346   :  { %5363 = vmatprep.subr.bf16.mxu1 %v8287_v40  ;;  %v2142_v14 = vld [vmem:[#allocation9 + $0xe50] sm:$0xff]  ;;  %v2135_v40 = vld [vmem:[#allocation9 + $0xe18] sm:$0xff] }
 0x347   :  { %5195 = vmatmul.mubr.bf16.gmra.mrb[60].mxu0 %v10261_v36  ;;  %5341 = vmatmul.mubr.bf16.gmra.mrb[60].mxu1 %v10261_v36  ;;  %v8381_v25 = vcombine.high %v2134_v24, %v2142_v14  ;;  %v8380_v53 = vcombine.low %v2134_v24, %v2142_v14  ;;  %v8382_v43 = vcombine.low %v2135_v40, %v2143_v33  ;;  %v1713_v24 = vld [vmem:[#allocation9 + $0xe8] sm:$0xff] }
 0x348   :  { %5218 = vmatpush1.bf16.msra.mxu0 %v8284_v26  ;;  %5237 = vmatprep.mubr.bf16.mxu0 %v10130_v62  ;;  %v8383_v26 = vcombine.high %v2135_v40, %v2143_v33 }
 0x349   :  { %5364 = vmatpush1.bf16.msra.mxu1 %v8286_v28  ;;  %5383 = vmatprep.mubr.bf16.mxu1 %v10130_v62  ;;  %v2150_v28 = vld [vmem:[#allocation9 + $0xe90] sm:$0xff] }
 0x34a   :  { %5219 = vmatprep.subr.bf16.mxu0 %v8301_v38  ;;  %5365 = vmatprep.subr.bf16.mxu1 %v8303_v42  ;;  %v2158_v38 = vld [vmem:[#allocation9 + $0xed0] sm:$0xff]  ;;  %v2151_v42 = vld [vmem:[#allocation9 + $0xe98] sm:$0xff] }
 0x34b   :  { %v8397_v15 = vcombine.high %v2150_v28, %v2158_v38  ;;  %v8396_v50 = vcombine.low %v2150_v28, %v2158_v38  ;;  %v8398_v54 = vcombine.low %v2151_v42, %v2159_v56  ;;  %v1729_v28 = vld [vmem:[#allocation9 + $0x168] sm:$0xff] }
 0x34c   :  { %5220 = vmatpush1.bf16.msra.mxu0 %v8300_v20  ;;  %v8399_v20 = vcombine.high %v2151_v42, %v2159_v56 }
 0x34d   :  { %5366 = vmatpush1.bf16.msra.mxu1 %v8302_v21  ;;  %5221 = vmatprep.subr.bf16.mxu0 %v8317_v44  ;;  %v2166_v21 = vld [vmem:[#allocation9 + $0xf10] sm:$0xff] }
 0x34e   :  { %5367 = vmatprep.subr.bf16.mxu1 %v8319_v45  ;;  %v2174_v44 = vld [vmem:[#allocation9 + $0xf50] sm:$0xff]  ;;  %v2167_v45 = vld [vmem:[#allocation9 + $0xf18] sm:$0xff] }
 0x34f   :  { %v8413_v60 = vcombine.high %v2166_v21, %v2174_v44  ;;  %v8412_v6 = vcombine.low %v2166_v21, %v2174_v44  ;;  %v8414_v8 = vcombine.low %v2167_v45, %v2175_v10  ;;  %v1745_v21 = vld [vmem:[#allocation9 + $0x1e8] sm:$0xff] }
 0x350   :  { %5222 = vmatpush1.bf16.msra.mxu0 %v8316_v7  ;;  %v8415_v7 = vcombine.high %v2167_v45, %v2175_v10 }
 0x351   :  { %5368 = vmatpush1.bf16.msra.mxu1 %v8318_v35  ;;  %5223 = vmatprep.subr.bf16.mxu0 %v8333_v55  ;;  %v2182_v35 = vld [vmem:[#allocation9 + $0xf90] sm:$0xff] }
 0x352   :  { %5369 = vmatprep.subr.bf16.mxu1 %v8335_v63  ;;  %v2190_v55 = vld [vmem:[#allocation9 + $0xfd0] sm:$0xff]  ;;  %v2183_v63 = vld [vmem:[#allocation9 + $0xf98] sm:$0xff] }
 0x353   :  { %v8429_v3 = vcombine.high %v2182_v35, %v2190_v55  ;;  %v8428_v19 = vcombine.low %v2182_v35, %v2190_v55  ;;  %v8430_v29 = vcombine.low %v2183_v63, %v2191_v5  ;;  %v1761_v35 = vld [vmem:[#allocation9 + $0x268] sm:$0xff] }
 0x354   :  { %5224 = vmatpush1.bf16.msra.mxu0 %v8332_v31  ;;  %v8431_v31 = vcombine.high %v2183_v63, %v2191_v5 }
 0x355   :  { %5370 = vmatpush1.bf16.msra.mxu1 %v8334_v9  ;;  %5225 = vmatprep.subr.bf16.mxu0 %v8349_v11  ;;  %v1688_v9 = vld [vmem:[#allocation9 + $0x20] sm:$0xff] }
 0x356   :  { %5371 = vmatprep.subr.bf16.mxu1 %v8351_v12  ;;  %v1696_v11 = vld [vmem:[#allocation9 + $0x60] sm:$0xff]  ;;  %v1689_v12 = vld [vmem:[#allocation9 + $0x28] sm:$0xff] }
 0x357   :  { %v7937_v22 = vcombine.high %v1688_v9, %v1696_v11  ;;  %v7936_v14 = vcombine.low %v1688_v9, %v1696_v11  ;;  %v7938_v40 = vcombine.low %v1689_v12, %v1697_v13  ;;  %v1777_v9 = vld [vmem:[#allocation9 + $0x2e8] sm:$0xff] }
 0x358   :  { %5226 = vmatpush1.bf16.msra.mxu0 %v8348_v27  ;;  %v7939_v27 = vcombine.high %v1689_v12, %v1697_v13 }
 0x359   :  { %5372 = vmatpush1.bf16.msra.mxu1 %v8350_v59  ;;  %5227 = vmatprep.subr.bf16.mxu0 %v8365_v23  ;;  %v1704_v59 = vld [vmem:[#allocation9 + $0xa0] sm:$0xff] }
 0x35a   :  { %5373 = vmatprep.subr.bf16.mxu1 %v8367_v30  ;;  %v1712_v23 = vld [vmem:[#allocation9 + $0xe0] sm:$0xff]  ;;  %v1705_v30 = vld [vmem:[#allocation9 + $0xa8] sm:$0xff] }
 0x35b   :  { %v7953_v33 = vcombine.high %v1704_v59, %v1712_v23  ;;  %v7952_v38 = vcombine.low %v1704_v59, %v1712_v23  ;;  %v7954_v42 = vcombine.low %v1705_v30, %v1713_v24  ;;  %v1793_v59 = vld [vmem:[#allocation9 + $0x368] sm:$0xff] }
 0x35c   :  { %5228 = vmatpush1.bf16.msra.mxu0 %v8364_v17  ;;  %v7955_v17 = vcombine.high %v1705_v30, %v1713_v24 }
 0x35d   :  { %5374 = vmatpush1.bf16.msra.mxu1 %v8366_v34  ;;  %5229 = vmatprep.subr.bf16.mxu0 %v8381_v25  ;;  %v1720_v34 = vld [vmem:[#allocation9 + $0x120] sm:$0xff] }
 0x35e   :  { %5375 = vmatprep.subr.bf16.mxu1 %v8383_v26  ;;  %v1728_v25 = vld [vmem:[#allocation9 + $0x160] sm:$0xff]  ;;  %v1721_v26 = vld [vmem:[#allocation9 + $0x128] sm:$0xff] }
 0x35f   :  { %v7969_v56 = vcombine.high %v1720_v34, %v1728_v25  ;;  %v7968_v44 = vcombine.low %v1720_v34, %v1728_v25  ;;  %v7970_v45 = vcombine.low %v1721_v26, %v1729_v28  ;;  %v1809_v34 = vld [vmem:[#allocation9 + $0x3e8] sm:$0xff] }
 0x360   :  { %5230 = vmatpush1.bf16.msra.mxu0 %v8380_v53  ;;  %v7971_v53 = vcombine.high %v1721_v26, %v1729_v28 }
 0x361   :  { %5376 = vmatpush1.bf16.msra.mxu1 %v8382_v43  ;;  %5231 = vmatprep.subr.bf16.mxu0 %v8397_v15  ;;  %v1736_v43 = vld [vmem:[#allocation9 + $0x1a0] sm:$0xff] }
 0x362   :  { %5377 = vmatprep.subr.bf16.mxu1 %v8399_v20  ;;  %v1744_v15 = vld [vmem:[#allocation9 + $0x1e0] sm:$0xff]  ;;  %v1737_v20 = vld [vmem:[#allocation9 + $0x1a8] sm:$0xff] }
 0x363   :  { %v7985_v10 = vcombine.high %v1736_v43, %v1744_v15  ;;  %v7984_v55 = vcombine.low %v1736_v43, %v1744_v15  ;;  %v7986_v63 = vcombine.low %v1737_v20, %v1745_v21  ;;  %v1825_v43 = vld [vmem:[#allocation9 + $0x468] sm:$0xff] }
 0x364   :  { %5232 = vmatpush1.bf16.msra.mxu0 %v8396_v50  ;;  %v7987_v50 = vcombine.high %v1737_v20, %v1745_v21 }
 0x365   :  { %5378 = vmatpush1.bf16.msra.mxu1 %v8398_v54  ;;  %5233 = vmatprep.subr.bf16.mxu0 %v8413_v60  ;;  %v1752_v54 = vld [vmem:[#allocation9 + $0x220] sm:$0xff] }
 0x366   :  { %5379 = vmatprep.subr.bf16.mxu1 %v8415_v7  ;;  %v1760_v60 = vld [vmem:[#allocation9 + $0x260] sm:$0xff]  ;;  %v1753_v7 = vld [vmem:[#allocation9 + $0x228] sm:$0xff] }
 0x367   :  { %v8001_v5 = vcombine.high %v1752_v54, %v1760_v60  ;;  %v8000_v11 = vcombine.low %v1752_v54, %v1760_v60  ;;  %v8002_v12 = vcombine.low %v1753_v7, %v1761_v35  ;;  %v1841_v54 = vld [vmem:[#allocation9 + $0x4e8] sm:$0xff] }
 0x368   :  { %5234 = vmatpush1.bf16.msra.mxu0 %v8412_v6  ;;  %v8003_v6 = vcombine.high %v1753_v7, %v1761_v35 }
 0x369   :  { %5380 = vmatpush1.bf16.msra.mxu1 %v8414_v8  ;;  %5235 = vmatprep.subr.bf16.mxu0 %v8429_v3  ;;  %v1768_v8 = vld [vmem:[#allocation9 + $0x2a0] sm:$0xff] }
 0x36a   :  { %5381 = vmatprep.subr.bf16.mxu1 %v8431_v31  ;;  %v1776_v3 = vld [vmem:[#allocation9 + $0x2e0] sm:$0xff]  ;;  %v1769_v31 = vld [vmem:[#allocation9 + $0x2a8] sm:$0xff] }
 0x36b   :  { %v8017_v13 = vcombine.high %v1768_v8, %v1776_v3  ;;  %v8016_v23 = vcombine.low %v1768_v8, %v1776_v3  ;;  %v8018_v30 = vcombine.low %v1769_v31, %v1777_v9  ;;  %v1857_v8 = vld [vmem:[#allocation9 + $0x568] sm:$0xff] }
 0x36c   :  { %5236 = vmatpush1.bf16.msra.mxu0 %v8428_v19  ;;  %v8019_v19 = vcombine.high %v1769_v31, %v1777_v9 }
 0x36d   :  { %5382 = vmatpush1.bf16.msra.mxu1 %v8430_v29  ;;  %5424 = vmatprep.subr.bf16.mxu0 %v7937_v22  ;;  %v1784_v29 = vld [vmem:[#allocation9 + $0x320] sm:$0xff] }
 0x36e   :  { %5570 = vmatprep.subr.bf16.mxu1 %v7939_v27  ;;  %v1792_v22 = vld [vmem:[#allocation9 + $0x360] sm:$0xff]  ;;  %v1785_v27 = vld [vmem:[#allocation9 + $0x328] sm:$0xff] }
 0x36f   :  { %5238 = vmatmul.mubr.bf16.vlgmr.msra.gmra.mrb[48].mxu0 %v10124_v58  ;;  %v8033_v24 = vcombine.high %v1784_v29, %v1792_v22  ;;  %v8032_v25 = vcombine.low %v1784_v29, %v1792_v22  ;;  %v8034_v26 = vcombine.low %v1785_v27, %v1793_v59  ;;  %v1873_v29 = vld [vmem:[#allocation9 + $0x5e8] sm:$0xff] }
 0x370   :  { %5384 = vmatmul.mubr.bf16.vlgmr.msra.gmra.mrb[48].mxu1 %v10124_v58  ;;  %5247 = vmatprep.mubr.bf16.mxu0 %v10190_v47 }
 0x371   :  { %5393 = vmatprep.mubr.bf16.mxu1 %v10190_v47  ;;  %5425 = vmatpush1.bf16.msra.mxu0 %v7936_v14  ;;  %v8035_v14 = vcombine.high %v1785_v27, %v1793_v59 }
 0x372   :  { %5571 = vmatpush1.bf16.msra.mxu1 %v7938_v40  ;;  %5426 = vmatprep.subr.bf16.mxu0 %v7953_v33  ;;  %v1800_v40 = vld [vmem:[#allocation9 + $0x3a0] sm:$0xff] }
 0x373   :  { %5572 = vmatprep.subr.bf16.mxu1 %v7955_v17  ;;  %v1808_v33 = vld [vmem:[#allocation9 + $0x3e0] sm:$0xff]  ;;  %v1801_v17 = vld [vmem:[#allocation9 + $0x3a8] sm:$0xff] }
 0x374   :  { %v8049_v28 = vcombine.high %v1800_v40, %v1808_v33  ;;  %v8048_v15 = vcombine.low %v1800_v40, %v1808_v33  ;;  %v8050_v20 = vcombine.low %v1801_v17, %v1809_v34  ;;  %v1889_v40 = vld [vmem:[#allocation9 + $0x668] sm:$0xff] }
 0x375   :  { %5427 = vmatpush1.bf16.msra.mxu0 %v7952_v38  ;;  %v8051_v38 = vcombine.high %v1801_v17, %v1809_v34 }
 0x376   :  { %5573 = vmatpush1.bf16.msra.mxu1 %v7954_v42  ;;  %5428 = vmatprep.subr.bf16.mxu0 %v7969_v56  ;;  %v1816_v42 = vld [vmem:[#allocation9 + $0x420] sm:$0xff] }
 0x377   :  { %5248 = vmatmul.mubr.bf16.gmra.mrb[52].mxu0 %v10178_v52  ;;  %5574 = vmatprep.subr.bf16.mxu1 %v7971_v53  ;;  %v1824_v56 = vld [vmem:[#allocation9 + $0x460] sm:$0xff]  ;;  %v1817_v53 = vld [vmem:[#allocation9 + $0x428] sm:$0xff] }
 0x378   :  { %5394 = vmatmul.mubr.bf16.gmra.mrb[52].mxu1 %v10178_v52  ;;  %5257 = vmatprep.mubr.bf16.mxu0 %v10237_v18  ;;  %v8065_v21 = vcombine.high %v1816_v42, %v1824_v56  ;;  %v8064_v60 = vcombine.low %v1816_v42, %v1824_v56  ;;  %v8066_v7 = vcombine.low %v1817_v53, %v1825_v43  ;;  %v1905_v42 = vld [vmem:[#allocation9 + $0x6e8] sm:$0xff] }
 0x379   :  { %5403 = vmatprep.mubr.bf16.mxu1 %v10237_v18  ;;  %5429 = vmatpush1.bf16.msra.mxu0 %v7968_v44  ;;  %v8067_v44 = vcombine.high %v1817_v53, %v1825_v43 }
 0x37a   :  { %5575 = vmatpush1.bf16.msra.mxu1 %v7970_v45  ;;  %5430 = vmatprep.subr.bf16.mxu0 %v7985_v10  ;;  %v1832_v45 = vld [vmem:[#allocation9 + $0x4a0] sm:$0xff] }
 0x37b   :  { %5576 = vmatprep.subr.bf16.mxu1 %v7987_v50  ;;  %v1840_v10 = vld [vmem:[#allocation9 + $0x4e0] sm:$0xff]  ;;  %v1833_v50 = vld [vmem:[#allocation9 + $0x4a8] sm:$0xff] }
 0x37c   :  { %v8081_v35 = vcombine.high %v1832_v45, %v1840_v10  ;;  %v8080_v3 = vcombine.low %v1832_v45, %v1840_v10  ;;  %v8082_v31 = vcombine.low %v1833_v50, %v1841_v54  ;;  %v1921_v45 = vld [vmem:[#allocation9 + $0x768] sm:$0xff] }
 0x37d   :  { %5431 = vmatpush1.bf16.msra.mxu0 %v7984_v55  ;;  %v8083_v55 = vcombine.high %v1833_v50, %v1841_v54 }
 0x37e   :  { %5577 = vmatpush1.bf16.msra.mxu1 %v7986_v63  ;;  %5432 = vmatprep.subr.bf16.mxu0 %v8001_v5  ;;  %v1848_v63 = vld [vmem:[#allocation9 + $0x520] sm:$0xff] }
 0x37f   :  { %5258 = vmatmul.mubr.bf16.gmra.mrb[56].mxu0 %v10229_v32  ;;  %5578 = vmatprep.subr.bf16.mxu1 %v8003_v6  ;;  %v1856_v5 = vld [vmem:[#allocation9 + $0x560] sm:$0xff]  ;;  %v1849_v6 = vld [vmem:[#allocation9 + $0x528] sm:$0xff] }
 0x380   :  { %5404 = vmatmul.mubr.bf16.gmra.mrb[56].mxu1 %v10229_v32  ;;  %5267 = vmatprep.mubr.bf16.mxu0 %v10269_v41  ;;  %v8097_v9 = vcombine.high %v1848_v63, %v1856_v5  ;;  %v8096_v22 = vcombine.low %v1848_v63, %v1856_v5  ;;  %v8098_v27 = vcombine.low %v1849_v6, %v1857_v8  ;;  %v1937_v63 = vld [vmem:[#allocation9 + $0x7e8] sm:$0xff] }
 0x381   :  { %5413 = vmatprep.mubr.bf16.mxu1 %v10269_v41  ;;  %5433 = vmatpush1.bf16.msra.mxu0 %v8000_v11  ;;  %v8099_v11 = vcombine.high %v1849_v6, %v1857_v8 }
 0x382   :  { %5579 = vmatpush1.bf16.msra.mxu1 %v8002_v12  ;;  %5434 = vmatprep.subr.bf16.mxu0 %v8017_v13  ;;  %v1864_v12 = vld [vmem:[#allocation9 + $0x5a0] sm:$0xff] }
 0x383   :  { %5580 = vmatprep.subr.bf16.mxu1 %v8019_v19  ;;  %v1872_v13 = vld [vmem:[#allocation9 + $0x5e0] sm:$0xff]  ;;  %v1865_v19 = vld [vmem:[#allocation9 + $0x5a8] sm:$0xff] }
 0x384   :  { %v8113_v59 = vcombine.high %v1864_v12, %v1872_v13  ;;  %v8112_v33 = vcombine.low %v1864_v12, %v1872_v13  ;;  %v8114_v17 = vcombine.low %v1865_v19, %v1873_v29  ;;  %v1953_v12 = vld [vmem:[#allocation9 + $0x868] sm:$0xff] }
 0x385   :  { %5435 = vmatpush1.bf16.msra.mxu0 %v8016_v23  ;;  %v8115_v23 = vcombine.high %v1865_v19, %v1873_v29 }
 0x386   :  { %5581 = vmatpush1.bf16.msra.mxu1 %v8018_v30  ;;  %5436 = vmatprep.subr.bf16.mxu0 %v8033_v24  ;;  %v1880_v30 = vld [vmem:[#allocation9 + $0x620] sm:$0xff] }
 0x387   :  { %5268 = vmatmul.mubr.bf16.gmra.mrb[60].mxu0 %v10263_v37  ;;  %5582 = vmatprep.subr.bf16.mxu1 %v8035_v14  ;;  %v1888_v24 = vld [vmem:[#allocation9 + $0x660] sm:$0xff]  ;;  %v1881_v14 = vld [vmem:[#allocation9 + $0x628] sm:$0xff] }
 0x388   :  { %5414 = vmatmul.mubr.bf16.gmra.mrb[60].mxu1 %v10263_v37  ;;  %5456 = vmatprep.mubr.bf16.mxu0 %v10128_v61  ;;  %v8129_v34 = vcombine.high %v1880_v30, %v1888_v24  ;;  %v8128_v56 = vcombine.low %v1880_v30, %v1888_v24  ;;  %v8130_v53 = vcombine.low %v1881_v14, %v1889_v40  ;;  %v1969_v30 = vld [vmem:[#allocation9 + $0x8e8] sm:$0xff] }
 0x389   :  { %5437 = vmatpush1.bf16.msra.mxu0 %v8032_v25  ;;  %5602 = vmatprep.mubr.bf16.mxu1 %v10128_v61  ;;  %v8131_v25 = vcombine.high %v1881_v14, %v1889_v40 }
 0x38a   :  { %5583 = vmatpush1.bf16.msra.mxu1 %v8034_v26  ;;  %5438 = vmatprep.subr.bf16.mxu0 %v8049_v28  ;;  %v1896_v26 = vld [vmem:[#allocation9 + $0x6a0] sm:$0xff] }
 0x38b   :  { %5584 = vmatprep.subr.bf16.mxu1 %v8051_v38  ;;  %v1904_v28 = vld [vmem:[#allocation9 + $0x6e0] sm:$0xff]  ;;  %v1897_v38 = vld [vmem:[#allocation9 + $0x6a8] sm:$0xff] }
 0x38c   :  { %v8145_v43 = vcombine.high %v1896_v26, %v1904_v28  ;;  %v8144_v10 = vcombine.low %v1896_v26, %v1904_v28  ;;  %v8146_v50 = vcombine.low %v1897_v38, %v1905_v42  ;;  %v1985_v26 = vld [vmem:[#allocation9 + $0x968] sm:$0xff] }
 0x38d   :  { %5439 = vmatpush1.bf16.msra.mxu0 %v8048_v15  ;;  %v8147_v15 = vcombine.high %v1897_v38, %v1905_v42 }
 0x38e   :  { %5585 = vmatpush1.bf16.msra.mxu1 %v8050_v20  ;;  %5440 = vmatprep.subr.bf16.mxu0 %v8065_v21  ;;  %v1912_v20 = vld [vmem:[#allocation9 + $0x720] sm:$0xff] }
 0x38f   :  { %5586 = vmatprep.subr.bf16.mxu1 %v8067_v44  ;;  %v1920_v21 = vld [vmem:[#allocation9 + $0x760] sm:$0xff]  ;;  %v1913_v44 = vld [vmem:[#allocation9 + $0x728] sm:$0xff] }
 0x390   :  { %v8161_v54 = vcombine.high %v1912_v20, %v1920_v21  ;;  %v8160_v5 = vcombine.low %v1912_v20, %v1920_v21  ;;  %v8162_v6 = vcombine.low %v1913_v44, %v1921_v45  ;;  %v2001_v20 = vld [vmem:[#allocation9 + $0x9e8] sm:$0xff] }
 0x391   :  { %5441 = vmatpush1.bf16.msra.mxu0 %v8064_v60  ;;  %v8163_v60 = vcombine.high %v1913_v44, %v1921_v45 }
 0x392   :  { %5587 = vmatpush1.bf16.msra.mxu1 %v8066_v7  ;;  %5442 = vmatprep.subr.bf16.mxu0 %v8081_v35  ;;  %v1928_v7 = vld [vmem:[#allocation9 + $0x7a0] sm:$0xff] }
 0x393   :  { %5588 = vmatprep.subr.bf16.mxu1 %v8083_v55  ;;  %v1936_v35 = vld [vmem:[#allocation9 + $0x7e0] sm:$0xff]  ;;  %v1929_v55 = vld [vmem:[#allocation9 + $0x7a8] sm:$0xff] }
 0x394   :  { %v8177_v8 = vcombine.high %v1928_v7, %v1936_v35  ;;  %v8176_v13 = vcombine.low %v1928_v7, %v1936_v35  ;;  %v8178_v19 = vcombine.low %v1929_v55, %v1937_v63  ;;  %v2017_v7 = vld [vmem:[#allocation9 + $0xa68] sm:$0xff] }
 0x395   :  { %5443 = vmatpush1.bf16.msra.mxu0 %v8080_v3  ;;  %v8179_v3 = vcombine.high %v1929_v55, %v1937_v63 }
 0x396   :  { %5589 = vmatpush1.bf16.msra.mxu1 %v8082_v31  ;;  %5444 = vmatprep.subr.bf16.mxu0 %v8097_v9  ;;  %v1944_v31 = vld [vmem:[#allocation9 + $0x820] sm:$0xff] }
 0x397   :  { %5590 = vmatprep.subr.bf16.mxu1 %v8099_v11  ;;  %v1952_v9 = vld [vmem:[#allocation9 + $0x860] sm:$0xff]  ;;  %v1945_v11 = vld [vmem:[#allocation9 + $0x828] sm:$0xff] }
 0x398   :  { %v8193_v29 = vcombine.high %v1944_v31, %v1952_v9  ;;  %v8192_v24 = vcombine.low %v1944_v31, %v1952_v9  ;;  %v8194_v14 = vcombine.low %v1945_v11, %v1953_v12  ;;  %v2025_v31 = vld [vmem:[#allocation9 + $0xaa8] sm:$0xff] }
 0x399   :  { %5445 = vmatpush1.bf16.msra.mxu0 %v8096_v22  ;;  %v8195_v22 = vcombine.high %v1945_v11, %v1953_v12  ;;  %v2033_v9 = vld [vmem:[#allocation9 + $0xae8] sm:$0xff] }
 0x39a   :  { %5591 = vmatpush1.bf16.msra.mxu1 %v8098_v27  ;;  %5446 = vmatprep.subr.bf16.mxu0 %v8113_v59  ;;  %v1960_v27 = vld [vmem:[#allocation9 + $0x8a0] sm:$0xff] }
 0x39b   :  { %5592 = vmatprep.subr.bf16.mxu1 %v8115_v23  ;;  %v1968_v59 = vld [vmem:[#allocation9 + $0x8e0] sm:$0xff]  ;;  %v1961_v23 = vld [vmem:[#allocation9 + $0x8a8] sm:$0xff] }
 0x39c   :  { %v8209_v40 = vcombine.high %v1960_v27, %v1968_v59  ;;  %v8208_v28 = vcombine.low %v1960_v27, %v1968_v59  ;;  %v8210_v38 = vcombine.low %v1961_v23, %v1969_v30  ;;  %v8275_v59 = vcombine.high %v2025_v31, %v2033_v9 }
 0x39d   :  { %5447 = vmatpush1.bf16.msra.mxu0 %v8112_v33  ;;  %v8211_v33 = vcombine.high %v1961_v23, %v1969_v30  ;;  %v10346_v23 = vld [vmem:[#allocation9 + $0xb20] sm:$0xff] }
 0x39e   :  { %5593 = vmatpush1.bf16.msra.mxu1 %v8114_v17  ;;  %5448 = vmatprep.subr.bf16.mxu0 %v8129_v34  ;;  %v1976_v17 = vld [vmem:[#allocation9 + $0x920] sm:$0xff] }
 0x39f   :  { %5594 = vmatprep.subr.bf16.mxu1 %v8131_v25  ;;  %v1984_v34 = vld [vmem:[#allocation9 + $0x960] sm:$0xff]  ;;  %v1977_v25 = vld [vmem:[#allocation9 + $0x928] sm:$0xff] }
 0x3a0   :  { %v8225_v42 = vcombine.high %v1976_v17, %v1984_v34  ;;  %v8224_v21 = vcombine.low %v1976_v17, %v1984_v34  ;;  %v8226_v44 = vcombine.low %v1977_v25, %v1985_v26  ;;  %v10348_v30 = vld [vmem:[#allocation9 + $0xb60] sm:$0xff]  ;;  %v10354_v17 = vld [vmem:[#allocation9 + $0xb68] sm:$0xff] }
 0x3a1   :  { %5449 = vmatpush1.bf16.msra.mxu0 %v8128_v56  ;;  %v8227_v56 = vcombine.high %v1977_v25, %v1985_v26 }
 0x3a2   :  { %5595 = vmatpush1.bf16.msra.mxu1 %v8130_v53  ;;  %5450 = vmatprep.subr.bf16.mxu0 %v8145_v43  ;;  %v1992_v53 = vld [vmem:[#allocation9 + $0x9a0] sm:$0xff] }
 0x3a3   :  { %5596 = vmatprep.subr.bf16.mxu1 %v8147_v15  ;;  %v2000_v43 = vld [vmem:[#allocation9 + $0x9e0] sm:$0xff]  ;;  %v1993_v15 = vld [vmem:[#allocation9 + $0x9a8] sm:$0xff] }
 0x3a4   :  { %v8241_v45 = vcombine.high %v1992_v53, %v2000_v43  ;;  %v8240_v35 = vcombine.low %v1992_v53, %v2000_v43  ;;  %v8242_v55 = vcombine.low %v1993_v15, %v2001_v20 }
 0x3a5   :  { %5451 = vmatpush1.bf16.msra.mxu0 %v8144_v10  ;;  %v8243_v10 = vcombine.high %v1993_v15, %v2001_v20 }
 0x3a6   :  { %5597 = vmatpush1.bf16.msra.mxu1 %v8146_v50  ;;  %5452 = vmatprep.subr.bf16.mxu0 %v8161_v54  ;;  %v2008_v50 = vld [vmem:[#allocation9 + $0xa20] sm:$0xff] }
 0x3a7   :  { %5598 = vmatprep.subr.bf16.mxu1 %v8163_v60  ;;  %v2016_v54 = vld [vmem:[#allocation9 + $0xa60] sm:$0xff]  ;;  %v2009_v60 = vld [vmem:[#allocation9 + $0xa28] sm:$0xff] }
 0x3a8   :  { %v8257_v63 = vcombine.high %v2008_v50, %v2016_v54  ;;  %v8256_v11 = vcombine.low %v2008_v50, %v2016_v54  ;;  %v8258_v12 = vcombine.low %v2009_v60, %v2017_v7  ;;  %v8288_v54 = vcombine.low %v10346_v23, %v10348_v30 }
 0x3a9   :  { %5453 = vmatpush1.bf16.msra.mxu0 %v8160_v5  ;;  %v2196_v5 = vld [vmem:[#allocation10] sm:$0xff] }
 0x3aa   :  { %5599 = vmatpush1.bf16.msra.mxu1 %v8162_v6  ;;  %5454 = vmatprep.subr.bf16.mxu0 %v8177_v8  ;;  %v8259_v6 = vcombine.high %v2009_v60, %v2017_v7  ;;  %v2024_v8 = vld [vmem:[#allocation9 + $0xaa0] sm:$0xff] }
 0x3ab   :  { %5600 = vmatprep.subr.bf16.mxu1 %v8179_v3  ;;  %v2032_v3 = vld [vmem:[#allocation9 + $0xae0] sm:$0xff] }
 0x3ac   :  { %v8273_v27 = vcombine.high %v2024_v8, %v2032_v3 }
 0x3ad   :  { %5455 = vmatpush1.bf16.msra.mxu0 %v8176_v13  ;;  %v10334_v13 = vrot.slane %v2196_v5, %v9987_v49 }
 0x3ae   :  { %5601 = vmatpush1.bf16.msra.mxu1 %v8178_v19  ;;  %5497 = vmatprep.subr.bf16.mxu0 %v8193_v29  ;;  %v10337_v19 = vrot.slane %v2196_v5, %v10003_v1  ;;  %v10340_v29 = vrot.slane %v2196_v5, %v9990_v51 }
 0x3af   :  { %5643 = vmatprep.subr.bf16.mxu1 %v8195_v22  ;;  %v10343_v22 = vrot.slane %v2196_v5, %v10006_v4  ;;  %v10379_v5 = vld [vmem:[#allocation9 + $0xba8] sm:$0xff]  ;;  %v2144_v4 = vld [vmem:[#allocation9 + $0xe60] sm:$0xff] }
 0x3b0   :  { %5457 = vmatmul.mubr.bf16.vlgmr.msra.gmra.mrb[64].mxu0 %v10122_v57 }
 0x3b1   :  { %5603 = vmatmul.mubr.bf16.vlgmr.msra.gmra.mrb[64].mxu1 %v10122_v57  ;;  %5466 = vmatprep.mubr.bf16.mxu0 %v10188_v46 }
 0x3b2   :  { %5498 = vmatpush1.bf16.msra.mxu0 %v8192_v24  ;;  %5612 = vmatprep.mubr.bf16.mxu1 %v10188_v46 }
 0x3b3   :  { %5644 = vmatpush1.bf16.msra.mxu1 %v8194_v14  ;;  %5499 = vmatprep.subr.bf16.mxu0 %v8209_v40  ;;  %v8272_v40 = vcombine.low %v2024_v8, %v2032_v3 }
 0x3b4   :  { %5645 = vmatprep.subr.bf16.mxu1 %v8211_v33  ;;  %v10352_v33 = vld [vmem:[#allocation9 + $0xb28] sm:$0xff] }
 0x3b5   :  { %v8291_v60 = vcombine.high %v10352_v33, %v10354_v17 }
 0x3b6   :  { %5500 = vmatpush1.bf16.msra.mxu0 %v8208_v28 }
 0x3b7   :  { %5646 = vmatpush1.bf16.msra.mxu1 %v8210_v38  ;;  %5501 = vmatprep.subr.bf16.mxu0 %v8225_v42  ;;  %v8274_v38 = vcombine.low %v2025_v31, %v2033_v9  ;;  %v10359_v42 = vld [vmem:[#allocation9 + $0xba0] sm:$0xff] }
 0x3b8   :  { %5467 = vmatmul.mubr.bf16.gmra.mrb[68].mxu0 %v10176_v0  ;;  %5647 = vmatprep.subr.bf16.mxu1 %v8227_v56  ;;  %v10361_v56 = vld [vmem:[#allocation9 + $0xbe0] sm:$0xff] }
 0x3b9   :  { %5613 = vmatmul.mubr.bf16.gmra.mrb[68].mxu1 %v10176_v0  ;;  %5476 = vmatprep.mubr.bf16.mxu0 %v10235_v16 }
 0x3ba   :  { %5502 = vmatpush1.bf16.msra.mxu0 %v8224_v21  ;;  %5622 = vmatprep.mubr.bf16.mxu1 %v10235_v16  ;;  %v8289_v21 = vcombine.high %v10346_v23, %v10348_v30 }
 0x3bb   :  { %5648 = vmatpush1.bf16.msra.mxu1 %v8226_v44  ;;  %5503 = vmatprep.subr.bf16.mxu0 %v8241_v45 }
 0x3bc   :  { %5649 = vmatprep.subr.bf16.mxu1 %v8243_v10 }
 0x3be   :  { %5504 = vmatpush1.bf16.msra.mxu0 %v8240_v35 }
 0x3bf   :  { %5650 = vmatpush1.bf16.msra.mxu1 %v8242_v55  ;;  %5505 = vmatprep.subr.bf16.mxu0 %v8257_v63  ;;  %v8290_v55 = vcombine.low %v10352_v33, %v10354_v17  ;;  %v8305_v63 = vcombine.high %v10359_v42, %v10361_v56  ;;  %v2080_v33 = vld [vmem:[#allocation9 + $0xc60] sm:$0xff] }
 0x3c0   :  { %5477 = vmatmul.mubr.bf16.gmra.mrb[72].mxu0 %v10227_v2  ;;  %5651 = vmatprep.subr.bf16.mxu1 %v8259_v6  ;;  %v10381_v6 = vld [vmem:[#allocation9 + $0xbe8] sm:$0xff] }
 0x3c1   :  { %5623 = vmatmul.mubr.bf16.gmra.mrb[72].mxu1 %v10227_v2  ;;  %5486 = vmatprep.mubr.bf16.mxu0 %v10267_v39  ;;  %v4947_v24 = vpop.f32.mrb[32].mxu0  ;;  %v5093_v14 = vpop.f32.mrb[32].mxu1 }
 0x3c2   :  { %5506 = vmatpush1.bf16.msra.mxu0 %v8256_v11  ;;  %5632 = vmatprep.mubr.bf16.mxu1 %v10267_v39  ;;  %v8921_v34 = vadd.f32 %v4947_v24, %v10334_v13  ;;  %v8937_v25 = vadd.f32 %v5093_v14, %v10337_v19  ;;  %v4949_v26 = vpop.f32.mrb[33].mxu0  ;;  %v5095_v28 = vpop.f32.mrb[33].mxu1  ;;  %v8307_v24 = vcombine.high %v10379_v5, %v10381_v6  ;;  %v10390_v14 = vld [vmem:[#allocation9 + $0xc20] sm:$0xff] }
 0x3c3   :  { %5652 = vmatpush1.bf16.msra.mxu1 %v8258_v12  ;;  %v8922_v53 = vadd.f32 %v4949_v26, %v10340_v29  ;;  %v8938_v43 = vadd.f32 %v5095_v28, %v10343_v22  ;;  %5507 = vmatprep.subr.bf16.mxu0 %v8273_v27  ;;  %v4951_v15 = vpop.f32.mrb[34].mxu0  ;;  %v5097_v20 = vpop.f32.mrb[34].mxu1  ;;  %v8304_v26 = vcombine.low %v10359_v42, %v10361_v56  ;;  %v10400_v28 = vld [vmem:[#allocation9 + $0xc28] sm:$0xff] }
 0x3c4   :  { %5653 = vmatprep.subr.bf16.mxu1 %v8275_v59  ;;  %v8923_v44 = vadd.f32 %v4951_v15, %v10334_v13  ;;  %v8939_v45 = vadd.f32 %v5097_v20, %v10337_v19  ;;  %v4953_v10 = vpop.f32.mrb[35].mxu0  ;;  %v5099_v50 = vpop.f32.mrb[35].mxu1  ;;  %v6008_v8 = vmax.f32 %v8921_v34, 0.0  ;;  %v6010_v3 = vmax.f32 %v8937_v25, 0.0 }
 0x3c5   :  { %v8924_v7 = vadd.f32 %v4953_v10, %v10340_v29  ;;  %v8940_v35 = vadd.f32 %v5099_v50, %v10343_v22  ;;  %v6009_v11 = vmax.f32 %v8922_v53, 0.0  ;;  %v6011_v12 = vmax.f32 %v8938_v43, 0.0 }
 0x3c6   :  { %v6024_v31 = vmax.f32 %v8923_v44, 0.0  ;;  %v6026_v9 = vmax.f32 %v8939_v45, 0.0  ;;  %5508 = vmatpush1.bf16.msra.mxu0 %v8272_v40  ;;  %v10407_v44 = vld [vmem:[#allocation9 + $0xca0] sm:$0xff] }
 0x3c7   :  { %5654 = vmatpush1.bf16.msra.mxu1 %v8274_v38  ;;  %v6025_v27 = vmax.f32 %v8924_v7, 0.0  ;;  %v6027_v59 = vmax.f32 %v8940_v35, 0.0  ;;  %5509 = vmatprep.subr.bf16.mxu0 %v8289_v21  ;;  %v2081_v38 = vld [vmem:[#allocation9 + $0xc68] sm:$0xff]  ;;  %v8306_v21 = vcombine.low %v10379_v5, %v10381_v6  ;;  %v10409_v45 = vld [vmem:[#allocation9 + $0xce0] sm:$0xff]  ;;  %v8320_v6 = vcombine.low %v10390_v14, %v2080_v33 }
 0x3c8   :  { %v10383_v23 = vpack.c.bf16 %v6024_v31, %v6008_v8  ;;  %v10385_v30 = vpack.c.bf16 %v6026_v9, %v6010_v3  ;;  %5487 = vmatmul.mubr.bf16.gmra.mrb[76].mxu0 %v10261_v36  ;;  %5655 = vmatprep.subr.bf16.mxu1 %v8291_v60  ;;  %v8337_v31 = vcombine.high %v10407_v44, %v10409_v45  ;;  %v2089_v9 = vld [vmem:[#allocation9 + $0xca8] sm:$0xff] }
 0x3c9   :  { %v10392_v40 = vpack.c.bf16 %v6025_v27, %v6009_v11  ;;  %v10394_v17 = vpack.c.bf16 %v6027_v59, %v6011_v12  ;;  %5633 = vmatmul.mubr.bf16.gmra.mrb[76].mxu1 %v10261_v36  ;;  %5529 = vmatprep.mubr.bf16.mxu0 %v10130_v62  ;;  %v4957_v34 = vpop.f32.mrb[36].mxu0  ;;  %v5103_v25 = vpop.f32.mrb[36].mxu1  ;;  %v2097_v11 = vld [vmem:[#allocation9 + $0xce8] sm:$0xff] }
 0x3ca   :  { %5510 = vmatpush1.bf16.msra.mxu0 %v8288_v54  ;;  %5675 = vmatprep.mubr.bf16.mxu1 %v10130_v62  ;;  %v8925_v53 = vadd.f32 %v4957_v34, %v10334_v13  ;;  %v8941_v43 = vadd.f32 %v5103_v25, %v10337_v19  ;;  %v4959_v15 = vpop.f32.mrb[37].mxu0  ;;  %v5105_v20 = vpop.f32.mrb[37].mxu1  ;;  %v8321_v54 = vcombine.high %v10390_v14, %v2080_v33 }
 0x3cb   :  { %5656 = vmatpush1.bf16.msra.mxu1 %v8290_v55  ;;  %v8926_v42 = vadd.f32 %v4959_v15, %v10340_v29  ;;  %v8942_v56 = vadd.f32 %v5105_v20, %v10343_v22  ;;  %5511 = vmatprep.subr.bf16.mxu0 %v8305_v63  ;;  %v4961_v10 = vpop.f32.mrb[38].mxu0  ;;  %v5107_v50 = vpop.f32.mrb[38].mxu1  ;;  %v8323_v55 = vcombine.high %v10400_v28, %v2081_v38 }
 0x3cc   :  { %5657 = vmatprep.subr.bf16.mxu1 %v8307_v24  ;;  %v8927_v60 = vadd.f32 %v4961_v10, %v10334_v13  ;;  %v8943_v7 = vadd.f32 %v5107_v50, %v10337_v19  ;;  %v4963_v35 = vpop.f32.mrb[39].mxu0  ;;  %v5109_v5 = vpop.f32.mrb[39].mxu1  ;;  %v8322_v63 = vcombine.low %v10400_v28, %v2081_v38  ;;  %v6040_v12 = vmax.f32 %v8925_v53, 0.0  ;;  %v2104_v38 = vld [vmem:[#allocation9 + $0xd20] sm:$0xff] }
 0x3cd   :  { %v8928_v8 = vadd.f32 %v4963_v35, %v10340_v29  ;;  %v8944_v3 = vadd.f32 %v5109_v5, %v10343_v22  ;;  %v6042_v27 = vmax.f32 %v8941_v43, 0.0  ;;  %v6041_v34 = vmax.f32 %v8926_v42, 0.0  ;;  %v2112_v10 = vld [vmem:[#allocation9 + $0xd60] sm:$0xff]  ;;  %v10431_v42 = vld [vmem:[#allocation9 + $0xd28] sm:$0xff] }
 0x3ce   :  { %v6056_v59 = vmax.f32 %v8927_v60, 0.0  ;;  %v6058_v24 = vmax.f32 %v8943_v7, 0.0  ;;  %5512 = vmatpush1.bf16.msra.mxu0 %v8304_v26  ;;  %v6043_v14 = vmax.f32 %v8942_v56, 0.0  ;;  %v8339_v28 = vcombine.high %v2089_v9, %v2097_v11 }
 0x3cf   :  { %5658 = vmatpush1.bf16.msra.mxu1 %v8306_v21  ;;  %v6057_v33 = vmax.f32 %v8928_v8, 0.0  ;;  %v6059_v25 = vmax.f32 %v8944_v3, 0.0  ;;  %5513 = vmatprep.subr.bf16.mxu0 %v8321_v54  ;;  %v2113_v21 = vld [vmem:[#allocation9 + $0xd68] sm:$0xff]  ;;  %v8336_v35 = vcombine.low %v10407_v44, %v10409_v45  ;;  %v8338_v5 = vcombine.low %v2089_v9, %v2097_v11  ;;  %v10439_v8 = vld [vmem:[#allocation9 + $0xde0] sm:$0xff] }
 0x3d0   :  { %v10423_v15 = vpack.c.bf16 %v6056_v59, %v6040_v12  ;;  %v10425_v20 = vpack.c.bf16 %v6058_v24, %v6042_v27  ;;  %5659 = vmatprep.subr.bf16.mxu1 %v8323_v55  ;;  %v10437_v55 = vld [vmem:[#allocation9 + $0xda0] sm:$0xff]  ;;  %v8353_v59 = vcombine.high %v2104_v38, %v2112_v10  ;;  %v8352_v9 = vcombine.low %v2104_v38, %v2112_v10 }
 0x3d1   :  { %v10427_v50 = vpack.c.bf16 %v6057_v33, %v6041_v34  ;;  %v10429_v53 = vpack.c.bf16 %v6059_v25, %v6043_v14  ;;  %v4967_v43 = vpop.f32.mrb[40].mxu0  ;;  %v5113_v26 = vpop.f32.mrb[40].mxu1  ;;  %v8355_v11 = vcombine.high %v10431_v42, %v2113_v21  ;;  %v8354_v33 = vcombine.low %v10431_v42, %v2113_v21  ;;  %v2121_v25 = vld [vmem:[#allocation9 + $0xda8] sm:$0xff]  ;;  %v2136_v21 = vld [vmem:[#allocation9 + $0xe20] sm:$0xff] }
 0x3d2   :  { %5514 = vmatpush1.bf16.msra.mxu0 %v8320_v6  ;;  %v8929_v56 = vadd.f32 %v4967_v43, %v10334_v13  ;;  %v8945_v54 = vadd.f32 %v5113_v26, %v10337_v19  ;;  %v4969_v60 = vpop.f32.mrb[41].mxu0  ;;  %v5115_v7 = vpop.f32.mrb[41].mxu1 }
 0x3d3   :  { %5660 = vmatpush1.bf16.msra.mxu1 %v8322_v63  ;;  %v8930_v3 = vadd.f32 %v4969_v60, %v10340_v29  ;;  %v8946_v12 = vadd.f32 %v5115_v7, %v10343_v22  ;;  %5515 = vmatprep.subr.bf16.mxu0 %v8337_v31  ;;  %v4971_v6 = vpop.f32.mrb[42].mxu0  ;;  %v5117_v27 = vpop.f32.mrb[42].mxu1  ;;  %v8369_v31 = vcombine.high %v10437_v55, %v10439_v8 }
 0x3d4   :  { %5661 = vmatprep.subr.bf16.mxu1 %v8339_v28  ;;  %v8931_v24 = vadd.f32 %v4971_v6, %v10334_v13  ;;  %v8947_v34 = vadd.f32 %v5117_v27, %v10337_v19  ;;  %v4973_v44 = vpop.f32.mrb[43].mxu0  ;;  %v5119_v45 = vpop.f32.mrb[43].mxu1  ;;  %v2129_v28 = vld [vmem:[#allocation9 + $0xde8] sm:$0xff]  ;;  %v6072_v43 = vmax.f32 %v8929_v56, 0.0  ;;  %v6074_v26 = vmax.f32 %v8945_v54, 0.0 }
 0x3d5   :  { %v8932_v63 = vadd.f32 %v4973_v44, %v10340_v29  ;;  %v8948_v14 = vadd.f32 %v5119_v45, %v10343_v22  ;;  %v6073_v6 = vmax.f32 %v8930_v3, 0.0  ;;  %v6075_v38 = vmax.f32 %v8946_v12, 0.0  ;;  %v2137_v3 = vld [vmem:[#allocation9 + $0xe28] sm:$0xff] }
 0x3d6   :  { %v6088_v60 = vmax.f32 %v8931_v24, 0.0  ;;  %v6090_v7 = vmax.f32 %v8947_v34, 0.0  ;;  %5516 = vmatpush1.bf16.msra.mxu0 %v8336_v35  ;;  %v8371_v42 = vcombine.high %v2121_v25, %v2129_v28  ;;  %v2145_v12 = vld [vmem:[#allocation9 + $0xe68] sm:$0xff] }
 0x3d7   :  { %5662 = vmatpush1.bf16.msra.mxu1 %v8338_v5  ;;  %v6089_v10 = vmax.f32 %v8932_v63, 0.0  ;;  %v6091_v27 = vmax.f32 %v8948_v14, 0.0  ;;  %5517 = vmatprep.subr.bf16.mxu0 %v8353_v59  ;;  %v8370_v63 = vcombine.low %v2121_v25, %v2129_v28  ;;  %v2152_v14 = vld [vmem:[#allocation9 + $0xea0] sm:$0xff]  ;;  %v8386_v28 = vcombine.low %v2137_v3, %v2145_v12 }
 0x3d8   :  { %v10451_v44 = vpack.c.bf16 %v6088_v60, %v6072_v43  ;;  %v10453_v45 = vpack.c.bf16 %v6090_v7, %v6074_v26  ;;  %5663 = vmatprep.subr.bf16.mxu1 %v8355_v11  ;;  %v8368_v11 = vcombine.low %v10437_v55, %v10439_v8  ;;  %v2160_v43 = vld [vmem:[#allocation9 + $0xee0] sm:$0xff]  ;;  %v8384_v55 = vcombine.low %v2136_v21, %v2144_v4 }
 0x3d9   :  { %v10455_v51 = vpack.c.bf16 %v6089_v10, %v6073_v6  ;;  %v10457_v56 = vpack.c.bf16 %v6091_v27, %v6075_v38  ;;  %v4977_v54 = vpop.f32.mrb[44].mxu0  ;;  %v5123_v35 = vpop.f32.mrb[44].mxu1  ;;  %v8385_v6 = vcombine.high %v2136_v21, %v2144_v4  ;;  %v8387_v8 = vcombine.high %v2137_v3, %v2145_v12  ;;  %v2168_v21 = vld [vmem:[#allocation9 + $0xf20] sm:$0xff] }
 0x3da   :  { %5518 = vmatpush1.bf16.msra.mxu0 %v8352_v9  ;;  %v8933_v5 = vadd.f32 %v4977_v54, %v10334_v13  ;;  %v8949_v59 = vadd.f32 %v5123_v35, %v10337_v19  ;;  %v4979_v24 = vpop.f32.mrb[45].mxu0  ;;  %v5125_v34 = vpop.f32.mrb[45].mxu1  ;;  %v8401_v35 = vcombine.high %v2152_v14, %v2160_v43  ;;  %v2176_v3 = vld [vmem:[#allocation9 + $0xf60] sm:$0xff] }
 0x3db   :  { %5664 = vmatpush1.bf16.msra.mxu1 %v8354_v33  ;;  %v8934_v26 = vadd.f32 %v4979_v24, %v10340_v29  ;;  %v8950_v60 = vadd.f32 %v5125_v34, %v10343_v22  ;;  %5519 = vmatprep.subr.bf16.mxu0 %v8369_v31  ;;  %v4981_v7 = vpop.f32.mrb[46].mxu0  ;;  %v5127_v9 = vpop.f32.mrb[46].mxu1  ;;  %v2153_v24 = vld [vmem:[#allocation9 + $0xea8] sm:$0xff] }
 0x3dc   :  { %5665 = vmatprep.subr.bf16.mxu1 %v8371_v42  ;;  %v8935_v38 = vadd.f32 %v4981_v7, %v10334_v13  ;;  %v8951_v10 = vadd.f32 %v5127_v9, %v10337_v19  ;;  %v4983_v27 = vpop.f32.mrb[47].mxu0  ;;  %v5129_v54 = vpop.f32.mrb[47].mxu1  ;;  %v2161_v31 = vld [vmem:[#allocation9 + $0xee8] sm:$0xff]  ;;  %v6104_v34 = vmax.f32 %v8933_v5, 0.0  ;;  %v6106_v1 = vmax.f32 %v8949_v59, 0.0 }
 0x3dd   :  { %v8936_v25 = vadd.f32 %v4983_v27, %v10340_v29  ;;  %v8952_v33 = vadd.f32 %v5129_v54, %v10343_v22  ;;  %v6105_v13 = vmax.f32 %v8934_v26, 0.0  ;;  %v6107_v7 = vmax.f32 %v8950_v60, 0.0  ;;  %v2169_v59 = vld [vmem:[#allocation9 + $0xf28] sm:$0xff] }
 0x3de   :  { %v6120_v49 = vmax.f32 %v8935_v38, 0.0  ;;  %v6122_v42 = vmax.f32 %v8951_v10, 0.0  ;;  %5520 = vmatpush1.bf16.msra.mxu0 %v8368_v11  ;;  %v8403_v22 = vcombine.high %v2153_v24, %v2161_v31  ;;  %v2177_v11 = vld [vmem:[#allocation9 + $0xf68] sm:$0xff]  ;;  %v8400_v26 = vcombine.low %v2152_v14, %v2160_v43  ;;  %v1698_v14 = vld [vmem:[#allocation9 + $0x70] sm:$0xff]  ;;  %v1691_v43 = vld [vmem:[#allocation9 + $0x38] sm:$0xff] }
 0x3df   :  { %5666 = vmatpush1.bf16.msra.mxu1 %v8370_v63  ;;  %v6121_v19 = vmax.f32 %v8936_v25, 0.0  ;;  %v6123_v9 = vmax.f32 %v8952_v33, 0.0  ;;  %5521 = vmatprep.subr.bf16.mxu0 %v8385_v6  ;;  %v8402_v63 = vcombine.low %v2153_v24, %v2161_v31  ;;  %v8417_v60 = vcombine.high %v2168_v21, %v2176_v3  ;;  %v2192_v6 = vld [vmem:[#allocation9 + $0xfe0] sm:$0xff]  ;;  %v2185_v38 = vld [vmem:[#allocation9 + $0xfa8] sm:$0xff]  ;;  %v1699_v33 = vld [vmem:[#allocation9 + $0x78] sm:$0xff] }
 0x3e0   :  { %v10469_v4 = vpack.c.bf16 %v6120_v49, %v6104_v34  ;;  %v10471_v29 = vpack.c.bf16 %v6122_v42, %v6106_v1  ;;  %5667 = vmatprep.subr.bf16.mxu1 %v8387_v8  ;;  %v8419_v49 = vcombine.high %v2169_v59, %v2177_v11  ;;  %v2184_v1 = vld [vmem:[#allocation9 + $0xfa0] sm:$0xff]  ;;  %v2193_v10 = vld [vmem:[#allocation9 + $0xfe8] sm:$0xff]  ;;  %v8416_v27 = vcombine.low %v2168_v21, %v2176_v3  ;;  %v1706_v34 = vld [vmem:[#allocation9 + $0xb0] sm:$0xff] }
 0x3e1   :  { %v10473_v12 = vpack.c.bf16 %v6121_v19, %v6105_v13  ;;  %v10475_v5 = vpack.c.bf16 %v6123_v9, %v6107_v7  ;;  %v8418_v54 = vcombine.low %v2169_v59, %v2177_v11  ;;  %v8433_v8 = vcombine.high %v2184_v1, %v2192_v6  ;;  %v1714_v42 = vld [vmem:[#allocation9 + $0xf0] sm:$0xff]  ;;  %v1707_v13 = vld [vmem:[#allocation9 + $0xb8] sm:$0xff] }
 0x3e2   :  { %5522 = vmatpush1.bf16.msra.mxu0 %v8384_v55  ;;  %v8435_v25 = vcombine.high %v2185_v38, %v2193_v10  ;;  %v1690_v55 = vld [vmem:[#allocation9 + $0x30] sm:$0xff]  ;;  %v7943_v31 = vcombine.high %v1691_v43, %v1699_v33  ;;  %v1715_v7 = vld [vmem:[#allocation9 + $0xf8] sm:$0xff]  ;;  %v7942_v9 = vcombine.low %v1691_v43, %v1699_v33 }
 0x3e3   :  { %5668 = vmatpush1.bf16.msra.mxu1 %v8386_v28  ;;  %5523 = vmatprep.subr.bf16.mxu0 %v8401_v35  ;;  %v8432_v28 = vcombine.low %v2184_v1, %v2192_v6  ;;  %v8434_v35 = vcombine.low %v2185_v38, %v2193_v10  ;;  %v7941_v24 = vcombine.high %v1690_v55, %v1698_v14  ;;  %v1722_v3 = vld [vmem:[#allocation9 + $0x130] sm:$0xff]  ;;  %v1723_v11 = vld [vmem:[#allocation9 + $0x138] sm:$0xff] }
 0x3e4   :  { %5669 = vmatprep.subr.bf16.mxu1 %v8403_v22  ;;  %v7940_v19 = vcombine.low %v1690_v55, %v1698_v14  ;;  %v7957_v22 = vcombine.high %v1706_v34, %v1714_v42  ;;  %v7959_v21 = vcombine.high %v1707_v13, %v1715_v7  ;;  %v1730_v59 = vld [vmem:[#allocation9 + $0x170] sm:$0xff]  ;;  %v1739_v10 = vld [vmem:[#allocation9 + $0x1b8] sm:$0xff] }
 0x3e5   :  { %v1738_v6 = vld [vmem:[#allocation9 + $0x1b0] sm:$0xff]  ;;  %v1755_v33 = vld [vmem:[#allocation9 + $0x238] sm:$0xff] }
 0x3e6   :  { %5524 = vmatpush1.bf16.msra.mxu0 %v8400_v26  ;;  %v1731_v26 = vld [vmem:[#allocation9 + $0x178] sm:$0xff]  ;;  %v1746_v38 = vld [vmem:[#allocation9 + $0x1f0] sm:$0xff] }
 0x3e7   :  { %5670 = vmatpush1.bf16.msra.mxu1 %v8402_v63  ;;  %5525 = vmatprep.subr.bf16.mxu0 %v8417_v60  ;;  %v7956_v63 = vcombine.low %v1706_v34, %v1714_v42  ;;  %v7958_v60 = vcombine.low %v1707_v13, %v1715_v7  ;;  %v7975_v1 = vcombine.high %v1723_v11, %v1731_v26  ;;  %v1754_v14 = vld [vmem:[#allocation9 + $0x230] sm:$0xff]  ;;  %v1771_v7 = vld [vmem:[#allocation9 + $0x2b8] sm:$0xff] }
 0x3e8   :  { %5671 = vmatprep.subr.bf16.mxu1 %v8419_v49  ;;  %v7973_v49 = vcombine.high %v1722_v3, %v1730_v59  ;;  %v1762_v43 = vld [vmem:[#allocation9 + $0x270] sm:$0xff] }
 0x3e9   :  { %v1770_v42 = vld [vmem:[#allocation9 + $0x2b0] sm:$0xff] }
 0x3ea   :  { %5526 = vmatpush1.bf16.msra.mxu0 %v8416_v27  ;;  %v1747_v27 = vld [vmem:[#allocation9 + $0x1f8] sm:$0xff]  ;;  %v1778_v13 = vld [vmem:[#allocation9 + $0x2f0] sm:$0xff] }
 0x3eb   :  { %5672 = vmatpush1.bf16.msra.mxu1 %v8418_v54  ;;  %5527 = vmatprep.subr.bf16.mxu0 %v8433_v8  ;;  %v7972_v54 = vcombine.low %v1722_v3, %v1730_v59  ;;  %v7974_v8 = vcombine.low %v1723_v11, %v1731_v26  ;;  %v7991_v55 = vcombine.high %v1739_v10, %v1747_v27  ;;  %v1786_v59 = vld [vmem:[#allocation9 + $0x330] sm:$0xff]  ;;  %v1787_v26 = vld [vmem:[#allocation9 + $0x338] sm:$0xff] }
 0x3ec   :  { %5673 = vmatprep.subr.bf16.mxu1 %v8435_v25  ;;  %v7989_v25 = vcombine.high %v1738_v6, %v1746_v38  ;;  %v1794_v11 = vld [vmem:[#allocation9 + $0x370] sm:$0xff] }
 0x3ee   :  { %5528 = vmatpush1.bf16.msra.mxu0 %v8432_v28  ;;  %v1763_v28 = vld [vmem:[#allocation9 + $0x278] sm:$0xff] }
 0x3ef   :  { %5674 = vmatpush1.bf16.msra.mxu1 %v8434_v35  ;;  %5716 = vmatprep.subr.bf16.mxu0 %v7941_v24  ;;  %v7988_v35 = vcombine.low %v1738_v6, %v1746_v38  ;;  %v7990_v24 = vcombine.low %v1739_v10, %v1747_v27  ;;  %v8007_v34 = vcombine.high %v1755_v33, %v1763_v28  ;;  %v1802_v38 = vld [vmem:[#allocation9 + $0x3b0] sm:$0xff]  ;;  %v1803_v27 = vld [vmem:[#allocation9 + $0x3b8] sm:$0xff] }
 0x3f0   :  { %5862 = vmatprep.subr.bf16.mxu1 %v7943_v31  ;;  %v8005_v31 = vcombine.high %v1754_v14, %v1762_v43  ;;  %v1810_v10 = vld [vmem:[#allocation9 + $0x3f0] sm:$0xff] }
 0x3f1   :  { %5530 = vmatmul.mubr.bf16.vlgmr.msra.gmra.mrb[64].mxu0 %v10124_v58 }
 0x3f2   :  { %5676 = vmatmul.mubr.bf16.vlgmr.msra.gmra.mrb[64].mxu1 %v10124_v58  ;;  %5539 = vmatprep.mubr.bf16.mxu0 %v10190_v47 }
 0x3f3   :  { %5685 = vmatprep.mubr.bf16.mxu1 %v10190_v47  ;;  %5717 = vmatpush1.bf16.msra.mxu0 %v7940_v19  ;;  %v1779_v19 = vld [vmem:[#allocation9 + $0x2f8] sm:$0xff] }
 0x3f4   :  { %5863 = vmatpush1.bf16.msra.mxu1 %v7942_v9  ;;  %5718 = vmatprep.subr.bf16.mxu0 %v7957_v22  ;;  %v8004_v9 = vcombine.low %v1754_v14, %v1762_v43  ;;  %v8006_v22 = vcombine.low %v1755_v33, %v1763_v28  ;;  %v8023_v3 = vcombine.high %v1771_v7, %v1779_v19  ;;  %v1818_v43 = vld [vmem:[#allocation9 + $0x430] sm:$0xff]  ;;  %v1819_v28 = vld [vmem:[#allocation9 + $0x438] sm:$0xff] }
 0x3f5   :  { %5864 = vmatprep.subr.bf16.mxu1 %v7959_v21  ;;  %v8021_v21 = vcombine.high %v1770_v42, %v1778_v13  ;;  %v1826_v33 = vld [vmem:[#allocation9 + $0x470] sm:$0xff] }
 0x3f7   :  { %5719 = vmatpush1.bf16.msra.mxu0 %v7956_v63  ;;  %v1795_v63 = vld [vmem:[#allocation9 + $0x378] sm:$0xff] }
 0x3f8   :  { %5865 = vmatpush1.bf16.msra.mxu1 %v7958_v60  ;;  %5720 = vmatprep.subr.bf16.mxu0 %v7973_v49  ;;  %v8020_v60 = vcombine.low %v1770_v42, %v1778_v13  ;;  %v8022_v49 = vcombine.low %v1771_v7, %v1779_v19  ;;  %v8039_v6 = vcombine.high %v1787_v26, %v1795_v63  ;;  %v1834_v13 = vld [vmem:[#allocation9 + $0x4b0] sm:$0xff]  ;;  %v1835_v19 = vld [vmem:[#allocation9 + $0x4b8] sm:$0xff] }
 0x3f9   :  { %5540 = vmatmul.mubr.bf16.gmra.mrb[68].mxu0 %v10178_v52  ;;  %5866 = vmatprep.subr.bf16.mxu1 %v7975_v1  ;;  %v8037_v1 = vcombine.high %v1786_v59, %v1794_v11  ;;  %v1842_v7 = vld [vmem:[#allocation9 + $0x4f0] sm:$0xff] }
 0x3fa   :  { %5686 = vmatmul.mubr.bf16.gmra.mrb[68].mxu1 %v10178_v52  ;;  %5549 = vmatprep.mubr.bf16.mxu0 %v10237_v18 }
 0x3fb   :  { %5695 = vmatprep.mubr.bf16.mxu1 %v10237_v18  ;;  %5721 = vmatpush1.bf16.msra.mxu0 %v7972_v54  ;;  %v1811_v54 = vld [vmem:[#allocation9 + $0x3f8] sm:$0xff] }
 0x3fc   :  { %5867 = vmatpush1.bf16.msra.mxu1 %v7974_v8  ;;  %5722 = vmatprep.subr.bf16.mxu0 %v7989_v25  ;;  %v8036_v8 = vcombine.low %v1786_v59, %v1794_v11  ;;  %v8038_v25 = vcombine.low %v1787_v26, %v1795_v63  ;;  %v8055_v14 = vcombine.high %v1803_v27, %v1811_v54  ;;  %v1858_v11 = vld [vmem:[#allocation9 + $0x570] sm:$0xff]  ;;  %v1851_v26 = vld [vmem:[#allocation9 + $0x538] sm:$0xff] }
 0x3fd   :  { %5868 = vmatprep.subr.bf16.mxu1 %v7991_v55  ;;  %v8053_v55 = vcombine.high %v1802_v38, %v1810_v10  ;;  %v1859_v63 = vld [vmem:[#allocation9 + $0x578] sm:$0xff] }
 0x3ff   :  { %5723 = vmatpush1.bf16.msra.mxu0 %v7988_v35  ;;  %v1827_v35 = vld [vmem:[#allocation9 + $0x478] sm:$0xff] }
 0x400   :  { %5869 = vmatpush1.bf16.msra.mxu1 %v7990_v24  ;;  %5724 = vmatprep.subr.bf16.mxu0 %v8005_v31  ;;  %v8052_v24 = vcombine.low %v1802_v38, %v1810_v10  ;;  %v8054_v31 = vcombine.low %v1803_v27, %v1811_v54  ;;  %v8071_v42 = vcombine.high %v1819_v28, %v1827_v35  ;;  %v1866_v38 = vld [vmem:[#allocation9 + $0x5b0] sm:$0xff]  ;;  %v1867_v27 = vld [vmem:[#allocation9 + $0x5b8] sm:$0xff] }
 0x401   :  { %5550 = vmatmul.mubr.bf16.gmra.mrb[72].mxu0 %v10229_v32  ;;  %5870 = vmatprep.subr.bf16.mxu1 %v8007_v34  ;;  %v8069_v34 = vcombine.high %v1818_v43, %v1826_v33  ;;  %v1874_v10 = vld [vmem:[#allocation9 + $0x5f0] sm:$0xff]  ;;  %v1875_v54 = vld [vmem:[#allocation9 + $0x5f8] sm:$0xff] }
 0x402   :  { %5696 = vmatmul.mubr.bf16.gmra.mrb[72].mxu1 %v10229_v32  ;;  %5559 = vmatprep.mubr.bf16.mxu0 %v10269_v41 }
 0x403   :  { %5705 = vmatprep.mubr.bf16.mxu1 %v10269_v41  ;;  %5725 = vmatpush1.bf16.msra.mxu0 %v8004_v9  ;;  %v1843_v9 = vld [vmem:[#allocation9 + $0x4f8] sm:$0xff] }
 0x404   :  { %5871 = vmatpush1.bf16.msra.mxu1 %v8006_v22  ;;  %5726 = vmatprep.subr.bf16.mxu0 %v8021_v21  ;;  %v8068_v22 = vcombine.low %v1818_v43, %v1826_v33  ;;  %v8070_v21 = vcombine.low %v1819_v28, %v1827_v35  ;;  %v8087_v59 = vcombine.high %v1835_v19, %v1843_v9  ;;  %v1882_v43 = vld [vmem:[#allocation9 + $0x630] sm:$0xff]  ;;  %v1883_v28 = vld [vmem:[#allocation9 + $0x638] sm:$0xff] }
 0x405   :  { %5872 = vmatprep.subr.bf16.mxu1 %v8023_v3  ;;  %v8085_v3 = vcombine.high %v1834_v13, %v1842_v7  ;;  %v1890_v33 = vld [vmem:[#allocation9 + $0x670] sm:$0xff]  ;;  %v1891_v35 = vld [vmem:[#allocation9 + $0x678] sm:$0xff] }
 0x407   :  { %5727 = vmatpush1.bf16.msra.mxu0 %v8020_v60  ;;  %v8084_v60 = vcombine.low %v1834_v13, %v1842_v7  ;;  %v1898_v13 = vld [vmem:[#allocation9 + $0x6b0] sm:$0xff] }
 0x408   :  { %5873 = vmatpush1.bf16.msra.mxu1 %v8022_v49  ;;  %5728 = vmatprep.subr.bf16.mxu0 %v8037_v1  ;;  %v8086_v49 = vcombine.low %v1835_v19, %v1843_v9  ;;  %v1906_v7 = vld [vmem:[#allocation9 + $0x6f0] sm:$0xff]  ;;  %v1899_v19 = vld [vmem:[#allocation9 + $0x6b8] sm:$0xff] }
 0x409   :  { %5560 = vmatmul.mubr.bf16.gmra.mrb[76].mxu0 %v10263_v37  ;;  %5874 = vmatprep.subr.bf16.mxu1 %v8039_v6  ;;  %v8103_v6 = vcombine.high %v1851_v26, %v1859_v63  ;;  %v1907_v9 = vld [vmem:[#allocation9 + $0x6f8] sm:$0xff] }
 0x40a   :  { %5706 = vmatmul.mubr.bf16.gmra.mrb[76].mxu1 %v10263_v37  ;;  %5748 = vmatprep.mubr.bf16.mxu0 %v10128_v61 }
 0x40b   :  { %5729 = vmatpush1.bf16.msra.mxu0 %v8036_v8  ;;  %5894 = vmatprep.mubr.bf16.mxu1 %v10128_v61  ;;  %v1850_v61 = vld [vmem:[#allocation9 + $0x530] sm:$0xff] }
 0x40c   :  { %5875 = vmatpush1.bf16.msra.mxu1 %v8038_v25  ;;  %5730 = vmatprep.subr.bf16.mxu0 %v8053_v55  ;;  %v8101_v1 = vcombine.high %v1850_v61, %v1858_v11  ;;  %v8100_v8 = vcombine.low %v1850_v61, %v1858_v11  ;;  %v8102_v25 = vcombine.low %v1851_v26, %v1859_v63  ;;  %v1914_v61 = vld [vmem:[#allocation9 + $0x730] sm:$0xff]  ;;  %v1915_v26 = vld [vmem:[#allocation9 + $0x738] sm:$0xff] }
 0x40d   :  { %5876 = vmatprep.subr.bf16.mxu1 %v8055_v14  ;;  %v8117_v55 = vcombine.high %v1866_v38, %v1874_v10  ;;  %v8119_v14 = vcombine.high %v1867_v27, %v1875_v54  ;;  %v1922_v11 = vld [vmem:[#allocation9 + $0x770] sm:$0xff]  ;;  %v1923_v63 = vld [vmem:[#allocation9 + $0x778] sm:$0xff] }
 0x40f   :  { %5731 = vmatpush1.bf16.msra.mxu0 %v8052_v24  ;;  %v8116_v24 = vcombine.low %v1866_v38, %v1874_v10  ;;  %v1930_v38 = vld [vmem:[#allocation9 + $0x7b0] sm:$0xff] }
 0x410   :  { %5877 = vmatpush1.bf16.msra.mxu1 %v8054_v31  ;;  %5732 = vmatprep.subr.bf16.mxu0 %v8069_v34  ;;  %v8118_v31 = vcombine.low %v1867_v27, %v1875_v54  ;;  %v8133_v34 = vcombine.high %v1882_v43, %v1890_v33  ;;  %v1938_v10 = vld [vmem:[#allocation9 + $0x7f0] sm:$0xff]  ;;  %v1931_v27 = vld [vmem:[#allocation9 + $0x7b8] sm:$0xff] }
 0x411   :  { %5878 = vmatprep.subr.bf16.mxu1 %v8071_v42  ;;  %v8135_v42 = vcombine.high %v1883_v28, %v1891_v35  ;;  %v1939_v54 = vld [vmem:[#allocation9 + $0x7f8] sm:$0xff] }
 0x413   :  { %5733 = vmatpush1.bf16.msra.mxu0 %v8068_v22  ;;  %v8132_v22 = vcombine.low %v1882_v43, %v1890_v33  ;;  %v1946_v43 = vld [vmem:[#allocation9 + $0x830] sm:$0xff] }
 0x414   :  { %5879 = vmatpush1.bf16.msra.mxu1 %v8070_v21  ;;  %5734 = vmatprep.subr.bf16.mxu0 %v8085_v3  ;;  %v8134_v21 = vcombine.low %v1883_v28, %v1891_v35  ;;  %v8149_v3 = vcombine.high %v1898_v13, %v1906_v7  ;;  %v1954_v33 = vld [vmem:[#allocation9 + $0x870] sm:$0xff]  ;;  %v1947_v28 = vld [vmem:[#allocation9 + $0x838] sm:$0xff] }
 0x415   :  { %5880 = vmatprep.subr.bf16.mxu1 %v8087_v59  ;;  %v8151_v59 = vcombine.high %v1899_v19, %v1907_v9  ;;  %v1955_v35 = vld [vmem:[#allocation9 + $0x878] sm:$0xff] }
 0x417   :  { %5735 = vmatpush1.bf16.msra.mxu0 %v8084_v60  ;;  %v8148_v60 = vcombine.low %v1898_v13, %v1906_v7  ;;  %v1962_v13 = vld [vmem:[#allocation9 + $0x8b0] sm:$0xff] }
 0x418   :  { %5881 = vmatpush1.bf16.msra.mxu1 %v8086_v49  ;;  %5736 = vmatprep.subr.bf16.mxu0 %v8101_v1  ;;  %v8150_v49 = vcombine.low %v1899_v19, %v1907_v9  ;;  %v8165_v1 = vcombine.high %v1914_v61, %v1922_v11  ;;  %v1970_v7 = vld [vmem:[#allocation9 + $0x8f0] sm:$0xff]  ;;  %v1963_v19 = vld [vmem:[#allocation9 + $0x8b8] sm:$0xff] }
 0x419   :  { %5882 = vmatprep.subr.bf16.mxu1 %v8103_v6  ;;  %v8167_v6 = vcombine.high %v1915_v26, %v1923_v63  ;;  %v1971_v9 = vld [vmem:[#allocation9 + $0x8f8] sm:$0xff] }
 0x41b   :  { %5737 = vmatpush1.bf16.msra.mxu0 %v8100_v8  ;;  %v8164_v8 = vcombine.low %v1914_v61, %v1922_v11  ;;  %v1978_v61 = vld [vmem:[#allocation9 + $0x930] sm:$0xff] }
 0x41c   :  { %5883 = vmatpush1.bf16.msra.mxu1 %v8102_v25  ;;  %5738 = vmatprep.subr.bf16.mxu0 %v8117_v55  ;;  %v8166_v25 = vcombine.low %v1915_v26, %v1923_v63  ;;  %v8181_v55 = vcombine.high %v1930_v38, %v1938_v10  ;;  %v1986_v11 = vld [vmem:[#allocation9 + $0x970] sm:$0xff]  ;;  %v1979_v26 = vld [vmem:[#allocation9 + $0x938] sm:$0xff] }
 0x41d   :  { %5884 = vmatprep.subr.bf16.mxu1 %v8119_v14  ;;  %v8183_v14 = vcombine.high %v1931_v27, %v1939_v54  ;;  %v1987_v63 = vld [vmem:[#allocation9 + $0x978] sm:$0xff] }
 0x41f   :  { %5739 = vmatpush1.bf16.msra.mxu0 %v8116_v24  ;;  %v8180_v24 = vcombine.low %v1930_v38, %v1938_v10  ;;  %v1994_v38 = vld [vmem:[#allocation9 + $0x9b0] sm:$0xff] }
 0x420   :  { %5885 = vmatpush1.bf16.msra.mxu1 %v8118_v31  ;;  %5740 = vmatprep.subr.bf16.mxu0 %v8133_v34  ;;  %v8182_v31 = vcombine.low %v1931_v27, %v1939_v54  ;;  %v8197_v34 = vcombine.high %v1946_v43, %v1954_v33  ;;  %v2002_v10 = vld [vmem:[#allocation9 + $0x9f0] sm:$0xff]  ;;  %v1995_v27 = vld [vmem:[#allocation9 + $0x9b8] sm:$0xff] }
 0x421   :  { %5886 = vmatprep.subr.bf16.mxu1 %v8135_v42  ;;  %v8199_v42 = vcombine.high %v1947_v28, %v1955_v35  ;;  %v2003_v54 = vld [vmem:[#allocation9 + $0x9f8] sm:$0xff] }
 0x423   :  { %5741 = vmatpush1.bf16.msra.mxu0 %v8132_v22  ;;  %v8196_v22 = vcombine.low %v1946_v43, %v1954_v33  ;;  %v2011_v43 = vld [vmem:[#allocation9 + $0xa38] sm:$0xff] }
 0x424   :  { %5887 = vmatpush1.bf16.msra.mxu1 %v8134_v21  ;;  %5742 = vmatprep.subr.bf16.mxu0 %v8149_v3  ;;  %v8198_v21 = vcombine.low %v1947_v28, %v1955_v35  ;;  %v8213_v3 = vcombine.high %v1962_v13, %v1970_v7  ;;  %v2019_v33 = vld [vmem:[#allocation9 + $0xa78] sm:$0xff]  ;;  %v10887_v28 = vsub.s32 4, %v9984_v48  ;;  %v8244_v35 = vcombine.low %v1994_v38, %v2002_v10 }
 0x425   :  { %5888 = vmatprep.subr.bf16.mxu1 %v8151_v59  ;;  %v8215_v59 = vcombine.high %v1963_v19, %v1971_v9 }
 0x427   :  { %5743 = vmatpush1.bf16.msra.mxu0 %v8148_v60  ;;  %v8212_v60 = vcombine.low %v1962_v13, %v1970_v7  ;;  %v8263_v13 = vcombine.high %v2011_v43, %v2019_v33  ;;  %v2026_v7 = vld [vmem:[#allocation9 + $0xab0] sm:$0xff] }
 0x428   :  { %5889 = vmatpush1.bf16.msra.mxu1 %v8150_v49  ;;  %5744 = vmatprep.subr.bf16.mxu0 %v8165_v1  ;;  %v8214_v49 = vcombine.low %v1963_v19, %v1971_v9  ;;  %v8229_v1 = vcombine.high %v1978_v61, %v1986_v11  ;;  %v2034_v19 = vld [vmem:[#allocation9 + $0xaf0] sm:$0xff]  ;;  %v9591_v9 = vld [vmem:[#allocation10] sm:$0xff] }
 0x429   :  { %5890 = vmatprep.subr.bf16.mxu1 %v8167_v6  ;;  %v8231_v6 = vcombine.high %v1979_v26, %v1987_v63 }
 0x42b   :  { %5745 = vmatpush1.bf16.msra.mxu0 %v8164_v8  ;;  %v8230_v8 = vcombine.low %v1979_v26, %v1987_v63  ;;  %v8277_v63 = vcombine.high %v2026_v7, %v2034_v19 }
 0x42c   :  { %5891 = vmatpush1.bf16.msra.mxu1 %v8166_v25  ;;  %5746 = vmatprep.subr.bf16.mxu0 %v8181_v55  ;;  %v8245_v25 = vcombine.high %v1994_v38, %v2002_v10  ;;  %v2010_v55 = vld [vmem:[#allocation9 + $0xa30] sm:$0xff] }
 0x42d   :  { %5892 = vmatprep.subr.bf16.mxu1 %v8183_v14  ;;  %v2018_v14 = vld [vmem:[#allocation9 + $0xa70] sm:$0xff] }
 0x42f   :  { %5747 = vmatpush1.bf16.msra.mxu0 %v8180_v24  ;;  %v10886_v24 = vsub.s32 6, %v9984_v48 }
 0x430   :  { %5893 = vmatpush1.bf16.msra.mxu1 %v8182_v31  ;;  %5789 = vmatprep.subr.bf16.mxu0 %v8197_v34  ;;  %v10885_v31 = vsub.s32 5, %v9984_v48  ;;  %v8246_v34 = vcombine.low %v1995_v27, %v2003_v54 }
 0x431   :  { %5935 = vmatprep.subr.bf16.mxu1 %v8199_v42  ;;  %v8261_v42 = vcombine.high %v2010_v55, %v2018_v14 }
 0x432   :  { %5749 = vmatmul.mubr.bf16.vlgmr.msra.gmra.mrb[80].mxu0 %v10122_v57 }
 0x433   :  { %5895 = vmatmul.mubr.bf16.vlgmr.msra.gmra.mrb[80].mxu1 %v10122_v57  ;;  %5758 = vmatprep.mubr.bf16.mxu0 %v10188_v46  ;;  %v8228_v57 = vcombine.low %v1978_v61, %v1986_v11  ;;  %v10515_v61 = vrot.slane %v9591_v9, %v10885_v31  ;;  %v8262_v11 = vcombine.low %v2011_v43, %v2019_v33 }
 0x434   :  { %5790 = vmatpush1.bf16.msra.mxu0 %v8196_v22  ;;  %5904 = vmatprep.mubr.bf16.mxu1 %v10188_v46  ;;  %v8247_v46 = vcombine.high %v1995_v27, %v2003_v54  ;;  %v10507_v22 = vrot.slane %v9591_v9, %v10887_v28  ;;  %v8276_v54 = vcombine.low %v2026_v7, %v2034_v19 }
 0x435   :  { %5936 = vmatpush1.bf16.msra.mxu1 %v8198_v21  ;;  %5791 = vmatprep.subr.bf16.mxu0 %v8213_v3  ;;  %v2035_v21 = vld [vmem:[#allocation9 + $0xaf8] sm:$0xff]  ;;  %v8260_v3 = vcombine.low %v2010_v55, %v2018_v14 }
 0x436   :  { %5937 = vmatprep.subr.bf16.mxu1 %v8215_v59  ;;  %v10511_v59 = vrot.slane %v9591_v9, %v10886_v24 }
 0x438   :  { %5792 = vmatpush1.bf16.msra.mxu0 %v8212_v60 }
 0x439   :  { %5938 = vmatpush1.bf16.msra.mxu1 %v8214_v49  ;;  %5793 = vmatprep.subr.bf16.mxu0 %v8229_v1  ;;  %v10522_v1 = vld [vmem:[#allocation9 + $0xb30] sm:$0xff] }
 0x43a   :  { %5759 = vmatmul.mubr.bf16.gmra.mrb[84].mxu0 %v10176_v0  ;;  %5939 = vmatprep.subr.bf16.mxu1 %v8231_v6  ;;  %v10524_v6 = vld [vmem:[#allocation9 + $0xb70] sm:$0xff] }
 0x43b   :  { %5905 = vmatmul.mubr.bf16.gmra.mrb[84].mxu1 %v10176_v0  ;;  %5768 = vmatprep.mubr.bf16.mxu0 %v10235_v16  ;;  %v10884_v0 = vsub.s32 7, %v9984_v48  ;;  %v8292_v19 = vcombine.low %v10522_v1, %v10524_v6 }
 0x43c   :  { %5794 = vmatpush1.bf16.msra.mxu0 %v8228_v57  ;;  %5914 = vmatprep.mubr.bf16.mxu1 %v10235_v16  ;;  %v2027_v16 = vld [vmem:[#allocation9 + $0xab8] sm:$0xff] }
 0x43d   :  { %5940 = vmatpush1.bf16.msra.mxu1 %v8230_v8  ;;  %5795 = vmatprep.subr.bf16.mxu0 %v8245_v25  ;;  %v10519_v26 = vrot.slane %v9591_v9, %v10884_v0  ;;  %v8279_v49 = vcombine.high %v2027_v16, %v2035_v21  ;;  %v10529_v57 = vld [vmem:[#allocation9 + $0xb38] sm:$0xff] }
 0x43e   :  { %5941 = vmatprep.subr.bf16.mxu1 %v8247_v46  ;;  %v10531_v8 = vld [vmem:[#allocation9 + $0xb78] sm:$0xff] }
 0x43f   :  { %v8295_v9 = vcombine.high %v10529_v57, %v10531_v8 }
 0x440   :  { %5796 = vmatpush1.bf16.msra.mxu0 %v8244_v35 }
 0x441   :  { %5942 = vmatpush1.bf16.msra.mxu1 %v8246_v34  ;;  %5797 = vmatprep.subr.bf16.mxu0 %v8261_v42  ;;  %v8293_v42 = vcombine.high %v10522_v1, %v10524_v6 }
 0x442   :  { %5769 = vmatmul.mubr.bf16.gmra.mrb[88].mxu0 %v10227_v2  ;;  %5943 = vmatprep.subr.bf16.mxu1 %v8263_v13  ;;  %v5239_v60 = vpop.f32.mrb[48].mxu0 }
 0x443   :  { %5915 = vmatmul.mubr.bf16.gmra.mrb[88].mxu1 %v10227_v2  ;;  %5778 = vmatprep.mubr.bf16.mxu0 %v10267_v39  ;;  %v8953_v38 = vadd.f32 %v5239_v60, %v10507_v22  ;;  %v5385_v10 = vpop.f32.mrb[48].mxu1  ;;  %v5241_v27 = vpop.f32.mrb[49].mxu0  ;;  %v8278_v2 = vcombine.low %v2027_v16, %v2035_v21  ;;  %v10546_v16 = vld [vmem:[#allocation9 + $0xbb0] sm:$0xff]  ;;  %v8294_v60 = vcombine.low %v10529_v57, %v10531_v8 }
 0x444   :  { %5798 = vmatpush1.bf16.msra.mxu0 %v8260_v3  ;;  %5924 = vmatprep.mubr.bf16.mxu1 %v10267_v39  ;;  %v8969_v25 = vadd.f32 %v5385_v10, %v10511_v59  ;;  %v8954_v46 = vadd.f32 %v5241_v27, %v10515_v61  ;;  %v5387_v55 = vpop.f32.mrb[49].mxu1  ;;  %v5243_v14 = vpop.f32.mrb[50].mxu0  ;;  %v10548_v21 = vld [vmem:[#allocation9 + $0xbf0] sm:$0xff]  ;;  %v10555_v10 = vld [vmem:[#allocation9 + $0xbf8] sm:$0xff] }
 0x445   :  { %5944 = vmatpush1.bf16.msra.mxu1 %v8262_v11  ;;  %v8970_v43 = vadd.f32 %v5387_v55, %v10519_v26  ;;  %5799 = vmatprep.subr.bf16.mxu0 %v8277_v63  ;;  %v8955_v33 = vadd.f32 %v5243_v14, %v10507_v22  ;;  %v5389_v35 = vpop.f32.mrb[50].mxu1  ;;  %v5245_v34 = vpop.f32.mrb[51].mxu0  ;;  %v6012_v3 = vmax.f32 %v8953_v38, 0.0 }
 0x446   :  { %5945 = vmatprep.subr.bf16.mxu1 %v8279_v49  ;;  %v8971_v39 = vadd.f32 %v5389_v35, %v10511_v59  ;;  %v8956_v13 = vadd.f32 %v5245_v34, %v10515_v61  ;;  %v5391_v7 = vpop.f32.mrb[51].mxu1  ;;  %v10553_v49 = vld [vmem:[#allocation9 + $0xbb8] sm:$0xff]  ;;  %v6014_v27 = vmax.f32 %v8969_v25, 0.0  ;;  %v6013_v1 = vmax.f32 %v8954_v46, 0.0  ;;  %v10568_v25 = vld [vmem:[#allocation9 + $0xc30] sm:$0xff] }
 0x447   :  { %v6028_v11 = vmax.f32 %v8955_v33, 0.0  ;;  %v8972_v63 = vadd.f32 %v5391_v7, %v10519_v26  ;;  %v6015_v14 = vmax.f32 %v8970_v43, 0.0  ;;  %v8309_v33 = vcombine.high %v10546_v16, %v10548_v21  ;;  %v2082_v46 = vld [vmem:[#allocation9 + $0xc70] sm:$0xff]  ;;  %v2075_v7 = vld [vmem:[#allocation9 + $0xc38] sm:$0xff] }
 0x448   :  { %v6030_v6 = vmax.f32 %v8971_v39, 0.0  ;;  %5800 = vmatpush1.bf16.msra.mxu0 %v8276_v54  ;;  %v6029_v55 = vmax.f32 %v8956_v13, 0.0  ;;  %v8311_v54 = vcombine.high %v10553_v49, %v10555_v10  ;;  %v8308_v13 = vcombine.low %v10546_v16, %v10548_v21 }
 0x449   :  { %v10557_v35 = vpack.c.bf16 %v6028_v11, %v6012_v3  ;;  %5946 = vmatpush1.bf16.msra.mxu1 %v8278_v2  ;;  %v6031_v38 = vmax.f32 %v8972_v63, 0.0  ;;  %5801 = vmatprep.subr.bf16.mxu0 %v8293_v42 }
 0x44a   :  { %v10561_v34 = vpack.c.bf16 %v6030_v6, %v6014_v27  ;;  %v10563_v57 = vpack.c.bf16 %v6029_v55, %v6013_v1  ;;  %5779 = vmatmul.mubr.bf16.gmra.mrb[92].mxu0 %v10261_v36  ;;  %5947 = vmatprep.subr.bf16.mxu1 %v8295_v9  ;;  %v5249_v8 = vpop.f32.mrb[52].mxu0  ;;  %v2083_v9 = vld [vmem:[#allocation9 + $0xc78] sm:$0xff] }
 0x44b   :  { %v10570_v2 = vpack.c.bf16 %v6031_v38, %v6015_v14  ;;  %5925 = vmatmul.mubr.bf16.gmra.mrb[92].mxu1 %v10261_v36  ;;  %5821 = vmatprep.mubr.bf16.mxu0 %v10130_v62  ;;  %v8957_v43 = vadd.f32 %v5249_v8, %v10507_v22  ;;  %v5395_v42 = vpop.f32.mrb[52].mxu1  ;;  %v5251_v39 = vpop.f32.mrb[53].mxu0  ;;  %v8310_v36 = vcombine.low %v10553_v49, %v10555_v10  ;;  %v10588_v10 = vld [vmem:[#allocation9 + $0xcb0] sm:$0xff] }
 0x44c   :  { %5802 = vmatpush1.bf16.msra.mxu0 %v8292_v19  ;;  %5967 = vmatprep.mubr.bf16.mxu1 %v10130_v62  ;;  %v8973_v3 = vadd.f32 %v5395_v42, %v10511_v59  ;;  %v8958_v11 = vadd.f32 %v5251_v39, %v10515_v61  ;;  %v5397_v63 = vpop.f32.mrb[53].mxu1  ;;  %v5253_v27 = vpop.f32.mrb[54].mxu0  ;;  %v8325_v19 = vcombine.high %v10568_v25, %v2082_v46 }
 0x44d   :  { %5948 = vmatpush1.bf16.msra.mxu1 %v8294_v60  ;;  %v8974_v1 = vadd.f32 %v5397_v63, %v10519_v26  ;;  %5803 = vmatprep.subr.bf16.mxu0 %v8309_v33  ;;  %v8959_v16 = vadd.f32 %v5253_v27, %v10507_v22  ;;  %v5399_v21 = vpop.f32.mrb[54].mxu1  ;;  %v5255_v6 = vpop.f32.mrb[55].mxu0  ;;  %v8324_v38 = vcombine.low %v10568_v25, %v2082_v46  ;;  %v2098_v60 = vld [vmem:[#allocation9 + $0xcf0] sm:$0xff]  ;;  %v6044_v8 = vmax.f32 %v8957_v43, 0.0  ;;  %v2091_v63 = vld [vmem:[#allocation9 + $0xcb8] sm:$0xff] }
 0x44e   :  { %5949 = vmatprep.subr.bf16.mxu1 %v8311_v54  ;;  %v8975_v62 = vadd.f32 %v5399_v21, %v10511_v59  ;;  %v8960_v55 = vadd.f32 %v5255_v6, %v10515_v61  ;;  %v5401_v14 = vpop.f32.mrb[55].mxu1  ;;  %v8327_v49 = vcombine.high %v2075_v7, %v2083_v9  ;;  %v8326_v39 = vcombine.low %v2075_v7, %v2083_v9  ;;  %v2099_v27 = vld [vmem:[#allocation9 + $0xcf8] sm:$0xff] }
 0x44f   :  { %v6060_v33 = vmax.f32 %v8959_v16, 0.0  ;;  %v8976_v42 = vadd.f32 %v5401_v14, %v10519_v26  ;;  %v6046_v0 = vmax.f32 %v8973_v3, 0.0  ;;  %v6045_v54 = vmax.f32 %v8958_v11, 0.0  ;;  %v2106_v3 = vld [vmem:[#allocation9 + $0xd30] sm:$0xff]  ;;  %v2115_v14 = vld [vmem:[#allocation9 + $0xd78] sm:$0xff] }
 0x450   :  { %v6062_v31 = vmax.f32 %v8975_v62, 0.0  ;;  %5804 = vmatpush1.bf16.msra.mxu0 %v8308_v13  ;;  %v6061_v21 = vmax.f32 %v8960_v55, 0.0  ;;  %v6047_v6 = vmax.f32 %v8974_v1, 0.0  ;;  %v8341_v46 = vcombine.high %v10588_v10, %v2098_v60  ;;  %v2114_v11 = vld [vmem:[#allocation9 + $0xd70] sm:$0xff] }
 0x451   :  { %v10591_v24 = vpack.c.bf16 %v6060_v33, %v6044_v8  ;;  %5950 = vmatpush1.bf16.msra.mxu1 %v8310_v36  ;;  %v6063_v25 = vmax.f32 %v8976_v42, 0.0  ;;  %5805 = vmatprep.subr.bf16.mxu0 %v8325_v19  ;;  %v8343_v9 = vcombine.high %v2091_v63, %v2099_v27  ;;  %v2107_v36 = vld [vmem:[#allocation9 + $0xd38] sm:$0xff]  ;;  %v8342_v8 = vcombine.low %v2091_v63, %v2099_v27 }
 0x452   :  { %v10594_v43 = vpack.c.bf16 %v6062_v31, %v6046_v0  ;;  %v10596_v16 = vpack.c.bf16 %v6061_v21, %v6045_v54  ;;  %5951 = vmatprep.subr.bf16.mxu1 %v8327_v49  ;;  %v5259_v7 = vpop.f32.mrb[56].mxu0  ;;  %v8340_v49 = vcombine.low %v10588_v10, %v2098_v60  ;;  %v8359_v28 = vcombine.high %v2107_v36, %v2115_v14  ;;  %v10608_v10 = vld [vmem:[#allocation9 + $0xdb0] sm:$0xff] }
 0x453   :  { %10895 = vst [vmem:[#allocation25_spill] sm:$0xff] %v10591_v24  ;;  %v10598_v62 = vpack.c.bf16 %v6063_v25, %v6047_v6  ;;  %v8961_v13 = vadd.f32 %v5259_v7, %v10507_v22  ;;  %v5405_v1 = vpop.f32.mrb[56].mxu1  ;;  %v5261_v55 = vpop.f32.mrb[57].mxu0  ;;  %v8357_v25 = vcombine.high %v2106_v3, %v2114_v11  ;;  %v2130_v60 = vld [vmem:[#allocation9 + $0xdf0] sm:$0xff] }
 0x454   :  { %10896 = vst [vmem:[#allocation26_spill] sm:$0xff] %v10594_v43  ;;  %5806 = vmatpush1.bf16.msra.mxu0 %v8324_v38  ;;  %v8977_v19 = vadd.f32 %v5405_v1, %v10511_v59  ;;  %v8962_v31 = vadd.f32 %v5261_v55, %v10515_v61  ;;  %v5407_v0 = vpop.f32.mrb[57].mxu1  ;;  %v5263_v33 = vpop.f32.mrb[58].mxu0  ;;  %v8356_v55 = vcombine.low %v2106_v3, %v2114_v11 }
 0x455   :  { %5952 = vmatpush1.bf16.msra.mxu1 %v8326_v39  ;;  %v8978_v42 = vadd.f32 %v5407_v0, %v10519_v26  ;;  %5807 = vmatprep.subr.bf16.mxu0 %v8341_v46  ;;  %v8963_v54 = vadd.f32 %v5263_v33, %v10507_v22  ;;  %v5409_v21 = vpop.f32.mrb[58].mxu1  ;;  %v5265_v6 = vpop.f32.mrb[59].mxu0  ;;  %v6076_v39 = vmax.f32 %v8961_v13, 0.0  ;;  %v8358_v46 = vcombine.low %v2107_v36, %v2115_v14  ;;  %v2123_v0 = vld [vmem:[#allocation9 + $0xdb8] sm:$0xff] }
 0x456   :  { %5953 = vmatprep.subr.bf16.mxu1 %v8343_v9  ;;  %v8979_v38 = vadd.f32 %v5409_v21, %v10511_v59  ;;  %v8964_v7 = vadd.f32 %v5265_v6, %v10515_v61  ;;  %v5411_v1 = vpop.f32.mrb[59].mxu1  ;;  %v2131_v33 = vld [vmem:[#allocation9 + $0xdf8] sm:$0xff]  ;;  %v6078_v48 = vmax.f32 %v8977_v19, 0.0  ;;  %v6077_v43 = vmax.f32 %v8962_v31, 0.0  ;;  %v2138_v19 = vld [vmem:[#allocation9 + $0xe30] sm:$0xff] }
 0x457   :  { %v6092_v63 = vmax.f32 %v8963_v54, 0.0  ;;  %v8980_v27 = vadd.f32 %v5411_v1, %v10519_v26  ;;  %v6079_v24 = vmax.f32 %v8978_v42, 0.0  ;;  %v8373_v11 = vcombine.high %v10608_v10, %v2130_v60  ;;  %v2146_v31 = vld [vmem:[#allocation9 + $0xe70] sm:$0xff]  ;;  %v2147_v1 = vld [vmem:[#allocation9 + $0xe78] sm:$0xff] }
 0x458   :  { %v6094_v9 = vmax.f32 %v8979_v38, 0.0  ;;  %5808 = vmatpush1.bf16.msra.mxu0 %v8340_v49  ;;  %v6093_v21 = vmax.f32 %v8964_v7, 0.0  ;;  %v8375_v14 = vcombine.high %v2123_v0, %v2131_v33 }
 0x459   :  { %v10611_v6 = vpack.c.bf16 %v6092_v63, %v6076_v39  ;;  %5954 = vmatpush1.bf16.msra.mxu1 %v8342_v8  ;;  %v6095_v3 = vmax.f32 %v8980_v27, 0.0  ;;  %5809 = vmatprep.subr.bf16.mxu0 %v8357_v25  ;;  %v2139_v8 = vld [vmem:[#allocation9 + $0xe38] sm:$0xff]  ;;  %v8374_v39 = vcombine.low %v2123_v0, %v2131_v33 }
 0x45a   :  { %v10614_v13 = vpack.c.bf16 %v6094_v9, %v6078_v48  ;;  %v10616_v54 = vpack.c.bf16 %v6093_v21, %v6077_v43  ;;  %5955 = vmatprep.subr.bf16.mxu1 %v8359_v28  ;;  %v5269_v36 = vpop.f32.mrb[60].mxu0  ;;  %v8372_v28 = vcombine.low %v10608_v10, %v2130_v60  ;;  %v2154_v10 = vld [vmem:[#allocation9 + $0xeb0] sm:$0xff] }
 0x45b   :  { %10897 = vst [vmem:[#allocation27_spill] sm:$0xff] %v10611_v6  ;;  %v10618_v38 = vpack.c.bf16 %v6095_v3, %v6079_v24  ;;  %v8965_v49 = vadd.f32 %v5269_v36, %v10507_v22  ;;  %v5415_v42 = vpop.f32.mrb[60].mxu1  ;;  %v5271_v7 = vpop.f32.mrb[61].mxu0  ;;  %v8389_v3 = vcombine.high %v2138_v19, %v2146_v31  ;;  %v2162_v60 = vld [vmem:[#allocation9 + $0xef0] sm:$0xff] }
 0x45c   :  { %10898 = vst [vmem:[#allocation28_spill] sm:$0xff] %v10614_v13  ;;  %5810 = vmatpush1.bf16.msra.mxu0 %v8356_v55  ;;  %v8981_v25 = vadd.f32 %v5415_v42, %v10511_v59  ;;  %v8966_v48 = vadd.f32 %v5271_v7, %v10515_v61  ;;  %v5417_v43 = vpop.f32.mrb[61].mxu1  ;;  %v5273_v63 = vpop.f32.mrb[62].mxu0  ;;  %v8388_v7 = vcombine.low %v2138_v19, %v2146_v31 }
 0x45d   :  { %10899 = vst [vmem:[#allocation29_spill] sm:$0xff] %v10618_v38  ;;  %5956 = vmatpush1.bf16.msra.mxu1 %v8358_v46  ;;  %v8982_v24 = vadd.f32 %v5417_v43, %v10519_v26  ;;  %5811 = vmatprep.subr.bf16.mxu0 %v8373_v11  ;;  %v8967_v27 = vadd.f32 %v5273_v63, %v10507_v22  ;;  %v5419_v9 = vpop.f32.mrb[62].mxu1  ;;  %v5275_v21 = vpop.f32.mrb[63].mxu0  ;;  %v6108_v0 = vmax.f32 %v8965_v49, 0.0  ;;  %v2155_v43 = vld [vmem:[#allocation9 + $0xeb8] sm:$0xff] }
 0x45e   :  { %5957 = vmatprep.subr.bf16.mxu1 %v8375_v14  ;;  %v8983_v55 = vadd.f32 %v5419_v9, %v10511_v59  ;;  %v8968_v36 = vadd.f32 %v5275_v21, %v10515_v61  ;;  %v5421_v42 = vpop.f32.mrb[63].mxu1  ;;  %v8391_v13 = vcombine.high %v2139_v8, %v2147_v1  ;;  %v8390_v11 = vcombine.low %v2139_v8, %v2147_v1  ;;  %v2163_v22 = vld [vmem:[#allocation9 + $0xef8] sm:$0xff]  ;;  %v2170_v8 = vld [vmem:[#allocation9 + $0xf30] sm:$0xff] }
 0x45f   :  { %v6124_v46 = vmax.f32 %v8967_v27, 0.0  ;;  %v8984_v33 = vadd.f32 %v5421_v42, %v10519_v26  ;;  %v6110_v63 = vmax.f32 %v8981_v25, 0.0  ;;  %v6109_v6 = vmax.f32 %v8966_v48, 0.0  ;;  %v2178_v1 = vld [vmem:[#allocation9 + $0xf70] sm:$0xff]  ;;  %v2171_v48 = vld [vmem:[#allocation9 + $0xf38] sm:$0xff] }
 0x460   :  { %v6126_v38 = vmax.f32 %v8983_v55, 0.0  ;;  %5812 = vmatpush1.bf16.msra.mxu0 %v8372_v28  ;;  %v6125_v14 = vmax.f32 %v8968_v36, 0.0  ;;  %v6111_v59 = vmax.f32 %v8982_v24, 0.0  ;;  %v8405_v19 = vcombine.high %v2154_v10, %v2162_v60  ;;  %v2179_v28 = vld [vmem:[#allocation9 + $0xf78] sm:$0xff] }
 0x461   :  { %v10629_v9 = vpack.c.bf16 %v6124_v46, %v6108_v0  ;;  %5958 = vmatpush1.bf16.msra.mxu1 %v8374_v39  ;;  %v6127_v61 = vmax.f32 %v8984_v33, 0.0  ;;  %5813 = vmatprep.subr.bf16.mxu0 %v8389_v3  ;;  %v8407_v26 = vcombine.high %v2155_v43, %v2163_v22  ;;  %v8404_v24 = vcombine.low %v2154_v10, %v2162_v60  ;;  %v2194_v3 = vld [vmem:[#allocation9 + $0xff0] sm:$0xff]  ;;  %v2195_v55 = vld [vmem:[#allocation9 + $0xff8] sm:$0xff] }
 0x462   :  { %v10631_v31 = vpack.c.bf16 %v6126_v38, %v6110_v63  ;;  %v10633_v49 = vpack.c.bf16 %v6125_v14, %v6109_v6  ;;  %5959 = vmatprep.subr.bf16.mxu1 %v8391_v13  ;;  %v8406_v39 = vcombine.low %v2155_v43, %v2163_v22  ;;  %v8421_v27 = vcombine.high %v2170_v8, %v2178_v1  ;;  %v2186_v38 = vld [vmem:[#allocation9 + $0xfb0] sm:$0xff]  ;;  %v2187_v6 = vld [vmem:[#allocation9 + $0xfb8] sm:$0xff] }
 0x463   :  { %v10635_v25 = vpack.c.bf16 %v6127_v61, %v6111_v59  ;;  %v8423_v21 = vcombine.high %v2171_v48, %v2179_v28  ;;  %v8420_v13 = vcombine.low %v2170_v8, %v2178_v1  ;;  %v8422_v36 = vcombine.low %v2171_v48, %v2179_v28  ;;  %v9463_v60 = vld [vmem:[#allocation12 + $0x40] sm:$0xff]   ;;  %v9467_v43 = vld [vmem:[#allocation12 + $0x48] sm:$0xff]   ;;  %v9471_v59 = vld [vmem:[#allocation12 + $0x50] sm:$0xff]  }
 0x464   :  { %5814 = vmatpush1.bf16.msra.mxu0 %v8388_v7  ;;  %v8437_v42 = vcombine.high %v2186_v38, %v2194_v3  ;;  %v8439_v0 = vcombine.high %v2187_v6, %v2195_v55  ;;  %v8436_v7 = vcombine.low %v2186_v38, %v2194_v3  ;;  %v8438_v10 = vcombine.low %v2187_v6, %v2195_v55  ;;  %v9464_v46 = vld [vmem:[#allocation12 + $0xc0] sm:$0xff]   ;;  %v9468_v22 = vld [vmem:[#allocation12 + $0xc8] sm:$0xff]   ;;  %v9472_v61 = vld [vmem:[#allocation12 + $0xd0] sm:$0xff]  }
 0x465   :  { %5960 = vmatpush1.bf16.msra.mxu1 %v8390_v11  ;;  %5815 = vmatprep.subr.bf16.mxu0 %v8405_v19  ;;  %v9465_v33 = vld [vmem:[#allocation12] sm:$0xff]   ;;  %v9469_v63 = vld [vmem:[#allocation12 + $0x8] sm:$0xff]   ;;  %v9473_v19 = vld [vmem:[#allocation12 + $0x10] sm:$0xff]  }
 0x466   :  { %5961 = vmatprep.subr.bf16.mxu1 %v8407_v26  ;;  %v9466_v11 = vld [vmem:[#allocation12 + $0x80] sm:$0xff]   ;;  %v9470_v14 = vld [vmem:[#allocation12 + $0x88] sm:$0xff]   ;;  %v9474_v26 = vld [vmem:[#allocation12 + $0x90] sm:$0xff]  }
 0x467   :  { %v9475_v8 = vld [vmem:[#allocation12 + $0x58] sm:$0xff]   ;;  %v9479_v48 = vld [vmem:[#allocation12 + $0x60] sm:$0xff]   ;;  %v9487_v38 = vld [vmem:[#allocation12 + $0x70] sm:$0xff]  }
 0x468   :  { %5816 = vmatpush1.bf16.msra.mxu0 %v8404_v24  ;;  %v9478_v1 = vld [vmem:[#allocation12 + $0x98] sm:$0xff]   ;;  %v9480_v28 = vld [vmem:[#allocation12 + $0xe0] sm:$0xff]   ;;  %v9488_v3 = vld [vmem:[#allocation12 + $0xf0] sm:$0xff]  }
 0x469   :  { %5962 = vmatpush1.bf16.msra.mxu1 %v8406_v39  ;;  %5817 = vmatprep.subr.bf16.mxu0 %v8421_v27  ;;  %v9481_v24 = vld [vmem:[#allocation12 + $0x20] sm:$0xff]   ;;  %v9483_v27 = vld [vmem:[#allocation12 + $0x68] sm:$0xff]   ;;  %v9489_v6 = vld [vmem:[#allocation12 + $0x30] sm:$0xff]  }
 0x46a   :  { %5963 = vmatprep.subr.bf16.mxu1 %v8423_v21  ;;  %v9482_v39 = vld [vmem:[#allocation12 + $0xa0] sm:$0xff]   ;;  %v9486_v21 = vld [vmem:[#allocation12 + $0xa8] sm:$0xff]   ;;  %v9490_v55 = vld [vmem:[#allocation12 + $0xb0] sm:$0xff]  }
 0x46c   :  { %5818 = vmatpush1.bf16.msra.mxu0 %v8420_v13  ;;  %v9491_v13 = vld [vmem:[#allocation12 + $0x78] sm:$0xff]  }
 0x46d   :  { %5964 = vmatpush1.bf16.msra.mxu1 %v8422_v36  ;;  %5819 = vmatprep.subr.bf16.mxu0 %v8437_v42  ;;  %v9494_v36 = vld [vmem:[#allocation12 + $0xb8] sm:$0xff]   ;;  %v9495_v42 = vld [vmem:[#allocation12 + $0x140] sm:$0xff]  }
 0x46e   :  { %5965 = vmatprep.subr.bf16.mxu1 %v8439_v0  ;;  %v9496_v0 = vld [vmem:[#allocation12 + $0x1c0] sm:$0xff]  }
 0x470   :  { %5820 = vmatpush1.bf16.msra.mxu0 %v8436_v7  ;;  %v9497_v7 = vld [vmem:[#allocation12 + $0x100] sm:$0xff]  }
 0x471   :  { %5966 = vmatpush1.bf16.msra.mxu1 %v8438_v10  ;;  %8569 = vmatprep.subr.bf16.mxu0 %v9463_v60  ;;  %v9498_v10 = vld [vmem:[#allocation12 + $0x180] sm:$0xff]   ;;  %v9499_v60 = vld [vmem:[#allocation12 + $0x148] sm:$0xff]  }
 0x472   :  { %8609 = vmatprep.subr.bf16.mxu1 %v9464_v46  ;;  %v9503_v46 = vld [vmem:[#allocation12 + $0x150] sm:$0xff]  }
 0x473   :  { %5822 = vmatmul.mubr.bf16.vlgmr.msra.gmra.mrb[80].mxu0 %v10124_v58 }
 0x474   :  { %5968 = vmatmul.mubr.bf16.vlgmr.msra.gmra.mrb[80].mxu1 %v10124_v58  ;;  %5831 = vmatprep.mubr.bf16.mxu0 %v10190_v47  ;;  %v9476_v58 = vld [vmem:[#allocation12 + $0xd8] sm:$0xff]  }
 0x475   :  { %5977 = vmatprep.mubr.bf16.mxu1 %v10190_v47  ;;  %8570 = vmatpush3.bf16.msra.mxu0 %v9465_v33  ;;  %v9477_v47 = vld [vmem:[#allocation12 + $0x18] sm:$0xff]   ;;  %v9504_v33 = vld [vmem:[#allocation12 + $0x1d0] sm:$0xff]  }
 0x476   :  { %8610 = vmatpush3.bf16.msra.mxu1 %v9466_v11  ;;  %8571 = vmatprep.subr.bf16.mxu0 %v9467_v43  ;;  %v9505_v11 = vld [vmem:[#allocation12 + $0x110] sm:$0xff]   ;;  %v9507_v43 = vld [vmem:[#allocation12 + $0x158] sm:$0xff]  }
 0x477   :  { %8611 = vmatprep.subr.bf16.mxu1 %v9468_v22  ;;  %v9511_v22 = vld [vmem:[#allocation12 + $0x160] sm:$0xff]  }
 0x479   :  { %8572 = vmatpush3.bf16.msra.mxu0 %v9469_v63  ;;  %v9512_v63 = vld [vmem:[#allocation12 + $0x1e0] sm:$0xff]  }
 0x47a   :  { %8612 = vmatpush3.bf16.msra.mxu1 %v9470_v14  ;;  %8573 = vmatprep.subr.bf16.mxu0 %v9471_v59  ;;  %v9513_v14 = vld [vmem:[#allocation12 + $0x120] sm:$0xff]   ;;  %v9515_v59 = vld [vmem:[#allocation12 + $0x168] sm:$0xff]  }
 0x47b   :  { %5832 = vmatmul.mubr.bf16.gmra.mrb[84].mxu0 %v10178_v52  ;;  %8613 = vmatprep.subr.bf16.mxu1 %v9472_v61  ;;  %v9519_v61 = vld [vmem:[#allocation12 + $0x170] sm:$0xff]  }
 0x47c   :  { %5978 = vmatmul.mubr.bf16.gmra.mrb[84].mxu1 %v10178_v52  ;;  %5841 = vmatprep.mubr.bf16.mxu0 %v10237_v18  ;;  %v9484_v52 = vld [vmem:[#allocation12 + $0xe8] sm:$0xff]  }
 0x47d   :  { %5987 = vmatprep.mubr.bf16.mxu1 %v10237_v18  ;;  %8574 = vmatpush3.bf16.msra.mxu0 %v9473_v19  ;;  %v9485_v18 = vld [vmem:[#allocation12 + $0x28] sm:$0xff]   ;;  %v9520_v19 = vld [vmem:[#allocation12 + $0x1f0] sm:$0xff]  }
 0x47e   :  { %8614 = vmatpush3.bf16.msra.mxu1 %v9474_v26  ;;  %8575 = vmatprep.subr.bf16.mxu0 %v9475_v8  ;;  %v9521_v26 = vld [vmem:[#allocation12 + $0x130] sm:$0xff]   ;;  %v9523_v8 = vld [vmem:[#allocation12 + $0x178] sm:$0xff]  }
 0x47f   :  { %8615 = vmatprep.subr.bf16.mxu1 %v9476_v58  ;;  %v9527_v58 = vld [vmem:[#allocation12 + $0x240] sm:$0xff]  }
 0x481   :  { %8576 = vmatpush3.bf16.msra.mxu0 %v9477_v47  ;;  %v9528_v47 = vld [vmem:[#allocation12 + $0x2c0] sm:$0xff]  }
 0x482   :  { %8616 = vmatpush3.bf16.msra.mxu1 %v9478_v1  ;;  %8577 = vmatprep.subr.bf16.mxu0 %v9479_v48  ;;  %v9530_v1 = vld [vmem:[#allocation12 + $0x280] sm:$0xff]   ;;  %v9531_v48 = vld [vmem:[#allocation12 + $0x248] sm:$0xff]  }
 0x483   :  { %5842 = vmatmul.mubr.bf16.gmra.mrb[88].mxu0 %v10229_v32  ;;  %8617 = vmatprep.subr.bf16.mxu1 %v9480_v28  ;;  %v9535_v28 = vld [vmem:[#allocation12 + $0x250] sm:$0xff]  }
 0x484   :  { %5988 = vmatmul.mubr.bf16.gmra.mrb[88].mxu1 %v10229_v32  ;;  %5851 = vmatprep.mubr.bf16.mxu0 %v10269_v41  ;;  %v9492_v32 = vld [vmem:[#allocation12 + $0xf8] sm:$0xff]  }
 0x485   :  { %5997 = vmatprep.mubr.bf16.mxu1 %v10269_v41  ;;  %8578 = vmatpush3.bf16.msra.mxu0 %v9481_v24  ;;  %v9493_v41 = vld [vmem:[#allocation12 + $0x38] sm:$0xff]   ;;  %v9536_v24 = vld [vmem:[#allocation12 + $0x2d0] sm:$0xff]  }
 0x486   :  { %8618 = vmatpush3.bf16.msra.mxu1 %v9482_v39  ;;  %8579 = vmatprep.subr.bf16.mxu0 %v9483_v27  ;;  %v9537_v39 = vld [vmem:[#allocation12 + $0x210] sm:$0xff]   ;;  %v9539_v27 = vld [vmem:[#allocation12 + $0x258] sm:$0xff]  }
 0x487   :  { %8619 = vmatprep.subr.bf16.mxu1 %v9484_v52  ;;  %v10900_v52 = vld [vmem:[#allocation25_spill] sm:$0xff] }
 0x489   :  { %8580 = vmatpush3.bf16.msra.mxu0 %v9485_v18  ;;  %v10902_v18 = vld [vmem:[#allocation29_spill] sm:$0xff] }
 0x48a   :  { %8620 = vmatpush3.bf16.msra.mxu1 %v9486_v21  ;;  %8581 = vmatprep.subr.bf16.mxu0 %v9487_v38  ;;  %v9541_v21 = vld [vmem:[#allocation12 + $0x218] sm:$0xff]  }
 0x48b   :  { %5852 = vmatmul.mubr.bf16.gmra.mrb[92].mxu0 %v10263_v37  ;;  %8621 = vmatprep.subr.bf16.mxu1 %v9488_v3  ;;  %v9542_v38 = vld [vmem:[#allocation12 + $0x298] sm:$0xff]   ;;  %v9543_v3 = vld [vmem:[#allocation12 + $0x260] sm:$0xff]  }
 0x48c   :  { %5998 = vmatmul.mubr.bf16.gmra.mrb[92].mxu1 %v10263_v37  ;;  %7263 = vmatprep.mubr.bf16.mxu0 %v10392_v40  ;;  %v9500_v37 = vld [vmem:[#allocation12 + $0x1c8] sm:$0xff]  }
 0x48d   :  { %8582 = vmatpush3.bf16.msra.mxu0 %v9489_v6  ;;  %7328 = vmatprep.mubr.bf16.mxu1 %v10394_v17  ;;  %v9501_v40 = vld [vmem:[#allocation12 + $0x108] sm:$0xff]   ;;  %v9544_v6 = vld [vmem:[#allocation12 + $0x2e0] sm:$0xff]  }
 0x48e   :  { %8622 = vmatpush3.bf16.msra.mxu1 %v9490_v55  ;;  %8583 = vmatprep.subr.bf16.mxu0 %v9491_v13  ;;  %v9502_v17 = vld [vmem:[#allocation12 + $0x188] sm:$0xff]  }
 0x48f   :  { %8623 = vmatprep.subr.bf16.mxu1 %v9492_v32  ;;  %v10903_v55 = vld [vmem:[#allocation21_spill] sm:$0xff]  ;;  %v10904_v32 = vld [vmem:[#allocation23_spill] sm:$0xff] }
 0x491   :  { %8584 = vmatpush3.bf16.msra.mxu0 %v9493_v41 }
 0x492   :  { %8624 = vmatpush3.bf16.msra.mxu1 %v9494_v36  ;;  %8649 = vmatprep.subr.bf16.mxu0 %v9495_v42  ;;  %v9545_v42 = vld [vmem:[#allocation12 + $0x220] sm:$0xff]  }
 0x493   :  { %8689 = vmatprep.subr.bf16.mxu1 %v9496_v0  ;;  %v10906_v0 = vld [vmem:[#allocation24_spill] sm:$0xff] }
 0x494   :  { %7264 = vmatmul.mubr.bf16.vlgmr.msra.gmra.mrb[96].mxu0 %v10383_v23  ;;  %v9506_v23 = vld [vmem:[#allocation12 + $0x190] sm:$0xff]  }
 0x495   :  { %7329 = vmatmul.mubr.bf16.vlgmr.msra.gmra.mrb[96].mxu1 %v10385_v30  ;;  %7271 = vmatprep.mubr.bf16.mxu0 %v10427_v50  ;;  %v9508_v30 = vld [vmem:[#allocation12 + $0x1d8] sm:$0xff]  }
 0x496   :  { %7336 = vmatprep.mubr.bf16.mxu1 %v10429_v53  ;;  %8650 = vmatpush3.bf16.msra.mxu0 %v9497_v7  ;;  %v9509_v50 = vld [vmem:[#allocation12 + $0x118] sm:$0xff]  }
 0x497   :  { %8690 = vmatpush3.bf16.msra.mxu1 %v9498_v10  ;;  %8651 = vmatprep.subr.bf16.mxu0 %v9499_v60  ;;  %v9510_v53 = vld [vmem:[#allocation12 + $0x198] sm:$0xff]   ;;  %v9546_v10 = vld [vmem:[#allocation12 + $0x2a0] sm:$0xff]  }
 0x498   :  { %8691 = vmatprep.subr.bf16.mxu1 %v9500_v37  ;;  %v9547_v37 = vld [vmem:[#allocation12 + $0x268] sm:$0xff]  }
 0x49a   :  { %8652 = vmatpush3.bf16.msra.mxu0 %v9501_v40  ;;  %v10907_v40 = vld [vmem:[#allocation27_spill] sm:$0xff] }
 0x49b   :  { %8692 = vmatpush3.bf16.msra.mxu1 %v9502_v17  ;;  %8653 = vmatprep.subr.bf16.mxu0 %v9503_v46 }
 0x49c   :  { %7272 = vmatmul.mubr.bf16.gmra.mrb[100].mxu0 %v10423_v15  ;;  %8693 = vmatprep.subr.bf16.mxu1 %v9504_v33  ;;  %v9514_v15 = vld [vmem:[#allocation12 + $0x1a0] sm:$0xff]  }
 0x49d   :  { %7337 = vmatmul.mubr.bf16.gmra.mrb[100].mxu1 %v10425_v20  ;;  %7279 = vmatprep.mubr.bf16.mxu0 %v10455_v51  ;;  %v9516_v51 = vld [vmem:[#allocation12 + $0x1e8] sm:$0xff]  }
 0x49e   :  { %7344 = vmatprep.mubr.bf16.mxu1 %v10457_v56  ;;  %8654 = vmatpush3.bf16.msra.mxu0 %v9505_v11  ;;  %v9517_v20 = vld [vmem:[#allocation12 + $0x128] sm:$0xff]  }
 0x49f   :  { %8694 = vmatpush3.bf16.msra.mxu1 %v9506_v23  ;;  %8655 = vmatprep.subr.bf16.mxu0 %v9507_v43  ;;  %v9518_v56 = vld [vmem:[#allocation12 + $0x1a8] sm:$0xff]  }
 0x4a0   :  { %8695 = vmatprep.subr.bf16.mxu1 %v9508_v30  ;;  %v9548_v11 = vld [vmem:[#allocation12 + $0x2e8] sm:$0xff]  }
 0x4a1   :  { %v10908_v23 = vld [vmem:[#allocation28_spill] sm:$0xff] }
 0x4a2   :  { %8656 = vmatpush3.bf16.msra.mxu0 %v9509_v50 }
 0x4a3   :  { %8696 = vmatpush3.bf16.msra.mxu1 %v9510_v53  ;;  %8657 = vmatprep.subr.bf16.mxu0 %v9511_v22 }
 0x4a4   :  { %7280 = vmatmul.mubr.bf16.gmra.mrb[104].mxu0 %v10451_v44  ;;  %8697 = vmatprep.subr.bf16.mxu1 %v9512_v63  ;;  %v9522_v44 = vld [vmem:[#allocation12 + $0x1b0] sm:$0xff]  }
 0x4a5   :  { %7345 = vmatmul.mubr.bf16.gmra.mrb[104].mxu1 %v10453_v45  ;;  %7287 = vmatprep.mubr.bf16.mxu0 %v10473_v12  ;;  %v9524_v45 = vld [vmem:[#allocation12 + $0x1f8] sm:$0xff]  }
 0x4a6   :  { %7352 = vmatprep.mubr.bf16.mxu1 %v10475_v5  ;;  %8658 = vmatpush3.bf16.msra.mxu0 %v9513_v14  ;;  %v9525_v12 = vld [vmem:[#allocation12 + $0x138] sm:$0xff]  }
 0x4a7   :  { %8698 = vmatpush3.bf16.msra.mxu1 %v9514_v15  ;;  %8659 = vmatprep.subr.bf16.mxu0 %v9515_v59  ;;  %v9526_v5 = vld [vmem:[#allocation12 + $0x1b8] sm:$0xff]   ;;  %v9549_v15 = vld [vmem:[#allocation12 + $0x228] sm:$0xff]  }
 0x4a8   :  { %8699 = vmatprep.subr.bf16.mxu1 %v9516_v51  ;;  %v9550_v51 = vld [vmem:[#allocation12 + $0x2a8] sm:$0xff]  }
 0x4aa   :  { %8660 = vmatpush3.bf16.msra.mxu0 %v9517_v20 }
 0x4ab   :  { %8700 = vmatpush3.bf16.msra.mxu1 %v9518_v56  ;;  %8661 = vmatprep.subr.bf16.mxu0 %v9519_v61  ;;  %v9551_v61 = vld [vmem:[#allocation12 + $0x270] sm:$0xff]  }
 0x4ac   :  { %7288 = vmatmul.mubr.bf16.gmra.mrb[108].mxu0 %v10469_v4  ;;  %8701 = vmatprep.subr.bf16.mxu1 %v9520_v19  ;;  %v9529_v4 = vld [vmem:[#allocation12 + $0x200] sm:$0xff]  }
 0x4ad   :  { %7353 = vmatmul.mubr.bf16.gmra.mrb[108].mxu1 %v10471_v29  ;;  %7393 = vmatprep.mubr.bf16.mxu0 %v10563_v57  ;;  %v9532_v29 = vld [vmem:[#allocation12 + $0x2c8] sm:$0xff]  }
 0x4ae   :  { %8662 = vmatpush3.bf16.msra.mxu0 %v9521_v26  ;;  %7458 = vmatprep.mubr.bf16.mxu1 %v10570_v2  ;;  %v9533_v57 = vld [vmem:[#allocation12 + $0x208] sm:$0xff]  }
 0x4af   :  { %8702 = vmatpush3.bf16.msra.mxu1 %v9522_v44  ;;  %8663 = vmatprep.subr.bf16.mxu0 %v9523_v8  ;;  %v9534_v2 = vld [vmem:[#allocation12 + $0x288] sm:$0xff]   ;;  %v9552_v44 = vld [vmem:[#allocation12 + $0x2f0] sm:$0xff]  }
 0x4b0   :  { %8703 = vmatprep.subr.bf16.mxu1 %v9524_v45 }
 0x4b2   :  { %8664 = vmatpush3.bf16.msra.mxu0 %v9525_v12 }
 0x4b3   :  { %8704 = vmatpush3.bf16.msra.mxu1 %v9526_v5  ;;  %8729 = vmatprep.subr.bf16.mxu0 %v9527_v58 }
 0x4b4   :  { %8769 = vmatprep.subr.bf16.mxu1 %v9528_v47 }
 0x4b5   :  { %7394 = vmatmul.mubr.bf16.vlgmr.msra.gmra.mrb[112].mxu0 %v10557_v35  ;;  %v9538_v35 = vld [vmem:[#allocation12 + $0x290] sm:$0xff]  }
 0x4b6   :  { %7459 = vmatmul.mubr.bf16.vlgmr.msra.gmra.mrb[112].mxu1 %v10561_v34  ;;  %7401 = vmatprep.mubr.bf16.mxu0 %v10596_v16  ;;  %v9540_v34 = vld [vmem:[#allocation12 + $0x2d8] sm:$0xff]  }
 0x4b7   :  { %7466 = vmatprep.mubr.bf16.mxu1 %v10598_v62  ;;  %8730 = vmatpush3.bf16.msra.mxu0 %v9529_v4  ;;  %v10901_v16 = vld [vmem:[#allocation26_spill] sm:$0xff] }
 0x4b8   :  { %8770 = vmatpush3.bf16.msra.mxu1 %v9530_v1  ;;  %8731 = vmatprep.subr.bf16.mxu0 %v9531_v48  ;;  %v10676_v62 = vld [vmem:[#allocation10 + $0x8] sm:$0xff]  ;;  %v9553_v1 = vld [vmem:[#allocation12 + $0x230] sm:$0xff]  }
 0x4b9   :  { %8771 = vmatprep.subr.bf16.mxu1 %v9532_v29  ;;  %v10681_v13 = vrot.slane %v10676_v62, %v10903_v55  ;;  %v10685_v41 = vrot.slane %v10676_v62, %v10904_v32  ;;  %v10693_v7 = vrot.slane %v10676_v62, %v10906_v0  ;;  %v9558_v32 = vld [vmem:[#allocation12 + $0x2b8] sm:$0xff]   ;;  %v9559_v0 = vld [vmem:[#allocation12 + $0x340] sm:$0xff]  }
 0x4bb   :  { %8732 = vmatpush3.bf16.msra.mxu0 %v9533_v57  ;;  %v9554_v57 = vld [vmem:[#allocation12 + $0x2b0] sm:$0xff]  }
 0x4bc   :  { %8772 = vmatpush3.bf16.msra.mxu1 %v9534_v2  ;;  %8733 = vmatprep.subr.bf16.mxu0 %v9535_v28  ;;  %v9555_v28 = vld [vmem:[#allocation12 + $0x278] sm:$0xff]  }
 0x4bd   :  { %7402 = vmatmul.mubr.bf16.gmra.mrb[116].mxu0 %v10900_v52  ;;  %8773 = vmatprep.subr.bf16.mxu1 %v9536_v24  ;;  %v9556_v52 = vld [vmem:[#allocation12 + $0x2f8] sm:$0xff]  }
 0x4be   :  { %7467 = vmatmul.mubr.bf16.gmra.mrb[116].mxu1 %v10901_v16  ;;  %7409 = vmatprep.mubr.bf16.mxu0 %v10616_v54  ;;  %v10905_v54 = vld [vmem:[#allocation22_spill] sm:$0xff] }
 0x4bf   :  { %7474 = vmatprep.mubr.bf16.mxu1 %v10902_v18  ;;  %8734 = vmatpush3.bf16.msra.mxu0 %v9537_v39  ;;  %v10689_v36 = vrot.slane %v10676_v62, %v10905_v54 }
 0x4c0   :  { %8774 = vmatpush3.bf16.msra.mxu1 %v9538_v35  ;;  %8735 = vmatprep.subr.bf16.mxu0 %v9539_v27 }
 0x4c1   :  { %8775 = vmatprep.subr.bf16.mxu1 %v9540_v34 }
 0x4c3   :  { %8736 = vmatpush3.bf16.msra.mxu0 %v9541_v21 }
 0x4c4   :  { %8776 = vmatpush3.bf16.msra.mxu1 %v9542_v38  ;;  %8737 = vmatprep.subr.bf16.mxu0 %v9543_v3  ;;  %v5531_v60 = vpop.f32.mrb[64].mxu0 }
 0x4c5   :  { %7410 = vmatmul.mubr.bf16.gmra.mrb[120].mxu0 %v10907_v40  ;;  %8777 = vmatprep.subr.bf16.mxu1 %v9544_v6  ;;  %v8985_v17 = vadd.f32 %v5531_v60, %v10681_v13  ;;  %v5677_v46 = vpop.f32.mrb[64].mxu1  ;;  %v5533_v33 = vpop.f32.mrb[65].mxu0  ;;  %v9557_v6 = vld [vmem:[#allocation12 + $0x238] sm:$0xff]   ;;  %v9561_v40 = vld [vmem:[#allocation12 + $0x3c0] sm:$0xff]  }
 0x4c6   :  { %7475 = vmatmul.mubr.bf16.gmra.mrb[120].mxu1 %v10908_v23  ;;  %7417 = vmatprep.mubr.bf16.mxu0 %v10633_v49  ;;  %v9001_v43 = vadd.f32 %v5677_v46, %v10685_v41  ;;  %v8986_v30 = vadd.f32 %v5533_v33, %v10689_v36  ;;  %v5679_v50 = vpop.f32.mrb[65].mxu1  ;;  %v5535_v53 = vpop.f32.mrb[66].mxu0 }
 0x4c7   :  { %7482 = vmatprep.mubr.bf16.mxu1 %v10635_v25  ;;  %8738 = vmatpush3.bf16.msra.mxu0 %v9545_v42  ;;  %v9002_v22 = vadd.f32 %v5679_v50, %v10693_v7  ;;  %v8987_v63 = vadd.f32 %v5535_v53, %v10681_v13  ;;  %v5681_v14 = vpop.f32.mrb[66].mxu1  ;;  %v5537_v59 = vpop.f32.mrb[67].mxu0  ;;  %v6016_v19 = vmax.f32 %v8985_v17, 0.0 }
 0x4c8   :  { %8778 = vmatpush3.bf16.msra.mxu1 %v9546_v10  ;;  %8739 = vmatprep.subr.bf16.mxu0 %v9547_v37  ;;  %v9003_v49 = vadd.f32 %v5681_v14, %v10685_v41  ;;  %v8988_v20 = vadd.f32 %v5537_v59, %v10689_v36  ;;  %v5683_v56 = vpop.f32.mrb[67].mxu1  ;;  %v6018_v8 = vmax.f32 %v9001_v43, 0.0  ;;  %v6017_v45 = vmax.f32 %v8986_v30, 0.0 }
 0x4c9   :  { %8779 = vmatprep.subr.bf16.mxu1 %v9548_v11  ;;  %v6032_v25 = vmax.f32 %v8987_v63, 0.0  ;;  %v9004_v26 = vadd.f32 %v5683_v56, %v10693_v7  ;;  %v6019_v58 = vmax.f32 %v9002_v22, 0.0  ;;  %v9560_v63 = vld [vmem:[#allocation12 + $0x300] sm:$0xff]  }
 0x4ca   :  { %v6034_v12 = vmax.f32 %v9003_v49, 0.0  ;;  %v6033_v5 = vmax.f32 %v8988_v20, 0.0  ;;  %v9563_v20 = vld [vmem:[#allocation12 + $0x348] sm:$0xff]  }
 0x4cb   :  { %v10707_v47 = vpack.c.bf16 %v6032_v25, %v6016_v19  ;;  %8740 = vmatpush3.bf16.msra.mxu0 %v9549_v15  ;;  %v6035_v4 = vmax.f32 %v9004_v26, 0.0  ;;  %v9565_v26 = vld [vmem:[#allocation12 + $0x3c8] sm:$0xff]  }
 0x4cc   :  { %v10709_v48 = vpack.c.bf16 %v6034_v12, %v6018_v8  ;;  %8780 = vmatpush3.bf16.msra.mxu1 %v9550_v51  ;;  %v6145_v29 = vpack.c.bf16 %v6033_v5, %v6017_v45  ;;  %8741 = vmatprep.subr.bf16.mxu0 %v9551_v61  ;;  %v5541_v2 = vpop.f32.mrb[68].mxu0  ;;  %v9562_v51 = vld [vmem:[#allocation12 + $0x380] sm:$0xff]  }
 0x4cd   :  { %v6147_v24 = vpack.c.bf16 %v6035_v4, %v6019_v58  ;;  %7418 = vmatmul.mubr.bf16.gmra.mrb[124].mxu0 %v10629_v9  ;;  %8781 = vmatprep.subr.bf16.mxu1 %v9552_v44  ;;  %v8989_v39 = vadd.f32 %v5541_v2, %v10681_v13  ;;  %v5687_v35 = vpop.f32.mrb[68].mxu1  ;;  %v5543_v27 = vpop.f32.mrb[69].mxu0  ;;  %v9564_v4 = vld [vmem:[#allocation12 + $0x308] sm:$0xff]   ;;  %v9567_v2 = vld [vmem:[#allocation12 + $0x350] sm:$0xff]  }
 0x4ce   :  { %7483 = vmatmul.mubr.bf16.gmra.mrb[124].mxu1 %v10631_v31  ;;  %v9005_v34 = vadd.f32 %v5687_v35, %v10685_v41  ;;  %v8990_v16 = vadd.f32 %v5543_v27, %v10689_v36  ;;  %v5689_v18 = vpop.f32.mrb[69].mxu1  ;;  %v5545_v21 = vpop.f32.mrb[70].mxu0  ;;  %7523 = vmatprep.mubr.bf16.mxu0 %v6145_v29  ;;  %v9569_v27 = vld [vmem:[#allocation12 + $0x3d0] sm:$0xff]  }
 0x4cf   :  { %8742 = vmatpush3.bf16.msra.mxu0 %v9553_v1  ;;  %v9006_v38 = vadd.f32 %v5689_v18, %v10693_v7  ;;  %v8991_v9 = vadd.f32 %v5545_v21, %v10681_v13  ;;  %v5691_v3 = vpop.f32.mrb[70].mxu1  ;;  %7588 = vmatprep.mubr.bf16.mxu1 %v6147_v24  ;;  %v5547_v55 = vpop.f32.mrb[71].mxu0  ;;  %v6048_v10 = vmax.f32 %v8989_v39, 0.0 }
 0x4d0   :  { %8782 = vmatpush3.bf16.msra.mxu1 %v9554_v57  ;;  %8743 = vmatprep.subr.bf16.mxu0 %v9555_v28  ;;  %v9007_v31 = vadd.f32 %v5691_v3, %v10685_v41  ;;  %v8992_v54 = vadd.f32 %v5547_v55, %v10689_v36  ;;  %v5693_v42 = vpop.f32.mrb[71].mxu1  ;;  %v6050_v17 = vmax.f32 %v9005_v34, 0.0  ;;  %v6049_v46 = vmax.f32 %v8990_v16, 0.0 }
 0x4d1   :  { %8783 = vmatprep.subr.bf16.mxu1 %v9556_v52  ;;  %v6064_v60 = vmax.f32 %v8991_v9, 0.0  ;;  %v9008_v37 = vadd.f32 %v5693_v42, %v10693_v7  ;;  %v6051_v23 = vmax.f32 %v9006_v38, 0.0  ;;  %v9568_v9 = vld [vmem:[#allocation12 + $0x310] sm:$0xff]  }
 0x4d2   :  { %v6066_v33 = vmax.f32 %v9007_v31, 0.0  ;;  %v6065_v11 = vmax.f32 %v8992_v54, 0.0  ;;  %v9571_v54 = vld [vmem:[#allocation12 + $0x358] sm:$0xff]  }
 0x4d3   :  { %v6160_v43 = vpack.c.bf16 %v6064_v60, %v6048_v10  ;;  %8744 = vmatpush3.bf16.msra.mxu0 %v9557_v6  ;;  %v6067_v30 = vmax.f32 %v9008_v37, 0.0  ;;  %v9573_v37 = vld [vmem:[#allocation12 + $0x3d8] sm:$0xff]  }
 0x4d4   :  { %v10721_v50 = vpack.c.bf16 %v6066_v33, %v6050_v17  ;;  %8784 = vmatpush3.bf16.msra.mxu1 %v9558_v32  ;;  %v6161_v53 = vpack.c.bf16 %v6065_v11, %v6049_v46  ;;  %v5551_v22 = vpop.f32.mrb[72].mxu0  ;;  %8809 = vmatprep.subr.bf16.mxu0 %v9559_v0  ;;  %v9570_v32 = vld [vmem:[#allocation12 + $0x390] sm:$0xff]  }
 0x4d5   :  { %v6163_v14 = vpack.c.bf16 %v6067_v30, %v6051_v23  ;;  %v8993_v15 = vadd.f32 %v5551_v22, %v10681_v13  ;;  %v5697_v59 = vpop.f32.mrb[72].mxu1  ;;  %v5553_v49 = vpop.f32.mrb[73].mxu0  ;;  %8849 = vmatprep.subr.bf16.mxu1 %v9561_v40  ;;  %v9572_v30 = vld [vmem:[#allocation12 + $0x318] sm:$0xff]  }
 0x4d6   :  { %7524 = vmatmul.mubr.bf16.vlgmr.msra.gmra.mrb[128].mxu0 %v10707_v47  ;;  %v9009_v56 = vadd.f32 %v5697_v59, %v10685_v41  ;;  %v8994_v61 = vadd.f32 %v5553_v49, %v10689_v36  ;;  %v5699_v19 = vpop.f32.mrb[73].mxu1  ;;  %v5555_v25 = vpop.f32.mrb[74].mxu0 }
 0x4d7   :  { %7589 = vmatmul.mubr.bf16.vlgmr.msra.gmra.mrb[128].mxu1 %v10709_v48  ;;  %v9010_v44 = vadd.f32 %v5699_v19, %v10693_v7  ;;  %v8995_v8 = vadd.f32 %v5555_v25, %v10681_v13  ;;  %v5701_v45 = vpop.f32.mrb[74].mxu1  ;;  %7531 = vmatprep.mubr.bf16.mxu0 %v6161_v53  ;;  %v5557_v12 = vpop.f32.mrb[75].mxu0  ;;  %v6080_v1 = vmax.f32 %v8993_v15, 0.0  ;;  %v9566_v48 = vld [vmem:[#allocation12 + $0x388] sm:$0xff]   ;;  %v9576_v19 = vld [vmem:[#allocation12 + $0x320] sm:$0xff]  }
 0x4d8   :  { %v9011_v5 = vadd.f32 %v5701_v45, %v10685_v41  ;;  %7596 = vmatprep.mubr.bf16.mxu1 %v6163_v14  ;;  %v8996_v58 = vadd.f32 %v5557_v12, %v10689_v36  ;;  %v5703_v47 = vpop.f32.mrb[75].mxu1  ;;  %8810 = vmatpush3.bf16.msra.mxu0 %v9560_v63  ;;  %v6082_v28 = vmax.f32 %v9009_v56, 0.0  ;;  %v6081_v24 = vmax.f32 %v8994_v61, 0.0  ;;  %v9575_v14 = vld [vmem:[#allocation12 + $0x360] sm:$0xff]   ;;  %v9582_v45 = vld [vmem:[#allocation12 + $0x3a8] sm:$0xff]   ;;  %v9583_v12 = vld [vmem:[#allocation12 + $0x370] sm:$0xff]  }
 0x4d9   :  { %v6096_v29 = vmax.f32 %v8995_v8, 0.0  ;;  %v9012_v57 = vadd.f32 %v5703_v47, %v10693_v7  ;;  %8850 = vmatpush3.bf16.msra.mxu1 %v9562_v51  ;;  %8811 = vmatprep.subr.bf16.mxu0 %v9563_v20  ;;  %v6083_v52 = vmax.f32 %v9010_v44, 0.0  ;;  %v9581_v44 = vld [vmem:[#allocation12 + $0x3e8] sm:$0xff]   ;;  %v9586_v47 = vld [vmem:[#allocation12 + $0x3b0] sm:$0xff]  }
 0x4da   :  { %v6098_v39 = vmax.f32 %v9011_v5, 0.0  ;;  %v6097_v35 = vmax.f32 %v8996_v58, 0.0  ;;  %8851 = vmatprep.subr.bf16.mxu1 %v9565_v26  ;;  %v9579_v26 = vld [vmem:[#allocation12 + $0x368] sm:$0xff]   ;;  %v9585_v5 = vld [vmem:[#allocation12 + $0x3f0] sm:$0xff]  }
 0x4db   :  { %v6176_v34 = vpack.c.bf16 %v6096_v29, %v6080_v1  ;;  %v6099_v16 = vmax.f32 %v9012_v57, 0.0  ;;  %v9580_v8 = vld [vmem:[#allocation12 + $0x328] sm:$0xff]   ;;  %v9584_v58 = vld [vmem:[#allocation12 + $0x330] sm:$0xff]   ;;  %v9589_v1 = vld [vmem:[#allocation12 + $0x3f8] sm:$0xff]  }
 0x4dc   :  { %v6178_v18 = vpack.c.bf16 %v6098_v39, %v6082_v28  ;;  %v6177_v21 = vpack.c.bf16 %v6097_v35, %v6081_v24  ;;  %v5561_v38 = vpop.f32.mrb[76].mxu0  ;;  %8812 = vmatpush3.bf16.msra.mxu0 %v9564_v4  ;;  %v9587_v4 = vld [vmem:[#allocation12 + $0x378] sm:$0xff]  }
 0x4dd   :  { %v6179_v3 = vpack.c.bf16 %v6099_v16, %v6083_v52  ;;  %v8997_v6 = vadd.f32 %v5561_v38, %v10681_v13  ;;  %v5707_v55 = vpop.f32.mrb[76].mxu1  ;;  %v5563_v31 = vpop.f32.mrb[77].mxu0  ;;  %8852 = vmatpush3.bf16.msra.mxu1 %v9566_v48  ;;  %8813 = vmatprep.subr.bf16.mxu0 %v9567_v2  ;;  %v9588_v29 = vld [vmem:[#allocation12 + $0x338] sm:$0xff]   ;;  %v10909_v48 = vld [vmem:[#allocation20_spill] sm:$0xff] }
 0x4de   :  { %7532 = vmatmul.mubr.bf16.gmra.mrb[132].mxu0 %v6160_v43  ;;  %v9013_v42 = vadd.f32 %v5707_v55, %v10685_v41  ;;  %v8998_v0 = vadd.f32 %v5563_v31, %v10689_v36  ;;  %v5709_v10 = vpop.f32.mrb[77].mxu1  ;;  %v5565_v60 = vpop.f32.mrb[78].mxu0  ;;  %8853 = vmatprep.subr.bf16.mxu1 %v9569_v27  ;;  %v9590_v57 = vld [vmem:[#allocation12 + $0x3b8] sm:$0xff]   ;;  %v10910_v2 = vsub.s32 4, %v10909_v48  ;;  %v10911_v24 = vsub.s32 6, %v10909_v48 }
 0x4df   :  { %7597 = vmatmul.mubr.bf16.gmra.mrb[132].mxu1 %v10721_v50  ;;  %v9014_v40 = vadd.f32 %v5709_v10, %v10693_v7  ;;  %v8999_v17 = vadd.f32 %v5565_v60, %v10681_v13  ;;  %v5711_v46 = vpop.f32.mrb[78].mxu1  ;;  %7539 = vmatprep.mubr.bf16.mxu0 %v6177_v21  ;;  %v5567_v33 = vpop.f32.mrb[79].mxu0  ;;  %v6112_v53 = vmax.f32 %v8997_v6, 0.0  ;;  %v9574_v50 = vld [vmem:[#allocation12 + $0x398] sm:$0xff]   ;;  %v10912_v35 = vsub.s32 5, %v10909_v48 }
 0x4e0   :  { %v9015_v11 = vadd.f32 %v5711_v46, %v10685_v41  ;;  %7604 = vmatprep.mubr.bf16.mxu1 %v6179_v3  ;;  %v9000_v23 = vadd.f32 %v5567_v33, %v10689_v36  ;;  %v5713_v43 = vpop.f32.mrb[79].mxu1  ;;  %8814 = vmatpush3.bf16.msra.mxu0 %v9568_v9  ;;  %v6114_v13 = vmax.f32 %v9013_v42, 0.0  ;;  %v6113_v15 = vmax.f32 %v8998_v0, 0.0  ;;  %v9577_v41 = vld [vmem:[#allocation12 + $0x3e0] sm:$0xff]  }
 0x4e1   :  { %v6128_v22 = vmax.f32 %v8999_v17, 0.0  ;;  %v9016_v63 = vadd.f32 %v5713_v43, %v10693_v7  ;;  %8854 = vmatpush3.bf16.msra.mxu1 %v9570_v32  ;;  %8815 = vmatprep.subr.bf16.mxu0 %v9571_v54  ;;  %v6115_v51 = vmax.f32 %v9014_v40, 0.0  ;;  %v9578_v7 = vld [vmem:[#allocation12 + $0x3a0] sm:$0xff]   ;;  %v10745_v28 = vrot.slane %v10676_v62, %v10910_v2 }
 0x4e2   :  { %v6130_v59 = vmax.f32 %v9015_v11, 0.0  ;;  %v6129_v49 = vmax.f32 %v9000_v23, 0.0  ;;  %8855 = vmatprep.subr.bf16.mxu1 %v9573_v37  ;;  %v10750_v39 = vrot.slane %v10676_v62, %v10911_v24  ;;  %v10755_v27 = vrot.slane %v10676_v62, %v10912_v35 }
 0x4e3   :  { %v6192_v20 = vpack.c.bf16 %v6128_v22, %v6112_v53  ;;  %v6131_v36 = vmax.f32 %v9016_v63, 0.0  ;;  %v10913_v52 = vsub.s32 7, %v10909_v48 }
 0x4e4   :  { %v6194_v56 = vpack.c.bf16 %v6130_v59, %v6114_v13  ;;  %v6193_v61 = vpack.c.bf16 %v6129_v49, %v6113_v15  ;;  %8816 = vmatpush3.bf16.msra.mxu0 %v9572_v30 }
 0x4e5   :  { %v6195_v25 = vpack.c.bf16 %v6131_v36, %v6115_v51  ;;  %8856 = vmatpush3.bf16.msra.mxu1 %v9574_v50  ;;  %8817 = vmatprep.subr.bf16.mxu0 %v9575_v14 }
 0x4e6   :  { %7540 = vmatmul.mubr.bf16.gmra.mrb[136].mxu0 %v6176_v34  ;;  %8857 = vmatprep.subr.bf16.mxu1 %v9577_v41  ;;  %v10760_v34 = vrot.slane %v10676_v62, %v10913_v52 }
 0x4e7   :  { %7605 = vmatmul.mubr.bf16.gmra.mrb[136].mxu1 %v6178_v18  ;;  %7547 = vmatprep.mubr.bf16.mxu0 %v6193_v61 }
 0x4e8   :  { %7612 = vmatprep.mubr.bf16.mxu1 %v6195_v25  ;;  %8818 = vmatpush3.bf16.msra.mxu0 %v9576_v19 }
 0x4e9   :  { %8858 = vmatpush3.bf16.msra.mxu1 %v9578_v7  ;;  %8819 = vmatprep.subr.bf16.mxu0 %v9579_v26 }
 0x4ea   :  { %8859 = vmatprep.subr.bf16.mxu1 %v9581_v44 }
 0x4ec   :  { %8820 = vmatpush3.bf16.msra.mxu0 %v9580_v8 }
 0x4ed   :  { %8860 = vmatpush3.bf16.msra.mxu1 %v9582_v45  ;;  %8821 = vmatprep.subr.bf16.mxu0 %v9583_v12 }
 0x4ee   :  { %7548 = vmatmul.mubr.bf16.gmra.mrb[140].mxu0 %v6192_v20  ;;  %8861 = vmatprep.subr.bf16.mxu1 %v9585_v5 }
 0x4ef   :  { %7613 = vmatmul.mubr.bf16.gmra.mrb[140].mxu1 %v6194_v56 }
 0x4f0   :  { %8822 = vmatpush3.bf16.msra.mxu0 %v9584_v58 }
 0x4f1   :  { %8862 = vmatpush3.bf16.msra.mxu1 %v9586_v47  ;;  %8823 = vmatprep.subr.bf16.mxu0 %v9587_v4 }
 0x4f2   :  { %8863 = vmatprep.subr.bf16.mxu1 %v9589_v1 }
 0x4f4   :  { %8824 = vmatpush3.bf16.msra.mxu0 %v9588_v29 }
 0x4f5   :  { %8864 = vmatpush3.bf16.msra.mxu1 %v9590_v57 }
 0x546   :  { %v5823_v16 = vpop.f32.mrb[80].mxu0 }
 0x547   :  { %v9017_v18 = vadd.f32 %v5823_v16, %v10745_v28  ;;  %v5969_v21 = vpop.f32.mrb[80].mxu1  ;;  %v5825_v38 = vpop.f32.mrb[81].mxu0 }
 0x548   :  { %v9033_v9 = vadd.f32 %v5969_v21, %v10750_v39  ;;  %v9018_v3 = vadd.f32 %v5825_v38, %v10755_v27  ;;  %v5971_v6 = vpop.f32.mrb[81].mxu1  ;;  %v5827_v55 = vpop.f32.mrb[82].mxu0 }
 0x549   :  { %v9034_v31 = vadd.f32 %v5971_v6, %v10760_v34  ;;  %v9019_v32 = vadd.f32 %v5827_v55, %v10745_v28  ;;  %v5973_v54 = vpop.f32.mrb[82].mxu1  ;;  %v5829_v42 = vpop.f32.mrb[83].mxu0  ;;  %v6020_v60 = vmax.f32 %v9017_v18, 0.0 }
 0x54a   :  { %v9035_v62 = vadd.f32 %v5973_v54, %v10750_v39  ;;  %v9020_v0 = vadd.f32 %v5829_v42, %v10755_v27  ;;  %v5975_v10 = vpop.f32.mrb[83].mxu1  ;;  %v6022_v17 = vmax.f32 %v9033_v9, 0.0  ;;  %v6021_v46 = vmax.f32 %v9018_v3, 0.0 }
 0x54b   :  { %v6036_v37 = vmax.f32 %v9019_v32, 0.0  ;;  %v9036_v40 = vadd.f32 %v5975_v10, %v10760_v34  ;;  %v6023_v23 = vmax.f32 %v9034_v31, 0.0 }
 0x54c   :  { %v6038_v33 = vmax.f32 %v9035_v62, 0.0  ;;  %v6037_v11 = vmax.f32 %v9020_v0, 0.0 }
 0x54d   :  { %v6148_v43 = vpack.c.bf16 %v6036_v37, %v6020_v60  ;;  %v6039_v30 = vmax.f32 %v9036_v40, 0.0 }
 0x54e   :  { %v6150_v53 = vpack.c.bf16 %v6038_v33, %v6022_v17  ;;  %v6149_v22 = vpack.c.bf16 %v6037_v11, %v6021_v46  ;;  %v5833_v63 = vpop.f32.mrb[84].mxu0 }
 0x54f   :  { %v6151_v50 = vpack.c.bf16 %v6039_v30, %v6023_v23  ;;  %v9021_v14 = vadd.f32 %v5833_v63, %v10745_v28  ;;  %v5979_v13 = vpop.f32.mrb[84].mxu1  ;;  %v5835_v15 = vpop.f32.mrb[85].mxu0 }
 0x550   :  { %v9037_v59 = vadd.f32 %v5979_v13, %v10750_v39  ;;  %v9022_v49 = vadd.f32 %v5835_v15, %v10755_v27  ;;  %v5981_v41 = vpop.f32.mrb[85].mxu1  ;;  %v5837_v51 = vpop.f32.mrb[86].mxu0  ;;  %7653 = vmatprep.mubr.bf16.mxu0 %v6149_v22 }
 0x551   :  { %v9038_v20 = vadd.f32 %v5981_v41, %v10760_v34  ;;  %v9023_v36 = vadd.f32 %v5837_v51, %v10745_v28  ;;  %v5983_v56 = vpop.f32.mrb[86].mxu1  ;;  %7718 = vmatprep.mubr.bf16.mxu1 %v6151_v50  ;;  %v5839_v61 = vpop.f32.mrb[87].mxu0  ;;  %7654 = vmatmul.mubr.bf16.vlgmr.msra.gmra.mrb[144].mxu0 %v6148_v43  ;;  %v6052_v26 = vmax.f32 %v9021_v14, 0.0 }
 0x552   :  { %v9039_v19 = vadd.f32 %v5983_v56, %v10750_v39  ;;  %v9024_v25 = vadd.f32 %v5839_v61, %v10755_v27  ;;  %v5985_v7 = vpop.f32.mrb[87].mxu1  ;;  %7719 = vmatmul.mubr.bf16.vlgmr.msra.gmra.mrb[144].mxu1 %v6150_v53  ;;  %v6054_v45 = vmax.f32 %v9037_v59, 0.0  ;;  %v6053_v12 = vmax.f32 %v9022_v49, 0.0 }
 0x553   :  { %v6068_v44 = vmax.f32 %v9023_v36, 0.0  ;;  %v9040_v8 = vadd.f32 %v5985_v7, %v10760_v34  ;;  %v6055_v47 = vmax.f32 %v9038_v20, 0.0 }
 0x554   :  { %v6070_v5 = vmax.f32 %v9039_v19, 0.0  ;;  %v6069_v58 = vmax.f32 %v9024_v25, 0.0 }
 0x555   :  { %v6164_v4 = vpack.c.bf16 %v6068_v44, %v6052_v26  ;;  %v6071_v1 = vmax.f32 %v9040_v8, 0.0 }
 0x556   :  { %v6166_v29 = vpack.c.bf16 %v6070_v5, %v6054_v45  ;;  %v6165_v57 = vpack.c.bf16 %v6069_v58, %v6053_v12  ;;  %v5843_v48 = vpop.f32.mrb[88].mxu0 }
 0x557   :  { %v6167_v2 = vpack.c.bf16 %v6071_v1, %v6055_v47  ;;  %v9025_v24 = vadd.f32 %v5843_v48, %v10745_v28  ;;  %v5989_v35 = vpop.f32.mrb[88].mxu1  ;;  %v5845_v52 = vpop.f32.mrb[89].mxu0  ;;  %v10794_v1 = vld [vmem:[#allocation13] ss:$0 sm:$0xff] }
 0x558   :  { %v9041_v16 = vadd.f32 %v5989_v35, %v10750_v39  ;;  %v9026_v18 = vadd.f32 %v5845_v52, %v10755_v27  ;;  %v5991_v21 = vpop.f32.mrb[89].mxu1  ;;  %v5847_v38 = vpop.f32.mrb[90].mxu0  ;;  %7661 = vmatprep.mubr.bf16.mxu0 %v6165_v57 }
 0x559   :  { %v9042_v9 = vadd.f32 %v5991_v21, %v10760_v34  ;;  %v9027_v3 = vadd.f32 %v5847_v38, %v10745_v28  ;;  %v5993_v6 = vpop.f32.mrb[90].mxu1  ;;  %7726 = vmatprep.mubr.bf16.mxu1 %v6167_v2  ;;  %v5849_v55 = vpop.f32.mrb[91].mxu0  ;;  %7662 = vmatmul.mubr.bf16.gmra.mrb[148].mxu0 %v6164_v4  ;;  %v6084_v42 = vmax.f32 %v9025_v24, 0.0 }
 0x55a   :  { %v9043_v31 = vadd.f32 %v5993_v6, %v10750_v39  ;;  %v9028_v32 = vadd.f32 %v5849_v55, %v10755_v27  ;;  %v5995_v54 = vpop.f32.mrb[91].mxu1  ;;  %7727 = vmatmul.mubr.bf16.gmra.mrb[148].mxu1 %v6166_v29  ;;  %v6086_v10 = vmax.f32 %v9041_v16, 0.0  ;;  %v6085_v60 = vmax.f32 %v9026_v18, 0.0 }
 0x55b   :  { %v6100_v62 = vmax.f32 %v9027_v3, 0.0  ;;  %v9044_v0 = vadd.f32 %v5995_v54, %v10760_v34  ;;  %v6087_v17 = vmax.f32 %v9042_v9, 0.0 }
 0x55c   :  { %v6102_v37 = vmax.f32 %v9043_v31, 0.0  ;;  %v6101_v40 = vmax.f32 %v9028_v32, 0.0 }
 0x55d   :  { %v6180_v46 = vpack.c.bf16 %v6100_v62, %v6084_v42  ;;  %v6103_v33 = vmax.f32 %v9044_v0, 0.0 }
 0x55e   :  { %v6182_v11 = vpack.c.bf16 %v6102_v37, %v6086_v10  ;;  %v6181_v23 = vpack.c.bf16 %v6101_v40, %v6085_v60  ;;  %v5853_v43 = vpop.f32.mrb[92].mxu0 }
 0x55f   :  { %v6183_v30 = vpack.c.bf16 %v6103_v33, %v6087_v17  ;;  %v9029_v53 = vadd.f32 %v5853_v43, %v10745_v28  ;;  %v5999_v22 = vpop.f32.mrb[92].mxu1  ;;  %v5855_v63 = vpop.f32.mrb[93].mxu0 }
 0x560   :  { %v9045_v50 = vadd.f32 %v5999_v22, %v10750_v39  ;;  %v9030_v14 = vadd.f32 %v5855_v63, %v10755_v27  ;;  %v6001_v13 = vpop.f32.mrb[93].mxu1  ;;  %v5857_v15 = vpop.f32.mrb[94].mxu0  ;;  %7669 = vmatprep.mubr.bf16.mxu0 %v6181_v23 }
 0x561   :  { %v9046_v59 = vadd.f32 %v6001_v13, %v10760_v34  ;;  %v9031_v49 = vadd.f32 %v5857_v15, %v10745_v28  ;;  %v6003_v41 = vpop.f32.mrb[94].mxu1  ;;  %7734 = vmatprep.mubr.bf16.mxu1 %v6183_v30  ;;  %v5859_v51 = vpop.f32.mrb[95].mxu0  ;;  %7670 = vmatmul.mubr.bf16.gmra.mrb[152].mxu0 %v6180_v46  ;;  %v6116_v61 = vmax.f32 %v9029_v53, 0.0 }
 0x562   :  { %v9047_v20 = vadd.f32 %v6003_v41, %v10750_v39  ;;  %v9032_v36 = vadd.f32 %v5859_v51, %v10755_v27  ;;  %v6005_v56 = vpop.f32.mrb[95].mxu1  ;;  %7735 = vmatmul.mubr.bf16.gmra.mrb[152].mxu1 %v6182_v11  ;;  %v6118_v7 = vmax.f32 %v9045_v50, 0.0  ;;  %v6117_v26 = vmax.f32 %v9030_v14, 0.0 }
 0x563   :  { %v6132_v19 = vmax.f32 %v9031_v49, 0.0  ;;  %v9048_v25 = vadd.f32 %v6005_v56, %v10760_v34  ;;  %v6119_v45 = vmax.f32 %v9046_v59, 0.0 }
 0x564   :  { %v6134_v44 = vmax.f32 %v9047_v20, 0.0  ;;  %v6133_v8 = vmax.f32 %v9032_v36, 0.0 }
 0x565   :  { %v6196_v28 = vpack.c.bf16 %v6132_v19, %v6116_v61  ;;  %v6135_v12 = vmax.f32 %v9048_v25, 0.0 }
 0x566   :  { %v6198_v5 = vpack.c.bf16 %v6134_v44, %v6118_v7  ;;  %v6197_v58 = vpack.c.bf16 %v6133_v8, %v6117_v26 }
 0x567   :  { %v6199_v47 = vpack.c.bf16 %v6135_v12, %v6119_v45  ;;  %v8585_v4 = vpop.f32.mrb[96].mxu0 }
 0x568   :  { %v8625_v39 = vpop.f32.mrb[96].mxu1  ;;  %v8586_v27 = vpop.f32.mrb[97].mxu0  ;;  %7677 = vmatprep.mubr.bf16.mxu0 %v6197_v58 }
 0x569   :  { %v8587_v29 = vadd.f32 %v8586_v27, %v8585_v4  ;;  %v8626_v57 = vpop.f32.mrb[97].mxu1  ;;  %v8588_v48 = vpop.f32.mrb[98].mxu0  ;;  %7742 = vmatprep.mubr.bf16.mxu1 %v6199_v47  ;;  %7678 = vmatmul.mubr.bf16.gmra.mrb[156].mxu0 %v6196_v28 }
 0x56a   :  { %v8627_v34 = vadd.f32 %v8626_v57, %v8625_v39  ;;  %v8628_v2 = vpop.f32.mrb[98].mxu1  ;;  %v8589_v24 = vpop.f32.mrb[99].mxu0  ;;  %7743 = vmatmul.mubr.bf16.gmra.mrb[156].mxu1 %v6198_v5 }
 0x56b   :  { %v7266_v35 = vadd.f32 %v8587_v29, %v10794_v1  ;;  %v8590_v52 = vadd.f32 %v8589_v24, %v8588_v48  ;;  %v8629_v16 = vpop.f32.mrb[99].mxu1 }
 0x56c   :  { %v8630_v18 = vadd.f32 %v8629_v16, %v8628_v2 }
 0x56d   :  { %v7331_v21 = vadd.f32 %v8627_v34, %v7266_v35  ;;  %v7269_v38 = vadd.f32 %v8590_v52, %v10794_v1 }
 0x56f   :  { %v10798_v9 = vadd.f32 %v8630_v18, %v7269_v38  ;;  %v8591_v3 = vpop.f32.mrb[100].mxu0 }
 0x570   :  { %v8631_v6 = vpop.f32.mrb[100].mxu1  ;;  %v8592_v55 = vpop.f32.mrb[101].mxu0 }
 0x571   :  { %v8593_v31 = vadd.f32 %v8592_v55, %v8591_v3  ;;  %v8632_v32 = vpop.f32.mrb[101].mxu1  ;;  %v8594_v54 = vpop.f32.mrb[102].mxu0 }
 0x572   :  { %v8633_v42 = vadd.f32 %v8632_v32, %v8631_v6  ;;  %v8634_v62 = vpop.f32.mrb[102].mxu1  ;;  %v8595_v0 = vpop.f32.mrb[103].mxu0 }
 0x573   :  { %v7274_v10 = vadd.f32 %v8593_v31, %v10794_v1  ;;  %v8596_v60 = vadd.f32 %v8595_v0, %v8594_v54  ;;  %v8635_v37 = vpop.f32.mrb[103].mxu1 }
 0x574   :  { %v8636_v40 = vadd.f32 %v8635_v37, %v8634_v62 }
 0x575   :  { %v7339_v17 = vadd.f32 %v8633_v42, %v7274_v10  ;;  %v7277_v46 = vadd.f32 %v8596_v60, %v10794_v1 }
 0x577   :  { %v10802_v33 = vadd.f32 %v8636_v40, %v7277_v46  ;;  %v8597_v11 = vpop.f32.mrb[104].mxu0 }
 0x578   :  { %v8637_v23 = vpop.f32.mrb[104].mxu1  ;;  %v8598_v43 = vpop.f32.mrb[105].mxu0 }
 0x579   :  { %v8599_v30 = vadd.f32 %v8598_v43, %v8597_v11  ;;  %v8638_v53 = vpop.f32.mrb[105].mxu1  ;;  %v8600_v22 = vpop.f32.mrb[106].mxu0 }
 0x57a   :  { %v8639_v63 = vadd.f32 %v8638_v53, %v8637_v23  ;;  %v8640_v50 = vpop.f32.mrb[106].mxu1  ;;  %v8601_v14 = vpop.f32.mrb[107].mxu0 }
 0x57b   :  { %v7282_v13 = vadd.f32 %v8599_v30, %v10794_v1  ;;  %v8602_v15 = vadd.f32 %v8601_v14, %v8600_v22  ;;  %v8641_v59 = vpop.f32.mrb[107].mxu1 }
 0x57c   :  { %v8642_v49 = vadd.f32 %v8641_v59, %v8640_v50 }
 0x57d   :  { %v7347_v41 = vadd.f32 %v8639_v63, %v7282_v13  ;;  %v7285_v51 = vadd.f32 %v8602_v15, %v10794_v1 }
 0x57f   :  { %v10806_v20 = vadd.f32 %v8642_v49, %v7285_v51  ;;  %v8603_v36 = vpop.f32.mrb[108].mxu0 }
 0x580   :  { %v8643_v56 = vpop.f32.mrb[108].mxu1  ;;  %v8604_v61 = vpop.f32.mrb[109].mxu0 }
 0x581   :  { %v8605_v19 = vadd.f32 %v8604_v61, %v8603_v36  ;;  %v8644_v25 = vpop.f32.mrb[109].mxu1  ;;  %v8606_v7 = vpop.f32.mrb[110].mxu0 }
 0x582   :  { %v8645_v26 = vadd.f32 %v8644_v25, %v8643_v56  ;;  %v8646_v44 = vpop.f32.mrb[110].mxu1  ;;  %v8607_v8 = vpop.f32.mrb[111].mxu0 }
 0x583   :  { %v7290_v45 = vadd.f32 %v8605_v19, %v10794_v1  ;;  %v8608_v28 = vadd.f32 %v8607_v8, %v8606_v7  ;;  %v8647_v12 = vpop.f32.mrb[111].mxu1 }
 0x584   :  { %v8648_v5 = vadd.f32 %v8647_v12, %v8646_v44 }
 0x585   :  { %v7355_v58 = vadd.f32 %v8645_v26, %v7290_v45  ;;  %v7293_v47 = vadd.f32 %v8608_v28, %v10794_v1 }
 0x587   :  { %v10810_v4 = vadd.f32 %v8648_v5, %v7293_v47 }
 0x588   :  { %v8665_v39 = vpop.f32.mrb[112].mxu0 }
 0x589   :  { %v8705_v27 = vpop.f32.mrb[112].mxu1  ;;  %v8666_v29 = vpop.f32.mrb[113].mxu0 }
 0x58a   :  { %v8667_v57 = vadd.f32 %v8666_v29, %v8665_v39  ;;  %v8706_v48 = vpop.f32.mrb[113].mxu1  ;;  %v8668_v34 = vpop.f32.mrb[114].mxu0 }
 0x58b   :  { %v8707_v2 = vadd.f32 %v8706_v48, %v8705_v27  ;;  %v8708_v24 = vpop.f32.mrb[114].mxu1  ;;  %v8669_v35 = vpop.f32.mrb[115].mxu0 }
 0x58c   :  { %v7396_v52 = vadd.f32 %v8667_v57, %v7331_v21  ;;  %v8670_v16 = vadd.f32 %v8669_v35, %v8668_v34  ;;  %v8709_v18 = vpop.f32.mrb[115].mxu1 }
 0x58d   :  { %v8710_v38 = vadd.f32 %v8709_v18, %v8708_v24 }
 0x58e   :  { %v7461_v3 = vadd.f32 %v8707_v2, %v7396_v52  ;;  %v7399_v6 = vadd.f32 %v8670_v16, %v10798_v9 }
 0x590   :  { %v10813_v55 = vadd.f32 %v8710_v38, %v7399_v6  ;;  %v8671_v1 = vpop.f32.mrb[116].mxu0 }
 0x591   :  { %v8711_v31 = vpop.f32.mrb[116].mxu1  ;;  %v8672_v32 = vpop.f32.mrb[117].mxu0 }
 0x592   :  { %v8673_v54 = vadd.f32 %v8672_v32, %v8671_v1  ;;  %v8712_v42 = vpop.f32.mrb[117].mxu1  ;;  %v8674_v62 = vpop.f32.mrb[118].mxu0 }
 0x593   :  { %v8713_v0 = vadd.f32 %v8712_v42, %v8711_v31  ;;  %v8714_v10 = vpop.f32.mrb[118].mxu1  ;;  %v8675_v60 = vpop.f32.mrb[119].mxu0 }
 0x594   :  { %v7404_v37 = vadd.f32 %v8673_v54, %v7339_v17  ;;  %v8676_v40 = vadd.f32 %v8675_v60, %v8674_v62  ;;  %v8715_v21 = vpop.f32.mrb[119].mxu1 }
 0x595   :  { %v8716_v46 = vadd.f32 %v8715_v21, %v8714_v10 }
 0x596   :  { %v7469_v11 = vadd.f32 %v8713_v0, %v7404_v37  ;;  %v7407_v23 = vadd.f32 %v8676_v40, %v10802_v33 }
 0x598   :  { %v10816_v43 = vadd.f32 %v8716_v46, %v7407_v23  ;;  %v8677_v9 = vpop.f32.mrb[120].mxu0 }
 0x599   :  { %v8717_v30 = vpop.f32.mrb[120].mxu1  ;;  %v8678_v53 = vpop.f32.mrb[121].mxu0 }
 0x59a   :  { %v8679_v22 = vadd.f32 %v8678_v53, %v8677_v9  ;;  %v8718_v63 = vpop.f32.mrb[121].mxu1  ;;  %v8680_v50 = vpop.f32.mrb[122].mxu0 }
 0x59b   :  { %v8719_v14 = vadd.f32 %v8718_v63, %v8717_v30  ;;  %v8720_v13 = vpop.f32.mrb[122].mxu1  ;;  %v8681_v15 = vpop.f32.mrb[123].mxu0 }
 0x59c   :  { %v7412_v59 = vadd.f32 %v8679_v22, %v7347_v41  ;;  %v8682_v49 = vadd.f32 %v8681_v15, %v8680_v50  ;;  %v8721_v17 = vpop.f32.mrb[123].mxu1 }
 0x59d   :  { %v8722_v51 = vadd.f32 %v8721_v17, %v8720_v13 }
 0x59e   :  { %v7477_v36 = vadd.f32 %v8719_v14, %v7412_v59  ;;  %v7415_v56 = vadd.f32 %v8682_v49, %v10806_v20 }
 0x5a0   :  { %v10819_v61 = vadd.f32 %v8722_v51, %v7415_v56  ;;  %v8683_v33 = vpop.f32.mrb[124].mxu0 }
 0x5a1   :  { %v8723_v19 = vpop.f32.mrb[124].mxu1  ;;  %v8684_v25 = vpop.f32.mrb[125].mxu0 }
 0x5a2   :  { %v8685_v7 = vadd.f32 %v8684_v25, %v8683_v33  ;;  %v8724_v26 = vpop.f32.mrb[125].mxu1  ;;  %v8686_v44 = vpop.f32.mrb[126].mxu0 }
 0x5a3   :  { %v8725_v8 = vadd.f32 %v8724_v26, %v8723_v19  ;;  %v8726_v45 = vpop.f32.mrb[126].mxu1  ;;  %v8687_v28 = vpop.f32.mrb[127].mxu0 }
 0x5a4   :  { %v7420_v12 = vadd.f32 %v8685_v7, %v7355_v58  ;;  %v8688_v5 = vadd.f32 %v8687_v28, %v8686_v44  ;;  %v8727_v41 = vpop.f32.mrb[127].mxu1 }
 0x5a5   :  { %v8728_v47 = vadd.f32 %v8727_v41, %v8726_v45 }
 0x5a6   :  { %v7485_v39 = vadd.f32 %v8725_v8, %v7420_v12  ;;  %v7423_v27 = vadd.f32 %v8688_v5, %v10810_v4 }
 0x5a8   :  { %v10822_v29 = vadd.f32 %v8728_v47, %v7423_v27 }
 0x5a9   :  { %v8745_v20 = vpop.f32.mrb[128].mxu0 }
 0x5aa   :  { %v8785_v57 = vpop.f32.mrb[128].mxu1  ;;  %v8746_v48 = vpop.f32.mrb[129].mxu0 }
 0x5ab   :  { %v8747_v34 = vadd.f32 %v8746_v48, %v8745_v20  ;;  %v8786_v2 = vpop.f32.mrb[129].mxu1  ;;  %v8748_v24 = vpop.f32.mrb[130].mxu0 }
 0x5ac   :  { %v8787_v35 = vadd.f32 %v8786_v2, %v8785_v57  ;;  %v8788_v52 = vpop.f32.mrb[130].mxu1  ;;  %v8749_v16 = vpop.f32.mrb[131].mxu0 }
 0x5ad   :  { %v7526_v18 = vadd.f32 %v8747_v34, %v7461_v3  ;;  %v8750_v38 = vadd.f32 %v8749_v16, %v8748_v24  ;;  %v8789_v58 = vpop.f32.mrb[131].mxu1 }
 0x5ae   :  { %v8790_v6 = vadd.f32 %v8789_v58, %v8788_v52 }
 0x5af   :  { %v7591_v1 = vadd.f32 %v8787_v35, %v7526_v18  ;;  %v7529_v31 = vadd.f32 %v8750_v38, %v10813_v55 }
 0x5b1   :  { %v10825_v32 = vadd.f32 %v8790_v6, %v7529_v31  ;;  %v8751_v4 = vpop.f32.mrb[132].mxu0 }
 0x5b2   :  { %v8791_v54 = vpop.f32.mrb[132].mxu1  ;;  %v8752_v42 = vpop.f32.mrb[133].mxu0 }
 0x5b3   :  { %v8753_v62 = vadd.f32 %v8752_v42, %v8751_v4  ;;  %v8792_v0 = vpop.f32.mrb[133].mxu1  ;;  %v8754_v10 = vpop.f32.mrb[134].mxu0 }
 0x5b4   :  { %v8793_v60 = vadd.f32 %v8792_v0, %v8791_v54  ;;  %v8794_v37 = vpop.f32.mrb[134].mxu1  ;;  %v8755_v40 = vpop.f32.mrb[135].mxu0 }
 0x5b5   :  { %v7534_v21 = vadd.f32 %v8753_v62, %v7469_v11  ;;  %v8756_v46 = vadd.f32 %v8755_v40, %v8754_v10  ;;  %v8795_v3 = vpop.f32.mrb[135].mxu1 }
 0x5b6   :  { %v8796_v23 = vadd.f32 %v8795_v3, %v8794_v37 }
 0x5b7   :  { %v7599_v9 = vadd.f32 %v8793_v60, %v7534_v21  ;;  %v7537_v30 = vadd.f32 %v8756_v46, %v10816_v43 }
 0x5b9   :  { %v10828_v53 = vadd.f32 %v8796_v23, %v7537_v30  ;;  %v8757_v55 = vpop.f32.mrb[136].mxu0 }
 0x5ba   :  { %v8797_v22 = vpop.f32.mrb[136].mxu1  ;;  %v8758_v63 = vpop.f32.mrb[137].mxu0 }
 0x5bb   :  { %v8759_v50 = vadd.f32 %v8758_v63, %v8757_v55  ;;  %v8798_v14 = vpop.f32.mrb[137].mxu1  ;;  %v8760_v13 = vpop.f32.mrb[138].mxu0 }
 0x5bc   :  { %v8799_v15 = vadd.f32 %v8798_v14, %v8797_v22  ;;  %v8800_v59 = vpop.f32.mrb[138].mxu1  ;;  %v8761_v49 = vpop.f32.mrb[139].mxu0 }
 0x5bd   :  { %v7542_v17 = vadd.f32 %v8759_v50, %v7477_v36  ;;  %v8762_v51 = vadd.f32 %v8761_v49, %v8760_v13  ;;  %v8801_v11 = vpop.f32.mrb[139].mxu1 }
 0x5be   :  { %v8802_v56 = vadd.f32 %v8801_v11, %v8800_v59 }
 0x5bf   :  { %v10830_v33 = vadd.f32 %v8799_v15, %v7542_v17  ;;  %v7545_v19 = vadd.f32 %v8762_v51, %v10819_v61 }
 0x5c1   :  { %v10833_v43 = vadd.f32 %v8802_v56, %v7545_v19  ;;  %v8763_v25 = vpop.f32.mrb[140].mxu0 }
 0x5c2   :  { %v8803_v7 = vpop.f32.mrb[140].mxu1  ;;  %v8764_v26 = vpop.f32.mrb[141].mxu0 }
 0x5c3   :  { %v8765_v44 = vadd.f32 %v8764_v26, %v8763_v25  ;;  %v8804_v8 = vpop.f32.mrb[141].mxu1  ;;  %v8766_v45 = vpop.f32.mrb[142].mxu0 }
 0x5c4   :  { %v8805_v28 = vadd.f32 %v8804_v8, %v8803_v7  ;;  %v8806_v12 = vpop.f32.mrb[142].mxu1  ;;  %v8767_v5 = vpop.f32.mrb[143].mxu0 }
 0x5c5   :  { %v7550_v41 = vadd.f32 %v8765_v44, %v7485_v39  ;;  %v8768_v36 = vadd.f32 %v8767_v5, %v8766_v45  ;;  %v8807_v47 = vpop.f32.mrb[143].mxu1 }
 0x5c6   :  { %v8808_v27 = vadd.f32 %v8807_v47, %v8806_v12 }
 0x5c7   :  { %v10835_v20 = vadd.f32 %v8805_v28, %v7550_v41  ;;  %v7553_v57 = vadd.f32 %v8768_v36, %v10822_v29 }
 0x5c9   :  { %v10838_v61 = vadd.f32 %v8808_v27, %v7553_v57 }
 0x624   :  { %v8825_v48 = vpop.f32.mrb[144].mxu0 }
 0x625   :  { %v8865_v34 = vpop.f32.mrb[144].mxu1  ;;  %v8826_v2 = vpop.f32.mrb[145].mxu0 }
 0x626   :  { %v8827_v24 = vadd.f32 %v8826_v2, %v8825_v48  ;;  %v8866_v35 = vpop.f32.mrb[145].mxu1  ;;  %v8828_v52 = vpop.f32.mrb[146].mxu0 }
 0x627   :  { %v8867_v16 = vadd.f32 %v8866_v35, %v8865_v34  ;;  %v8868_v18 = vpop.f32.mrb[146].mxu1  ;;  %v8829_v38 = vpop.f32.mrb[147].mxu0 }
 0x628   :  { %v7656_v58 = vadd.f32 %v8827_v24, %v7591_v1  ;;  %v8830_v39 = vadd.f32 %v8829_v38, %v8828_v52  ;;  %v8869_v6 = vpop.f32.mrb[147].mxu1 }
 0x629   :  { %v8870_v31 = vadd.f32 %v8869_v6, %v8868_v18 }
 0x62a   :  { %v7721_v4 = vadd.f32 %v8867_v16, %v7656_v58  ;;  %v7659_v54 = vadd.f32 %v8830_v39, %v10825_v32 }
 0x62c   :  { %7751 = vst [vmem:[%s10879_s9] sm:$0xff] %v7721_v4  ;;  %v7724_v29 = vadd.f32 %v8870_v31, %v7659_v54  ;;  %v8831_v42 = vpop.f32.mrb[148].mxu0 }
 0x62d   :  { %v8871_v62 = vpop.f32.mrb[148].mxu1  ;;  %v8832_v0 = vpop.f32.mrb[149].mxu0 }
 0x62e   :  { %7752 = vst [vmem:[%s10879_s9 + $0x8] sm:$0xff] %v7724_v29  ;;  %v8833_v10 = vadd.f32 %v8832_v0, %v8831_v42  ;;  %v8872_v1 = vpop.f32.mrb[149].mxu1  ;;  %v8834_v60 = vpop.f32.mrb[150].mxu0 }
 0x62f   :  { %v8873_v37 = vadd.f32 %v8872_v1, %v8871_v62  ;;  %v8874_v40 = vpop.f32.mrb[150].mxu1  ;;  %v8835_v21 = vpop.f32.mrb[151].mxu0 }
 0x630   :  { %v7664_v46 = vadd.f32 %v8833_v10, %v7599_v9  ;;  %v8836_v32 = vadd.f32 %v8835_v21, %v8834_v60  ;;  %v8875_v3 = vpop.f32.mrb[151].mxu1 }
 0x631   :  { %v8876_v23 = vadd.f32 %v8875_v3, %v8874_v40 }
 0x632   :  { %v7729_v30 = vadd.f32 %v8873_v37, %v7664_v46  ;;  %v7667_v55 = vadd.f32 %v8836_v32, %v10828_v53 }
 0x634   :  { %7753 = vst [vmem:[%s10879_s9 + $0x10] sm:$0xff] %v7729_v30  ;;  %v7732_v22 = vadd.f32 %v8876_v23, %v7667_v55  ;;  %v8837_v63 = vpop.f32.mrb[152].mxu0 }
 0x635   :  { %v8877_v50 = vpop.f32.mrb[152].mxu1  ;;  %v8838_v14 = vpop.f32.mrb[153].mxu0 }
 0x636   :  { %7754 = vst [vmem:[%s10879_s9 + $0x18] sm:$0xff] %v7732_v22  ;;  %v8839_v13 = vadd.f32 %v8838_v14, %v8837_v63  ;;  %v8878_v9 = vpop.f32.mrb[153].mxu1  ;;  %v8840_v15 = vpop.f32.mrb[154].mxu0 }
 0x637   :  { %v8879_v59 = vadd.f32 %v8878_v9, %v8877_v50  ;;  %v8880_v49 = vpop.f32.mrb[154].mxu1  ;;  %v8841_v17 = vpop.f32.mrb[155].mxu0 }
 0x638   :  { %v7672_v53 = vadd.f32 %v8839_v13, %v10830_v33  ;;  %v8842_v51 = vadd.f32 %v8841_v17, %v8840_v15  ;;  %v8881_v11 = vpop.f32.mrb[155].mxu1 }
 0x639   :  { %v8882_v56 = vadd.f32 %v8881_v11, %v8880_v49 }
 0x63a   :  { %v7737_v19 = vadd.f32 %v8879_v59, %v7672_v53  ;;  %v7675_v25 = vadd.f32 %v8842_v51, %v10833_v43 }
 0x63c   :  { %7755 = vst [vmem:[%s10879_s9 + $0x20] sm:$0xff] %v7737_v19  ;;  %v7740_v7 = vadd.f32 %v8882_v56, %v7675_v25  ;;  %v8843_v26 = vpop.f32.mrb[156].mxu0 }
 0x63d   :  { %v8883_v44 = vpop.f32.mrb[156].mxu1  ;;  %v8844_v8 = vpop.f32.mrb[157].mxu0 }
 0x63e   :  { %7756 = vst [vmem:[%s10879_s9 + $0x28] sm:$0xff] %v7740_v7  ;;  %v8845_v45 = vadd.f32 %v8844_v8, %v8843_v26  ;;  %v8884_v33 = vpop.f32.mrb[157].mxu1  ;;  %v8846_v28 = vpop.f32.mrb[158].mxu0 }
 0x63f   :  { %v8885_v12 = vadd.f32 %v8884_v33, %v8883_v44  ;;  %v8886_v5 = vpop.f32.mrb[158].mxu1  ;;  %v8847_v41 = vpop.f32.mrb[159].mxu0 }
 0x640   :  { %v7680_v43 = vadd.f32 %v8845_v45, %v10835_v20  ;;  %v8848_v36 = vadd.f32 %v8847_v41, %v8846_v28  ;;  %v8887_v47 = vpop.f32.mrb[159].mxu1 }
 0x641   :  { %v8888_v27 = vadd.f32 %v8887_v47, %v8886_v5 }
 0x642   :  { %v7745_v57 = vadd.f32 %v8885_v12, %v7680_v43  ;;  %v7683_v48 = vadd.f32 %v8848_v36, %v10838_v61 }
 0x644   :  { %7757 = vst [vmem:[%s10879_s9 + $0x30] sm:$0xff] %v7745_v57  ;;  %v7748_v34 = vadd.f32 %v8888_v27, %v7683_v48 }
 0x646   :  { %7758 = vst [vmem:[%s10879_s9 + $0x38] sm:$0xff] %v7748_v34 }
 0x647   :  { %7763 = vsyncpa [#allocation3], 1 }
 0x648   :  { %7764 = vsyncpa [#allocation5], 1 }
 0x649   :  { %7765 = vsyncpa [#allocation8], 1 }
 0x64a   :  { %7766 = vsyncpa [#allocation11], 1 }
 0x64b   :  { %7767 = vsyncpa [#allocation14], 1 }

</bundles_post_ra>
